<compile_context>
chip_gen: v7x
topology: tpu7x:2x2x1
jax: 0.10.0
libtpu: 0.0.40
codegen_flags: <defaults>
</compile_context>

<pallas_src>
import jax
import jax.numpy as jnp
from jax.experimental import pallas as pl
from jax.experimental.pallas import tpu as pltpu


# ---------------------------------------------------------------------------
# Fused conv3x3(pad=1) + bias + ReLU + maxpool2x2  (NHWC in / NHWC out)
# ---------------------------------------------------------------------------

def conv3x3_relu_pool(x_nhwc, w9, b2d, *, block_rows=128):
    """x_nhwc: (N,H,W,Cin) bf16; w9: (9,Cin,Cout) bf16 taps (dy*3+dx order);
    b2d: (1,Cout) f32.  Returns pooled (N,H//2,W//2,Cout) bf16."""
    N, H, W, Cin = x_nhwc.shape
    Cout = w9.shape[-1]
    assert H % 2 == 0 and W % 2 == 0

    # Largest even row-block <= block_rows that divides H (guard against
    # VMEM-busting whole-image fallbacks at non-toy shapes).
    cap = max(2, min(block_rows, H))
    th = max(d for d in range(2, cap + 1, 2) if H % d == 0)
    thh, Hh, Wh = th // 2, H // 2, W // 2

    # glue: zero-pad only (no im2col materialization in HBM).
    xp = jnp.pad(x_nhwc, ((0, 0), (1, 1), (1, 1), (0, 0)))

    def kernel(x_ref, w_ref, b_ref, o_ref, row_scr):
        # x_ref: (1, H+2, W+2, Cin) padded image, resident across the row axis
        # w_ref: (9, Cin, Cout) | b_ref: (1, Cout)
        # o_ref: (1, th//2, W//2, Cout) pooled output block
        # row_scr: (th//2, W, Cout) f32 scratch (row-pooled, pre column-pool)
        r = pl.program_id(1)
        row0 = r * th

        acc = jnp.zeros((th * W, Cout), jnp.float32)
        for dy in range(3):
            for dx in range(3):
                patch = x_ref[0, pl.ds(row0 + dy, th), pl.ds(dx, W), :]
                acc = acc + jnp.dot(patch.reshape(th * W, Cin),
                                    w_ref[dy * 3 + dx],
                                    preferred_element_type=jnp.float32)

        y = jnp.maximum(acc + b_ref[...], 0.0).reshape(thh, 2, W, Cout)
        # pool adjacent rows (integer index on a leading dim)
        row_scr[...] = jnp.maximum(y[:, 0], y[:, 1])
        # pool adjacent columns (stride-2 sublane reads from scratch)
        pooled = jnp.maximum(row_scr[:, pl.ds(0, Wh, 2), :],
                             row_scr[:, pl.ds(1, Wh, 2), :])
        o_ref[0] = pooled.astype(o_ref.dtype)

    return pl.pallas_call(
        kernel,
        out_shape=jax.ShapeDtypeStruct((N, Hh, Wh, Cout), x_nhwc.dtype),
        grid=(N, H // th),
        in_specs=[
            # full padded image per batch element; revisited across row blocks
            pl.BlockSpec((1, H + 2, W + 2, Cin), lambda n, r: (n, 0, 0, 0)),
            pl.BlockSpec((9, Cin, Cout), lambda n, r: (0, 0, 0)),
            pl.BlockSpec((1, Cout), lambda n, r: (0, 0)),
        ],
        out_specs=pl.BlockSpec((1, thh, Wh, Cout), lambda n, r: (n, r, 0, 0)),
        scratch_shapes=[pltpu.VMEM((thh, W, Cout), jnp.float32)],
        compiler_params=pltpu.CompilerParams(
            dimension_semantics=("parallel", "parallel")),
    )(xp, w9, b2d)


# ---------------------------------------------------------------------------
# FC head: Linear(F,64) -> ReLU -> Linear(64,2) in one kernel with a K-grid
# ---------------------------------------------------------------------------

def fc_head(x_flat, w1, b1, w2, b2, *, tk_max=8192):
    N, F = x_flat.shape
    H1 = w1.shape[1]
    O = w2.shape[1]

    # Largest 128-multiple K block <= tk_max that divides F.
    tk = 0
    t = min(tk_max, F) - (min(tk_max, F) % 128)
    while t >= 128:
        if F % t == 0:
            tk = t
            break
        t -= 128
    if tk == 0:
        # TODO(synk): add remainder handling; whole-F block is only OK for small F.
        tk = F

    def kernel(x_ref, w1_ref, b1_ref, w2_ref, b2_ref, o_ref, acc_ref):
        k = pl.program_id(0)

        @pl.when(k == 0)
        def _():
            acc_ref[...] = jnp.zeros_like(acc_ref)

        acc_ref[...] += jnp.dot(x_ref[...], w1_ref[...],
                                preferred_element_type=jnp.float32)

        @pl.when(k == pl.num_programs(0) - 1)
        def _():
            h = jnp.maximum(acc_ref[...] + b1_ref[...], 0.0)          # (N, 64)
            o_ref[...] = (jnp.dot(h.astype(w2_ref.dtype), w2_ref[...],
                                  preferred_element_type=jnp.float32)
                          + b2_ref[...]).astype(o_ref.dtype)

    return pl.pallas_call(
        kernel,
        out_shape=jax.ShapeDtypeStruct((N, O), jnp.float32),
        grid=(F // tk,),
        in_specs=[
            pl.BlockSpec((N, tk), lambda k: (0, k)),
            pl.BlockSpec((tk, H1), lambda k: (k, 0)),
            pl.BlockSpec((1, H1), lambda k: (0, 0)),
            pl.BlockSpec((H1, O), lambda k: (0, 0)),
            pl.BlockSpec((1, O), lambda k: (0, 0)),
        ],
        out_specs=pl.BlockSpec((N, O), lambda k: (0, 0)),
        scratch_shapes=[pltpu.VMEM((N, H1), jnp.float32)],
        compiler_params=pltpu.CompilerParams(dimension_semantics=("arbitrary",)),
    )(x_flat, w1, b1, w2, b2)


# ---------------------------------------------------------------------------
# Forward pass
# ---------------------------------------------------------------------------

def location_cnn_forward(x_nchw, kp, *, block_rows=8, tk_max=512):
    # block_rows / tk_max defaults are toy-sized so the row-block and K grids
    # are actually exercised at 32x32; at the real 480x640 size use
    # block_rows≈64-128 and tk_max≈8192-16384 (fits v5e/v6e/v7x VMEM budgets).
    x = jnp.transpose(x_nchw, (0, 2, 3, 1)).astype(jnp.bfloat16)   # NCHW -> NHWC
    x = conv3x3_relu_pool(x, kp["conv1_w"], kp["conv1_b"], block_rows=block_rows)
    x = conv3x3_relu_pool(x, kp["conv2_w"], kp["conv2_b"], block_rows=block_rows)
    # NHWC flatten; fc1_w rows were pre-permuted so no NCHW transpose is needed.
    x = x.reshape(x.shape[0], -1)
    return fc_head(x, kp["fc1_w"], kp["fc1_b"], kp["fc2_w"], kp["fc2_b"],
                   tk_max=tk_max)


# ---------------------------------------------------------------------------
# Parameters: torch-style init (f32, torch layout) + one-time kernel prep
# ---------------------------------------------------------------------------

def init_params(key, H, W):
    F = 32 * (H // 4) * (W // 4)
    ks = jax.random.split(key, 8)

    def u(k, shape, fan_in):
        bound = 1.0 / (fan_in ** 0.5)
        return jax.random.uniform(k, shape, jnp.float32, -bound, bound)

    return dict(
        conv1_w=u(ks[0], (16, 3, 3, 3), 3 * 9),
        conv1_b=u(ks[1], (16,), 3 * 9),
        conv2_w=u(ks[2], (32, 16, 3, 3), 16 * 9),
        conv2_b=u(ks[3], (32,), 16 * 9),
        fc1_w=u(ks[4], (F, 64), F),      # stored (in, out) = torch weight.T
        fc1_b=u(ks[5], (64,), F),
        fc2_w=u(ks[6], (64, 2), 64),     # stored (in, out) = torch weight.T
        fc2_b=u(ks[7], (2,), 64),
    )


def prepare_params(p, H, W):
    """One-time conversion to kernel layout: conv weights -> (9,Cin,Cout) bf16
    taps, biases -> (1,C) f32, fc1 rows permuted from NCHW-flatten to
    NHWC-flatten order, FC weights bf16.  (Folds the pre-FC transpose into
    the weights.)"""
    def conv_taps(w_oihw):
        co, ci = w_oihw.shape[0], w_oihw.shape[1]
        return jnp.transpose(w_oihw, (2, 3, 1, 0)).reshape(9, ci, co).astype(jnp.bfloat16)

    hh, wh = H // 4, W // 4
    c2 = p["conv2_w"].shape[0]
    h1 = p["fc1_w"].shape[1]
    w1_nhwc = (p["fc1_w"].reshape(c2, hh, wh, h1)
               .transpose(1, 2, 0, 3).reshape(-1, h1))
    return dict(
        conv1_w=conv_taps(p["conv1_w"]),
        conv1_b=p["conv1_b"].reshape(1, -1).astype(jnp.float32),
        conv2_w=conv_taps(p["conv2_w"]),
        conv2_b=p["conv2_b"].reshape(1, -1).astype(jnp.float32),
        fc1_w=w1_nhwc.astype(jnp.bfloat16),
        fc1_b=p["fc1_b"].reshape(1, -1).astype(jnp.float32),
        fc2_w=p["fc2_w"].astype(jnp.bfloat16),
        fc2_b=p["fc2_b"].reshape(1, -1).astype(jnp.float32),
    )


# ---------------------------------------------------------------------------
# Pure-JAX f32 reference (torch semantics) for correctness
# ---------------------------------------------------------------------------

def reference_forward(x_nchw, p):
    y = jax.lax.conv_general_dilated(
        x_nchw, p["conv1_w"], (1, 1), ((1, 1), (1, 1)),
        dimension_numbers=("NCHW", "OIHW", "NCHW"))
    y = jax.nn.relu(y + p["conv1_b"][None, :, None, None])
    y = jax.lax.reduce_window(y, -jnp.inf, jax.lax.max,
                              (1, 1, 2, 2), (1, 1, 2, 2), "VALID")
    y = jax.lax.conv_general_dilated(
        y, p["conv2_w"], (1, 1), ((1, 1), (1, 1)),
        dimension_numbers=("NCHW", "OIHW", "NCHW"))
    y = jax.nn.relu(y + p["conv2_b"][None, :, None, None])
    y = jax.lax.reduce_window(y, -jnp.inf, jax.lax.max,
                              (1, 1, 2, 2), (1, 1, 2, 2), "VALID")
    y = y.reshape(y.shape[0], -1)
    y = jax.nn.relu(y @ p["fc1_w"] + p["fc1_b"])
    return y @ p["fc2_w"] + p["fc2_b"]


if __name__ == "__main__":
    # Small shapes: batch=2, channels=3, spatial 32x32 (original module would
    # use 480x640, giving the 32*120*160 fc input).
    N, C, H, W = 2, 3, 32, 32
    key = jax.random.PRNGKey(0)
    kx, kp = jax.random.split(key)
    x = jax.random.normal(kx, (N, C, H, W), jnp.float32)
    params = init_params(kp, H, W)
    kparams = prepare_params(params, H, W)     # one-time weight prep (outside jit)

    out = jax.jit(location_cnn_forward)(x, kparams)
    out = jax.block_until_ready(out)
    assert out.shape == (N, 2) and out.dtype == jnp.float32

    ref = reference_forward(x, params)
    # bf16 storage with f32 accumulation vs f32 reference.
    assert jnp.allclose(out, ref, rtol=2e-2, atol=2e-2), (out, ref)

    print("KERNEL_OK")
</pallas_src>

<mosaic_0001>
module attributes {stable_mosaic.version = 11 : i64} {
  func.func @kernel(%arg0: i32, %arg1: i32, %arg2: memref<1x34x34x3xbf16, #tpu.memory_space<vmem>>, %arg3: memref<9x3x16xbf16, #tpu.memory_space<vmem>>, %arg4: memref<1x16xf32, #tpu.memory_space<vmem>>, %arg5: memref<1x4x16x16xbf16, #tpu.memory_space<vmem>>, %arg6: memref<4x32x16xf32, #tpu.memory_space<vmem>>) attributes {dimension_semantics = [#tpu.dimension_semantics<parallel>, #tpu.dimension_semantics<parallel>], iteration_bounds = array<i64: 2, 4>, scalar_prefetch = 0 : i64, scratch_operands = 1 : i64, tpu.core_type = #tpu.core_type<tc>, window_params = [{transform_indices = @transform_0, window_bounds = array<i64: 1, 34, 34, 3>}, {pipeline_mode = #tpu.pipeline_mode<synchronous>, transform_indices = @transform_1, window_bounds = array<i64: 9, 3, 16>}, {pipeline_mode = #tpu.pipeline_mode<synchronous>, transform_indices = @transform_2, window_bounds = array<i64: 1, 16>}, {transform_indices = @transform_3, window_bounds = array<i64: 1, 4, 16, 16>}]} {
    %c8_i32 = arith.constant 8 : i32
    %0 = arith.muli %arg1, %c8_i32 : i32
    %cst = arith.constant 0.000000e+00 : f32
    %1 = vector.broadcast %cst : f32 to vector<256x16xf32>
    %c0_i32 = arith.constant 0 : i32
    %2 = arith.addi %0, %c0_i32 : i32
    %c0 = arith.constant 0 : index
    %3 = arith.index_cast %2 : i32 to index
    %c0_0 = arith.constant 0 : index
    %c0_1 = arith.constant 0 : index
    %4 = vector.load %arg2[%c0, %3, %c0_0, %c0_1] : memref<1x34x34x3xbf16, #tpu.memory_space<vmem>>, vector<1x8x32x3xbf16>
    %5 = vector.shape_cast %4 : vector<1x8x32x3xbf16> to vector<8x32x3xbf16>
    %6 = vector.shape_cast %5 : vector<8x32x3xbf16> to vector<256x3xbf16>
    %c0_2 = arith.constant 0 : index
    %c0_3 = arith.constant 0 : index
    %c0_4 = arith.constant 0 : index
    %7 = vector.load %arg3[%c0_2, %c0_3, %c0_4] : memref<9x3x16xbf16, #tpu.memory_space<vmem>>, vector<1x3x16xbf16>
    %8 = vector.shape_cast %7 : vector<1x3x16xbf16> to vector<3x16xbf16>
    %cst_5 = arith.constant dense<0.000000e+00> : vector<256x16xf32>
    %9 = tpu.matmul %6, %8, %cst_5 {dimension_numbers = #tpu.dot_dimension_numbers<[1], [0], [0], [1], [0, 0, 1, 1], [], []>} : vector<256x3xbf16>, vector<3x16xbf16>, vector<256x16xf32> -> vector<256x16xf32>
    %10 = arith.addf %1, %9 : vector<256x16xf32>
    %c0_i32_6 = arith.constant 0 : i32
    %11 = arith.addi %0, %c0_i32_6 : i32
    %c0_7 = arith.constant 0 : index
    %12 = arith.index_cast %11 : i32 to index
    %c1 = arith.constant 1 : index
    %c0_8 = arith.constant 0 : index
    %13 = vector.load %arg2[%c0_7, %12, %c1, %c0_8] : memref<1x34x34x3xbf16, #tpu.memory_space<vmem>>, vector<1x8x32x3xbf16>
    %14 = vector.shape_cast %13 : vector<1x8x32x3xbf16> to vector<8x32x3xbf16>
    %15 = vector.shape_cast %14 : vector<8x32x3xbf16> to vector<256x3xbf16>
    %c1_9 = arith.constant 1 : index
    %c0_10 = arith.constant 0 : index
    %c0_11 = arith.constant 0 : index
    %16 = vector.load %arg3[%c1_9, %c0_10, %c0_11] : memref<9x3x16xbf16, #tpu.memory_space<vmem>>, vector<1x3x16xbf16>
    %17 = vector.shape_cast %16 : vector<1x3x16xbf16> to vector<3x16xbf16>
    %cst_12 = arith.constant dense<0.000000e+00> : vector<256x16xf32>
    %18 = tpu.matmul %15, %17, %cst_12 {dimension_numbers = #tpu.dot_dimension_numbers<[1], [0], [0], [1], [0, 0, 1, 1], [], []>} : vector<256x3xbf16>, vector<3x16xbf16>, vector<256x16xf32> -> vector<256x16xf32>
    %19 = arith.addf %10, %18 : vector<256x16xf32>
    %c0_i32_13 = arith.constant 0 : i32
    %20 = arith.addi %0, %c0_i32_13 : i32
    %c0_14 = arith.constant 0 : index
    %21 = arith.index_cast %20 : i32 to index
    %c2 = arith.constant 2 : index
    %c0_15 = arith.constant 0 : index
    %22 = vector.load %arg2[%c0_14, %21, %c2, %c0_15] : memref<1x34x34x3xbf16, #tpu.memory_space<vmem>>, vector<1x8x32x3xbf16>
    %23 = vector.shape_cast %22 : vector<1x8x32x3xbf16> to vector<8x32x3xbf16>
    %24 = vector.shape_cast %23 : vector<8x32x3xbf16> to vector<256x3xbf16>
    %c2_16 = arith.constant 2 : index
    %c0_17 = arith.constant 0 : index
    %c0_18 = arith.constant 0 : index
    %25 = vector.load %arg3[%c2_16, %c0_17, %c0_18] : memref<9x3x16xbf16, #tpu.memory_space<vmem>>, vector<1x3x16xbf16>
    %26 = vector.shape_cast %25 : vector<1x3x16xbf16> to vector<3x16xbf16>
    %cst_19 = arith.constant dense<0.000000e+00> : vector<256x16xf32>
    %27 = tpu.matmul %24, %26, %cst_19 {dimension_numbers = #tpu.dot_dimension_numbers<[1], [0], [0], [1], [0, 0, 1, 1], [], []>} : vector<256x3xbf16>, vector<3x16xbf16>, vector<256x16xf32> -> vector<256x16xf32>
    %28 = arith.addf %19, %27 : vector<256x16xf32>
    %c1_i32 = arith.constant 1 : i32
    %29 = arith.addi %0, %c1_i32 : i32
    %c0_20 = arith.constant 0 : index
    %30 = arith.index_cast %29 : i32 to index
    %c0_21 = arith.constant 0 : index
    %c0_22 = arith.constant 0 : index
    %31 = vector.load %arg2[%c0_20, %30, %c0_21, %c0_22] : memref<1x34x34x3xbf16, #tpu.memory_space<vmem>>, vector<1x8x32x3xbf16>
    %32 = vector.shape_cast %31 : vector<1x8x32x3xbf16> to vector<8x32x3xbf16>
    %33 = vector.shape_cast %32 : vector<8x32x3xbf16> to vector<256x3xbf16>
    %c3 = arith.constant 3 : index
    %c0_23 = arith.constant 0 : index
    %c0_24 = arith.constant 0 : index
    %34 = vector.load %arg3[%c3, %c0_23, %c0_24] : memref<9x3x16xbf16, #tpu.memory_space<vmem>>, vector<1x3x16xbf16>
    %35 = vector.shape_cast %34 : vector<1x3x16xbf16> to vector<3x16xbf16>
    %cst_25 = arith.constant dense<0.000000e+00> : vector<256x16xf32>
    %36 = tpu.matmul %33, %35, %cst_25 {dimension_numbers = #tpu.dot_dimension_numbers<[1], [0], [0], [1], [0, 0, 1, 1], [], []>} : vector<256x3xbf16>, vector<3x16xbf16>, vector<256x16xf32> -> vector<256x16xf32>
    %37 = arith.addf %28, %36 : vector<256x16xf32>
    %c1_i32_26 = arith.constant 1 : i32
    %38 = arith.addi %0, %c1_i32_26 : i32
    %c0_27 = arith.constant 0 : index
    %39 = arith.index_cast %38 : i32 to index
    %c1_28 = arith.constant 1 : index
    %c0_29 = arith.constant 0 : index
    %40 = vector.load %arg2[%c0_27, %39, %c1_28, %c0_29] : memref<1x34x34x3xbf16, #tpu.memory_space<vmem>>, vector<1x8x32x3xbf16>
    %41 = vector.shape_cast %40 : vector<1x8x32x3xbf16> to vector<8x32x3xbf16>
    %42 = vector.shape_cast %41 : vector<8x32x3xbf16> to vector<256x3xbf16>
    %c4 = arith.constant 4 : index
    %c0_30 = arith.constant 0 : index
    %c0_31 = arith.constant 0 : index
    %43 = vector.load %arg3[%c4, %c0_30, %c0_31] : memref<9x3x16xbf16, #tpu.memory_space<vmem>>, vector<1x3x16xbf16>
    %44 = vector.shape_cast %43 : vector<1x3x16xbf16> to vector<3x16xbf16>
    %cst_32 = arith.constant dense<0.000000e+00> : vector<256x16xf32>
    %45 = tpu.matmul %42, %44, %cst_32 {dimension_numbers = #tpu.dot_dimension_numbers<[1], [0], [0], [1], [0, 0, 1, 1], [], []>} : vector<256x3xbf16>, vector<3x16xbf16>, vector<256x16xf32> -> vector<256x16xf32>
    %46 = arith.addf %37, %45 : vector<256x16xf32>
    %c1_i32_33 = arith.constant 1 : i32
    %47 = arith.addi %0, %c1_i32_33 : i32
    %c0_34 = arith.constant 0 : index
    %48 = arith.index_cast %47 : i32 to index
    %c2_35 = arith.constant 2 : index
    %c0_36 = arith.constant 0 : index
    %49 = vector.load %arg2[%c0_34, %48, %c2_35, %c0_36] : memref<1x34x34x3xbf16, #tpu.memory_space<vmem>>, vector<1x8x32x3xbf16>
    %50 = vector.shape_cast %49 : vector<1x8x32x3xbf16> to vector<8x32x3xbf16>
    %51 = vector.shape_cast %50 : vector<8x32x3xbf16> to vector<256x3xbf16>
    %c5 = arith.constant 5 : index
    %c0_37 = arith.constant 0 : index
    %c0_38 = arith.constant 0 : index
    %52 = vector.load %arg3[%c5, %c0_37, %c0_38] : memref<9x3x16xbf16, #tpu.memory_space<vmem>>, vector<1x3x16xbf16>
    %53 = vector.shape_cast %52 : vector<1x3x16xbf16> to vector<3x16xbf16>
    %cst_39 = arith.constant dense<0.000000e+00> : vector<256x16xf32>
    %54 = tpu.matmul %51, %53, %cst_39 {dimension_numbers = #tpu.dot_dimension_numbers<[1], [0], [0], [1], [0, 0, 1, 1], [], []>} : vector<256x3xbf16>, vector<3x16xbf16>, vector<256x16xf32> -> vector<256x16xf32>
    %55 = arith.addf %46, %54 : vector<256x16xf32>
    %c2_i32 = arith.constant 2 : i32
    %56 = arith.addi %0, %c2_i32 : i32
    %c0_40 = arith.constant 0 : index
    %57 = arith.index_cast %56 : i32 to index
    %c0_41 = arith.constant 0 : index
    %c0_42 = arith.constant 0 : index
    %58 = vector.load %arg2[%c0_40, %57, %c0_41, %c0_42] : memref<1x34x34x3xbf16, #tpu.memory_space<vmem>>, vector<1x8x32x3xbf16>
    %59 = vector.shape_cast %58 : vector<1x8x32x3xbf16> to vector<8x32x3xbf16>
    %60 = vector.shape_cast %59 : vector<8x32x3xbf16> to vector<256x3xbf16>
    %c6 = arith.constant 6 : index
    %c0_43 = arith.constant 0 : index
    %c0_44 = arith.constant 0 : index
    %61 = vector.load %arg3[%c6, %c0_43, %c0_44] : memref<9x3x16xbf16, #tpu.memory_space<vmem>>, vector<1x3x16xbf16>
    %62 = vector.shape_cast %61 : vector<1x3x16xbf16> to vector<3x16xbf16>
    %cst_45 = arith.constant dense<0.000000e+00> : vector<256x16xf32>
    %63 = tpu.matmul %60, %62, %cst_45 {dimension_numbers = #tpu.dot_dimension_numbers<[1], [0], [0], [1], [0, 0, 1, 1], [], []>} : vector<256x3xbf16>, vector<3x16xbf16>, vector<256x16xf32> -> vector<256x16xf32>
    %64 = arith.addf %55, %63 : vector<256x16xf32>
    %c2_i32_46 = arith.constant 2 : i32
    %65 = arith.addi %0, %c2_i32_46 : i32
    %c0_47 = arith.constant 0 : index
    %66 = arith.index_cast %65 : i32 to index
    %c1_48 = arith.constant 1 : index
    %c0_49 = arith.constant 0 : index
    %67 = vector.load %arg2[%c0_47, %66, %c1_48, %c0_49] : memref<1x34x34x3xbf16, #tpu.memory_space<vmem>>, vector<1x8x32x3xbf16>
    %68 = vector.shape_cast %67 : vector<1x8x32x3xbf16> to vector<8x32x3xbf16>
    %69 = vector.shape_cast %68 : vector<8x32x3xbf16> to vector<256x3xbf16>
    %c7 = arith.constant 7 : index
    %c0_50 = arith.constant 0 : index
    %c0_51 = arith.constant 0 : index
    %70 = vector.load %arg3[%c7, %c0_50, %c0_51] : memref<9x3x16xbf16, #tpu.memory_space<vmem>>, vector<1x3x16xbf16>
    %71 = vector.shape_cast %70 : vector<1x3x16xbf16> to vector<3x16xbf16>
    %cst_52 = arith.constant dense<0.000000e+00> : vector<256x16xf32>
    %72 = tpu.matmul %69, %71, %cst_52 {dimension_numbers = #tpu.dot_dimension_numbers<[1], [0], [0], [1], [0, 0, 1, 1], [], []>} : vector<256x3xbf16>, vector<3x16xbf16>, vector<256x16xf32> -> vector<256x16xf32>
    %73 = arith.addf %64, %72 : vector<256x16xf32>
    %c2_i32_53 = arith.constant 2 : i32
    %74 = arith.addi %0, %c2_i32_53 : i32
    %c0_54 = arith.constant 0 : index
    %75 = arith.index_cast %74 : i32 to index
    %c2_55 = arith.constant 2 : index
    %c0_56 = arith.constant 0 : index
    %76 = vector.load %arg2[%c0_54, %75, %c2_55, %c0_56] : memref<1x34x34x3xbf16, #tpu.memory_space<vmem>>, vector<1x8x32x3xbf16>
    %77 = vector.shape_cast %76 : vector<1x8x32x3xbf16> to vector<8x32x3xbf16>
    %78 = vector.shape_cast %77 : vector<8x32x3xbf16> to vector<256x3xbf16>
    %c8 = arith.constant 8 : index
    %c0_57 = arith.constant 0 : index
    %c0_58 = arith.constant 0 : index
    %79 = vector.load %arg3[%c8, %c0_57, %c0_58] : memref<9x3x16xbf16, #tpu.memory_space<vmem>>, vector<1x3x16xbf16>
    %80 = vector.shape_cast %79 : vector<1x3x16xbf16> to vector<3x16xbf16>
    %cst_59 = arith.constant dense<0.000000e+00> : vector<256x16xf32>
    %81 = tpu.matmul %78, %80, %cst_59 {dimension_numbers = #tpu.dot_dimension_numbers<[1], [0], [0], [1], [0, 0, 1, 1], [], []>} : vector<256x3xbf16>, vector<3x16xbf16>, vector<256x16xf32> -> vector<256x16xf32>
    %82 = arith.addf %73, %81 : vector<256x16xf32>
    %c0_60 = arith.constant 0 : index
    %c0_61 = arith.constant 0 : index
    %83 = vector.load %arg4[%c0_60, %c0_61] : memref<1x16xf32, #tpu.memory_space<vmem>>, vector<1x16xf32>
    %84 = vector.broadcast %83 : vector<1x16xf32> to vector<256x16xf32>
    %85 = arith.addf %82, %84 : vector<256x16xf32>
    %cst_62 = arith.constant 0.000000e+00 : f32
    %86 = vector.broadcast %cst_62 : f32 to vector<256x16xf32>
    %87 = arith.maximumf %85, %86 : vector<256x16xf32>
    %88 = vector.shape_cast %87 : vector<256x16xf32> to vector<4x2x32x16xf32>
    %89 = vector.extract_strided_slice %88 {offsets = [0, 0, 0, 0], sizes = [4, 1, 32, 16], strides = [1, 1, 1, 1]} : vector<4x2x32x16xf32> to vector<4x1x32x16xf32>
    %90 = vector.shape_cast %89 : vector<4x1x32x16xf32> to vector<4x32x16xf32>
    %91 = vector.extract_strided_slice %88 {offsets = [0, 1, 0, 0], sizes = [4, 1, 32, 16], strides = [1, 1, 1, 1]} : vector<4x2x32x16xf32> to vector<4x1x32x16xf32>
    %92 = vector.shape_cast %91 : vector<4x1x32x16xf32> to vector<4x32x16xf32>
    %93 = arith.maximumf %90, %92 : vector<4x32x16xf32>
    %c0_63 = arith.constant 0 : index
    %c0_64 = arith.constant 0 : index
    %c0_65 = arith.constant 0 : index
    %94 = vector.load %arg6[%c0_63, %c0_64, %c0_65] : memref<4x32x16xf32, #tpu.memory_space<vmem>>, vector<4x32x16xf32>
    tpu.vector_store %arg6[%c0_63, %c0_64, %c0_65], %93 {strides = array<i32>} : memref<4x32x16xf32, #tpu.memory_space<vmem>>, vector<4x32x16xf32>,
    %c0_66 = arith.constant 0 : index
    %c0_67 = arith.constant 0 : index
    %c0_68 = arith.constant 0 : index
    %95 = tpu.strided_load %arg6[%c0_66, %c0_67, %c0_68] {strides = array<i32: 1, 2, 1>} : memref<4x32x16xf32, #tpu.memory_space<vmem>>, vector<4x16x16xf32>
    %c0_69 = arith.constant 0 : index
    %c1_70 = arith.constant 1 : index
    %c0_71 = arith.constant 0 : index
    %96 = tpu.strided_load %arg6[%c0_69, %c1_70, %c0_71] {strides = array<i32: 1, 2, 1>} : memref<4x32x16xf32, #tpu.memory_space<vmem>>, vector<4x16x16xf32>
    %97 = arith.maximumf %95, %96 : vector<4x16x16xf32>
    %98 = arith.truncf %97 : vector<4x16x16xf32> to vector<4x16x16xbf16>
    %c0_72 = arith.constant 0 : index
    %c0_73 = arith.constant 0 : index
    %c0_74 = arith.constant 0 : index
    %c0_75 = arith.constant 0 : index
    %99 = vector.load %arg5[%c0_72, %c0_73, %c0_74, %c0_75] : memref<1x4x16x16xbf16, #tpu.memory_space<vmem>>, vector<1x4x16x16xbf16>
    %100 = vector.shape_cast %99 : vector<1x4x16x16xbf16> to vector<4x16x16xbf16>
    %101 = vector.shape_cast %98 : vector<4x16x16xbf16> to vector<1x4x16x16xbf16>
    tpu.vector_store %arg5[%c0_72, %c0_73, %c0_74, %c0_75], %101 {strides = array<i32>} : memref<1x4x16x16xbf16, #tpu.memory_space<vmem>>, vector<1x4x16x16xbf16>,
    return
  }
  func.func @transform_0(%arg0: i32, %arg1: i32) -> (i32, i32, i32, i32) {
    %c0_i32 = arith.constant 0 : i32
    %c0_i32_0 = arith.constant 0 : i32
    %c0_i32_1 = arith.constant 0 : i32
    %c0_i32_2 = arith.constant 0 : i32
    return %arg0, %c0_i32, %c0_i32_0, %c0_i32_1 : i32, i32, i32, i32
  }
  func.func @transform_1(%arg0: i32, %arg1: i32) -> (i32, i32, i32) {
    %c0_i32 = arith.constant 0 : i32
    %c0_i32_0 = arith.constant 0 : i32
    %c0_i32_1 = arith.constant 0 : i32
    %c0_i32_2 = arith.constant 0 : i32
    return %c0_i32, %c0_i32_0, %c0_i32_1 : i32, i32, i32
  }
  func.func @transform_2(%arg0: i32, %arg1: i32) -> (i32, i32) {
    %c0_i32 = arith.constant 0 : i32
    %c0_i32_0 = arith.constant 0 : i32
    %c0_i32_1 = arith.constant 0 : i32
    return %c0_i32, %c0_i32_0 : i32, i32
  }
  func.func @transform_3(%arg0: i32, %arg1: i32) -> (i32, i32, i32, i32) {
    %c0_i32 = arith.constant 0 : i32
    %c0_i32_0 = arith.constant 0 : i32
    %c0_i32_1 = arith.constant 0 : i32
    return %arg0, %arg1, %c0_i32, %c0_i32_0 : i32, i32, i32, i32
  }
}

module attributes {stable_mosaic.version = 11 : i64} {
  func.func @kernel(%arg0: i32, %arg1: i32, %arg2: memref<1x18x18x16xbf16, #tpu.memory_space<vmem>>, %arg3: memref<9x16x32xbf16, #tpu.memory_space<vmem>>, %arg4: memref<1x32xf32, #tpu.memory_space<vmem>>, %arg5: memref<1x4x8x32xbf16, #tpu.memory_space<vmem>>, %arg6: memref<4x16x32xf32, #tpu.memory_space<vmem>>) attributes {dimension_semantics = [#tpu.dimension_semantics<parallel>, #tpu.dimension_semantics<parallel>], iteration_bounds = array<i64: 2, 2>, scalar_prefetch = 0 : i64, scratch_operands = 1 : i64, tpu.core_type = #tpu.core_type<tc>, window_params = [{transform_indices = @transform_0, window_bounds = array<i64: 1, 18, 18, 16>}, {pipeline_mode = #tpu.pipeline_mode<synchronous>, transform_indices = @transform_1, window_bounds = array<i64: 9, 16, 32>}, {pipeline_mode = #tpu.pipeline_mode<synchronous>, transform_indices = @transform_2, window_bounds = array<i64: 1, 32>}, {transform_indices = @transform_3, window_bounds = array<i64: 1, 4, 8, 32>}]} {
    %c8_i32 = arith.constant 8 : i32
    %0 = arith.muli %arg1, %c8_i32 : i32
    %cst = arith.constant 0.000000e+00 : f32
    %1 = vector.broadcast %cst : f32 to vector<128x32xf32>
    %c0_i32 = arith.constant 0 : i32
    %2 = arith.addi %0, %c0_i32 : i32
    %c0 = arith.constant 0 : index
    %3 = arith.index_cast %2 : i32 to index
    %c0_0 = arith.constant 0 : index
    %c0_1 = arith.constant 0 : index
    %4 = vector.load %arg2[%c0, %3, %c0_0, %c0_1] : memref<1x18x18x16xbf16, #tpu.memory_space<vmem>>, vector<1x8x16x16xbf16>
    %5 = vector.shape_cast %4 : vector<1x8x16x16xbf16> to vector<8x16x16xbf16>
    %6 = vector.shape_cast %5 : vector<8x16x16xbf16> to vector<128x16xbf16>
    %c0_2 = arith.constant 0 : index
    %c0_3 = arith.constant 0 : index
    %c0_4 = arith.constant 0 : index
    %7 = vector.load %arg3[%c0_2, %c0_3, %c0_4] : memref<9x16x32xbf16, #tpu.memory_space<vmem>>, vector<1x16x32xbf16>
    %8 = vector.shape_cast %7 : vector<1x16x32xbf16> to vector<16x32xbf16>
    %cst_5 = arith.constant dense<0.000000e+00> : vector<128x32xf32>
    %9 = tpu.matmul %6, %8, %cst_5 {dimension_numbers = #tpu.dot_dimension_numbers<[1], [0], [0], [1], [0, 0, 1, 1], [], []>} : vector<128x16xbf16>, vector<16x32xbf16>, vector<128x32xf32> -> vector<128x32xf32>
    %10 = arith.addf %1, %9 : vector<128x32xf32>
    %c0_i32_6 = arith.constant 0 : i32
    %11 = arith.addi %0, %c0_i32_6 : i32
    %c0_7 = arith.constant 0 : index
    %12 = arith.index_cast %11 : i32 to index
    %c1 = arith.constant 1 : index
    %c0_8 = arith.constant 0 : index
    %13 = vector.load %arg2[%c0_7, %12, %c1, %c0_8] : memref<1x18x18x16xbf16, #tpu.memory_space<vmem>>, vector<1x8x16x16xbf16>
    %14 = vector.shape_cast %13 : vector<1x8x16x16xbf16> to vector<8x16x16xbf16>
    %15 = vector.shape_cast %14 : vector<8x16x16xbf16> to vector<128x16xbf16>
    %c1_9 = arith.constant 1 : index
    %c0_10 = arith.constant 0 : index
    %c0_11 = arith.constant 0 : index
    %16 = vector.load %arg3[%c1_9, %c0_10, %c0_11] : memref<9x16x32xbf16, #tpu.memory_space<vmem>>, vector<1x16x32xbf16>
    %17 = vector.shape_cast %16 : vector<1x16x32xbf16> to vector<16x32xbf16>
    %cst_12 = arith.constant dense<0.000000e+00> : vector<128x32xf32>
    %18 = tpu.matmul %15, %17, %cst_12 {dimension_numbers = #tpu.dot_dimension_numbers<[1], [0], [0], [1], [0, 0, 1, 1], [], []>} : vector<128x16xbf16>, vector<16x32xbf16>, vector<128x32xf32> -> vector<128x32xf32>
    %19 = arith.addf %10, %18 : vector<128x32xf32>
    %c0_i32_13 = arith.constant 0 : i32
    %20 = arith.addi %0, %c0_i32_13 : i32
    %c0_14 = arith.constant 0 : index
    %21 = arith.index_cast %20 : i32 to index
    %c2 = arith.constant 2 : index
    %c0_15 = arith.constant 0 : index
    %22 = vector.load %arg2[%c0_14, %21, %c2, %c0_15] : memref<1x18x18x16xbf16, #tpu.memory_space<vmem>>, vector<1x8x16x16xbf16>
    %23 = vector.shape_cast %22 : vector<1x8x16x16xbf16> to vector<8x16x16xbf16>
    %24 = vector.shape_cast %23 : vector<8x16x16xbf16> to vector<128x16xbf16>
    %c2_16 = arith.constant 2 : index
    %c0_17 = arith.constant 0 : index
    %c0_18 = arith.constant 0 : index
    %25 = vector.load %arg3[%c2_16, %c0_17, %c0_18] : memref<9x16x32xbf16, #tpu.memory_space<vmem>>, vector<1x16x32xbf16>
    %26 = vector.shape_cast %25 : vector<1x16x32xbf16> to vector<16x32xbf16>
    %cst_19 = arith.constant dense<0.000000e+00> : vector<128x32xf32>
    %27 = tpu.matmul %24, %26, %cst_19 {dimension_numbers = #tpu.dot_dimension_numbers<[1], [0], [0], [1], [0, 0, 1, 1], [], []>} : vector<128x16xbf16>, vector<16x32xbf16>, vector<128x32xf32> -> vector<128x32xf32>
    %28 = arith.addf %19, %27 : vector<128x32xf32>
    %c1_i32 = arith.constant 1 : i32
    %29 = arith.addi %0, %c1_i32 : i32
    %c0_20 = arith.constant 0 : index
    %30 = arith.index_cast %29 : i32 to index
    %c0_21 = arith.constant 0 : index
    %c0_22 = arith.constant 0 : index
    %31 = vector.load %arg2[%c0_20, %30, %c0_21, %c0_22] : memref<1x18x18x16xbf16, #tpu.memory_space<vmem>>, vector<1x8x16x16xbf16>
    %32 = vector.shape_cast %31 : vector<1x8x16x16xbf16> to vector<8x16x16xbf16>
    %33 = vector.shape_cast %32 : vector<8x16x16xbf16> to vector<128x16xbf16>
    %c3 = arith.constant 3 : index
    %c0_23 = arith.constant 0 : index
    %c0_24 = arith.constant 0 : index
    %34 = vector.load %arg3[%c3, %c0_23, %c0_24] : memref<9x16x32xbf16, #tpu.memory_space<vmem>>, vector<1x16x32xbf16>
    %35 = vector.shape_cast %34 : vector<1x16x32xbf16> to vector<16x32xbf16>
    %cst_25 = arith.constant dense<0.000000e+00> : vector<128x32xf32>
    %36 = tpu.matmul %33, %35, %cst_25 {dimension_numbers = #tpu.dot_dimension_numbers<[1], [0], [0], [1], [0, 0, 1, 1], [], []>} : vector<128x16xbf16>, vector<16x32xbf16>, vector<128x32xf32> -> vector<128x32xf32>
    %37 = arith.addf %28, %36 : vector<128x32xf32>
    %c1_i32_26 = arith.constant 1 : i32
    %38 = arith.addi %0, %c1_i32_26 : i32
    %c0_27 = arith.constant 0 : index
    %39 = arith.index_cast %38 : i32 to index
    %c1_28 = arith.constant 1 : index
    %c0_29 = arith.constant 0 : index
    %40 = vector.load %arg2[%c0_27, %39, %c1_28, %c0_29] : memref<1x18x18x16xbf16, #tpu.memory_space<vmem>>, vector<1x8x16x16xbf16>
    %41 = vector.shape_cast %40 : vector<1x8x16x16xbf16> to vector<8x16x16xbf16>
    %42 = vector.shape_cast %41 : vector<8x16x16xbf16> to vector<128x16xbf16>
    %c4 = arith.constant 4 : index
    %c0_30 = arith.constant 0 : index
    %c0_31 = arith.constant 0 : index
    %43 = vector.load %arg3[%c4, %c0_30, %c0_31] : memref<9x16x32xbf16, #tpu.memory_space<vmem>>, vector<1x16x32xbf16>
    %44 = vector.shape_cast %43 : vector<1x16x32xbf16> to vector<16x32xbf16>
    %cst_32 = arith.constant dense<0.000000e+00> : vector<128x32xf32>
    %45 = tpu.matmul %42, %44, %cst_32 {dimension_numbers = #tpu.dot_dimension_numbers<[1], [0], [0], [1], [0, 0, 1, 1], [], []>} : vector<128x16xbf16>, vector<16x32xbf16>, vector<128x32xf32> -> vector<128x32xf32>
    %46 = arith.addf %37, %45 : vector<128x32xf32>
    %c1_i32_33 = arith.constant 1 : i32
    %47 = arith.addi %0, %c1_i32_33 : i32
    %c0_34 = arith.constant 0 : index
    %48 = arith.index_cast %47 : i32 to index
    %c2_35 = arith.constant 2 : index
    %c0_36 = arith.constant 0 : index
    %49 = vector.load %arg2[%c0_34, %48, %c2_35, %c0_36] : memref<1x18x18x16xbf16, #tpu.memory_space<vmem>>, vector<1x8x16x16xbf16>
    %50 = vector.shape_cast %49 : vector<1x8x16x16xbf16> to vector<8x16x16xbf16>
    %51 = vector.shape_cast %50 : vector<8x16x16xbf16> to vector<128x16xbf16>
    %c5 = arith.constant 5 : index
    %c0_37 = arith.constant 0 : index
    %c0_38 = arith.constant 0 : index
    %52 = vector.load %arg3[%c5, %c0_37, %c0_38] : memref<9x16x32xbf16, #tpu.memory_space<vmem>>, vector<1x16x32xbf16>
    %53 = vector.shape_cast %52 : vector<1x16x32xbf16> to vector<16x32xbf16>
    %cst_39 = arith.constant dense<0.000000e+00> : vector<128x32xf32>
    %54 = tpu.matmul %51, %53, %cst_39 {dimension_numbers = #tpu.dot_dimension_numbers<[1], [0], [0], [1], [0, 0, 1, 1], [], []>} : vector<128x16xbf16>, vector<16x32xbf16>, vector<128x32xf32> -> vector<128x32xf32>
    %55 = arith.addf %46, %54 : vector<128x32xf32>
    %c2_i32 = arith.constant 2 : i32
    %56 = arith.addi %0, %c2_i32 : i32
    %c0_40 = arith.constant 0 : index
    %57 = arith.index_cast %56 : i32 to index
    %c0_41 = arith.constant 0 : index
    %c0_42 = arith.constant 0 : index
    %58 = vector.load %arg2[%c0_40, %57, %c0_41, %c0_42] : memref<1x18x18x16xbf16, #tpu.memory_space<vmem>>, vector<1x8x16x16xbf16>
    %59 = vector.shape_cast %58 : vector<1x8x16x16xbf16> to vector<8x16x16xbf16>
    %60 = vector.shape_cast %59 : vector<8x16x16xbf16> to vector<128x16xbf16>
    %c6 = arith.constant 6 : index
    %c0_43 = arith.constant 0 : index
    %c0_44 = arith.constant 0 : index
    %61 = vector.load %arg3[%c6, %c0_43, %c0_44] : memref<9x16x32xbf16, #tpu.memory_space<vmem>>, vector<1x16x32xbf16>
    %62 = vector.shape_cast %61 : vector<1x16x32xbf16> to vector<16x32xbf16>
    %cst_45 = arith.constant dense<0.000000e+00> : vector<128x32xf32>
    %63 = tpu.matmul %60, %62, %cst_45 {dimension_numbers = #tpu.dot_dimension_numbers<[1], [0], [0], [1], [0, 0, 1, 1], [], []>} : vector<128x16xbf16>, vector<16x32xbf16>, vector<128x32xf32> -> vector<128x32xf32>
    %64 = arith.addf %55, %63 : vector<128x32xf32>
    %c2_i32_46 = arith.constant 2 : i32
    %65 = arith.addi %0, %c2_i32_46 : i32
    %c0_47 = arith.constant 0 : index
    %66 = arith.index_cast %65 : i32 to index
    %c1_48 = arith.constant 1 : index
    %c0_49 = arith.constant 0 : index
    %67 = vector.load %arg2[%c0_47, %66, %c1_48, %c0_49] : memref<1x18x18x16xbf16, #tpu.memory_space<vmem>>, vector<1x8x16x16xbf16>
    %68 = vector.shape_cast %67 : vector<1x8x16x16xbf16> to vector<8x16x16xbf16>
    %69 = vector.shape_cast %68 : vector<8x16x16xbf16> to vector<128x16xbf16>
    %c7 = arith.constant 7 : index
    %c0_50 = arith.constant 0 : index
    %c0_51 = arith.constant 0 : index
    %70 = vector.load %arg3[%c7, %c0_50, %c0_51] : memref<9x16x32xbf16, #tpu.memory_space<vmem>>, vector<1x16x32xbf16>
    %71 = vector.shape_cast %70 : vector<1x16x32xbf16> to vector<16x32xbf16>
    %cst_52 = arith.constant dense<0.000000e+00> : vector<128x32xf32>
    %72 = tpu.matmul %69, %71, %cst_52 {dimension_numbers = #tpu.dot_dimension_numbers<[1], [0], [0], [1], [0, 0, 1, 1], [], []>} : vector<128x16xbf16>, vector<16x32xbf16>, vector<128x32xf32> -> vector<128x32xf32>
    %73 = arith.addf %64, %72 : vector<128x32xf32>
    %c2_i32_53 = arith.constant 2 : i32
    %74 = arith.addi %0, %c2_i32_53 : i32
    %c0_54 = arith.constant 0 : index
    %75 = arith.index_cast %74 : i32 to index
    %c2_55 = arith.constant 2 : index
    %c0_56 = arith.constant 0 : index
    %76 = vector.load %arg2[%c0_54, %75, %c2_55, %c0_56] : memref<1x18x18x16xbf16, #tpu.memory_space<vmem>>, vector<1x8x16x16xbf16>
    %77 = vector.shape_cast %76 : vector<1x8x16x16xbf16> to vector<8x16x16xbf16>
    %78 = vector.shape_cast %77 : vector<8x16x16xbf16> to vector<128x16xbf16>
    %c8 = arith.constant 8 : index
    %c0_57 = arith.constant 0 : index
    %c0_58 = arith.constant 0 : index
    %79 = vector.load %arg3[%c8, %c0_57, %c0_58] : memref<9x16x32xbf16, #tpu.memory_space<vmem>>, vector<1x16x32xbf16>
    %80 = vector.shape_cast %79 : vector<1x16x32xbf16> to vector<16x32xbf16>
    %cst_59 = arith.constant dense<0.000000e+00> : vector<128x32xf32>
    %81 = tpu.matmul %78, %80, %cst_59 {dimension_numbers = #tpu.dot_dimension_numbers<[1], [0], [0], [1], [0, 0, 1, 1], [], []>} : vector<128x16xbf16>, vector<16x32xbf16>, vector<128x32xf32> -> vector<128x32xf32>
    %82 = arith.addf %73, %81 : vector<128x32xf32>
    %c0_60 = arith.constant 0 : index
    %c0_61 = arith.constant 0 : index
    %83 = vector.load %arg4[%c0_60, %c0_61] : memref<1x32xf32, #tpu.memory_space<vmem>>, vector<1x32xf32>
    %84 = vector.broadcast %83 : vector<1x32xf32> to vector<128x32xf32>
    %85 = arith.addf %82, %84 : vector<128x32xf32>
    %cst_62 = arith.constant 0.000000e+00 : f32
    %86 = vector.broadcast %cst_62 : f32 to vector<128x32xf32>
    %87 = arith.maximumf %85, %86 : vector<128x32xf32>
    %88 = vector.shape_cast %87 : vector<128x32xf32> to vector<4x2x16x32xf32>
    %89 = vector.extract_strided_slice %88 {offsets = [0, 0, 0, 0], sizes = [4, 1, 16, 32], strides = [1, 1, 1, 1]} : vector<4x2x16x32xf32> to vector<4x1x16x32xf32>
    %90 = vector.shape_cast %89 : vector<4x1x16x32xf32> to vector<4x16x32xf32>
    %91 = vector.extract_strided_slice %88 {offsets = [0, 1, 0, 0], sizes = [4, 1, 16, 32], strides = [1, 1, 1, 1]} : vector<4x2x16x32xf32> to vector<4x1x16x32xf32>
    %92 = vector.shape_cast %91 : vector<4x1x16x32xf32> to vector<4x16x32xf32>
    %93 = arith.maximumf %90, %92 : vector<4x16x32xf32>
    %c0_63 = arith.constant 0 : index
    %c0_64 = arith.constant 0 : index
    %c0_65 = arith.constant 0 : index
    %94 = vector.load %arg6[%c0_63, %c0_64, %c0_65] : memref<4x16x32xf32, #tpu.memory_space<vmem>>, vector<4x16x32xf32>
    tpu.vector_store %arg6[%c0_63, %c0_64, %c0_65], %93 {strides = array<i32>} : memref<4x16x32xf32, #tpu.memory_space<vmem>>, vector<4x16x32xf32>,
    %c0_66 = arith.constant 0 : index
    %c0_67 = arith.constant 0 : index
    %c0_68 = arith.constant 0 : index
    %95 = tpu.strided_load %arg6[%c0_66, %c0_67, %c0_68] {strides = array<i32: 1, 2, 1>} : memref<4x16x32xf32, #tpu.memory_space<vmem>>, vector<4x8x32xf32>
    %c0_69 = arith.constant 0 : index
    %c1_70 = arith.constant 1 : index
    %c0_71 = arith.constant 0 : index
    %96 = tpu.strided_load %arg6[%c0_69, %c1_70, %c0_71] {strides = array<i32: 1, 2, 1>} : memref<4x16x32xf32, #tpu.memory_space<vmem>>, vector<4x8x32xf32>
    %97 = arith.maximumf %95, %96 : vector<4x8x32xf32>
    %98 = arith.truncf %97 : vector<4x8x32xf32> to vector<4x8x32xbf16>
    %c0_72 = arith.constant 0 : index
    %c0_73 = arith.constant 0 : index
    %c0_74 = arith.constant 0 : index
    %c0_75 = arith.constant 0 : index
    %99 = vector.load %arg5[%c0_72, %c0_73, %c0_74, %c0_75] : memref<1x4x8x32xbf16, #tpu.memory_space<vmem>>, vector<1x4x8x32xbf16>
    %100 = vector.shape_cast %99 : vector<1x4x8x32xbf16> to vector<4x8x32xbf16>
    %101 = vector.shape_cast %98 : vector<4x8x32xbf16> to vector<1x4x8x32xbf16>
    tpu.vector_store %arg5[%c0_72, %c0_73, %c0_74, %c0_75], %101 {strides = array<i32>} : memref<1x4x8x32xbf16, #tpu.memory_space<vmem>>, vector<1x4x8x32xbf16>,
    return
  }
  func.func @transform_0(%arg0: i32, %arg1: i32) -> (i32, i32, i32, i32) {
    %c0_i32 = arith.constant 0 : i32
    %c0_i32_0 = arith.constant 0 : i32
    %c0_i32_1 = arith.constant 0 : i32
    %c0_i32_2 = arith.constant 0 : i32
    return %arg0, %c0_i32, %c0_i32_0, %c0_i32_1 : i32, i32, i32, i32
  }
  func.func @transform_1(%arg0: i32, %arg1: i32) -> (i32, i32, i32) {
    %c0_i32 = arith.constant 0 : i32
    %c0_i32_0 = arith.constant 0 : i32
    %c0_i32_1 = arith.constant 0 : i32
    %c0_i32_2 = arith.constant 0 : i32
    return %c0_i32, %c0_i32_0, %c0_i32_1 : i32, i32, i32
  }
  func.func @transform_2(%arg0: i32, %arg1: i32) -> (i32, i32) {
    %c0_i32 = arith.constant 0 : i32
    %c0_i32_0 = arith.constant 0 : i32
    %c0_i32_1 = arith.constant 0 : i32
    return %c0_i32, %c0_i32_0 : i32, i32
  }
  func.func @transform_3(%arg0: i32, %arg1: i32) -> (i32, i32, i32, i32) {
    %c0_i32 = arith.constant 0 : i32
    %c0_i32_0 = arith.constant 0 : i32
    %c0_i32_1 = arith.constant 0 : i32
    return %arg0, %arg1, %c0_i32, %c0_i32_0 : i32, i32, i32, i32
  }
}

module attributes {stable_mosaic.version = 11 : i64} {
  func.func @kernel(%arg0: i32, %arg1: memref<2x512xbf16, #tpu.memory_space<vmem>>, %arg2: memref<512x64xbf16, #tpu.memory_space<vmem>>, %arg3: memref<1x64xf32, #tpu.memory_space<vmem>>, %arg4: memref<64x2xbf16, #tpu.memory_space<vmem>>, %arg5: memref<1x2xf32, #tpu.memory_space<vmem>>, %arg6: memref<2x2xf32, #tpu.memory_space<vmem>>, %arg7: memref<2x64xf32, #tpu.memory_space<vmem>>) attributes {dimension_semantics = [#tpu.dimension_semantics<arbitrary>], iteration_bounds = array<i64: 4>, scalar_prefetch = 0 : i64, scratch_operands = 1 : i64, tpu.core_type = #tpu.core_type<tc>, window_params = [{transform_indices = @transform_0, window_bounds = array<i64: 2, 512>}, {transform_indices = @transform_1, window_bounds = array<i64: 512, 64>}, {pipeline_mode = #tpu.pipeline_mode<synchronous>, transform_indices = @transform_2, window_bounds = array<i64: 1, 64>}, {pipeline_mode = #tpu.pipeline_mode<synchronous>, transform_indices = @transform_3, window_bounds = array<i64: 64, 2>}, {pipeline_mode = #tpu.pipeline_mode<synchronous>, transform_indices = @transform_4, window_bounds = array<i64: 1, 2>}, {pipeline_mode = #tpu.pipeline_mode<synchronous>, transform_indices = @transform_5, window_bounds = array<i64: 2, 2>}]} {
    %c0_i32 = arith.constant 0 : i32
    %0 = arith.cmpi eq, %arg0, %c0_i32 : i32
    %1 = arith.extui %0 : i1 to i32
    %c0_i32_0 = arith.constant 0 : i32
    %2 = arith.cmpi ne, %1, %c0_i32_0 : i32
    scf.if %2 {
      %cst_9 = arith.constant 0.000000e+00 : f32
      %12 = vector.broadcast %cst_9 : f32 to vector<2x64xf32>
      %c0_10 = arith.constant 0 : index
      %c0_11 = arith.constant 0 : index
      %13 = vector.load %arg7[%c0_10, %c0_11] : memref<2x64xf32, #tpu.memory_space<vmem>>, vector<2x64xf32>
      tpu.vector_store %arg7[%c0_10, %c0_11], %12 {strides = array<i32>} : memref<2x64xf32, #tpu.memory_space<vmem>>, vector<2x64xf32>,
    } else {
    }
    %c0 = arith.constant 0 : index
    %c0_1 = arith.constant 0 : index
    %3 = vector.load %arg7[%c0, %c0_1] : memref<2x64xf32, #tpu.memory_space<vmem>>, vector<2x64xf32>
    %c0_2 = arith.constant 0 : index
    %c0_3 = arith.constant 0 : index
    %4 = vector.load %arg1[%c0_2, %c0_3] : memref<2x512xbf16, #tpu.memory_space<vmem>>, vector<2x512xbf16>
    %c0_4 = arith.constant 0 : index
    %c0_5 = arith.constant 0 : index
    %5 = vector.load %arg2[%c0_4, %c0_5] : memref<512x64xbf16, #tpu.memory_space<vmem>>, vector<512x64xbf16>
    %cst = arith.constant dense<0.000000e+00> : vector<2x64xf32>
    %6 = tpu.matmul %4, %5, %cst {dimension_numbers = #tpu.dot_dimension_numbers<[1], [0], [0], [1], [0, 0, 1, 1], [], []>} : vector<2x512xbf16>, vector<512x64xbf16>, vector<2x64xf32> -> vector<2x64xf32>
    %7 = arith.addf %3, %6 : vector<2x64xf32>
    %c0_6 = arith.constant 0 : index
    %c0_7 = arith.constant 0 : index
    %8 = vector.load %arg7[%c0_6, %c0_7] : memref<2x64xf32, #tpu.memory_space<vmem>>, vector<2x64xf32>
    tpu.vector_store %arg7[%c0_6, %c0_7], %7 {strides = array<i32>} : memref<2x64xf32, #tpu.memory_space<vmem>>, vector<2x64xf32>,
    %c3_i32 = arith.constant 3 : i32
    %9 = arith.cmpi eq, %arg0, %c3_i32 : i32
    %10 = arith.extui %9 : i1 to i32
    %c0_i32_8 = arith.constant 0 : i32
    %11 = arith.cmpi ne, %10, %c0_i32_8 : i32
    scf.if %11 {
      %c0_9 = arith.constant 0 : index
      %c0_10 = arith.constant 0 : index
      %12 = vector.load %arg7[%c0_9, %c0_10] : memref<2x64xf32, #tpu.memory_space<vmem>>, vector<2x64xf32>
      %c0_11 = arith.constant 0 : index
      %c0_12 = arith.constant 0 : index
      %13 = vector.load %arg3[%c0_11, %c0_12] : memref<1x64xf32, #tpu.memory_space<vmem>>, vector<1x64xf32>
      %14 = vector.broadcast %13 : vector<1x64xf32> to vector<2x64xf32>
      %15 = arith.addf %12, %14 : vector<2x64xf32>
      %cst_13 = arith.constant 0.000000e+00 : f32
      %16 = vector.broadcast %cst_13 : f32 to vector<2x64xf32>
      %17 = arith.maximumf %15, %16 : vector<2x64xf32>
      %18 = arith.truncf %17 : vector<2x64xf32> to vector<2x64xbf16>
      %c0_14 = arith.constant 0 : index
      %c0_15 = arith.constant 0 : index
      %19 = vector.load %arg4[%c0_14, %c0_15] : memref<64x2xbf16, #tpu.memory_space<vmem>>, vector<64x2xbf16>
      %cst_16 = arith.constant dense<0.000000e+00> : vector<2x2xf32>
      %20 = tpu.matmul %18, %19, %cst_16 {dimension_numbers = #tpu.dot_dimension_numbers<[1], [0], [0], [1], [0, 0, 1, 1], [], []>} : vector<2x64xbf16>, vector<64x2xbf16>, vector<2x2xf32> -> vector<2x2xf32>
      %c0_17 = arith.constant 0 : index
      %c0_18 = arith.constant 0 : index
      %21 = vector.load %arg5[%c0_17, %c0_18] : memref<1x2xf32, #tpu.memory_space<vmem>>, vector<1x2xf32>
      %22 = vector.broadcast %21 : vector<1x2xf32> to vector<2x2xf32>
      %23 = arith.addf %20, %22 : vector<2x2xf32>
      %c0_19 = arith.constant 0 : index
      %c0_20 = arith.constant 0 : index
      %24 = vector.load %arg6[%c0_19, %c0_20] : memref<2x2xf32, #tpu.memory_space<vmem>>, vector<2x2xf32>
      tpu.vector_store %arg6[%c0_19, %c0_20], %23 {strides = array<i32>} : memref<2x2xf32, #tpu.memory_space<vmem>>, vector<2x2xf32>,
    } else {
    }
    return
  }
  func.func @transform_0(%arg0: i32) -> (i32, i32) {
    %c0_i32 = arith.constant 0 : i32
    %c0_i32_0 = arith.constant 0 : i32
    return %c0_i32, %arg0 : i32, i32
  }
  func.func @transform_1(%arg0: i32) -> (i32, i32) {
    %c0_i32 = arith.constant 0 : i32
    %c0_i32_0 = arith.constant 0 : i32
    return %arg0, %c0_i32 : i32, i32
  }
  func.func @transform_2(%arg0: i32) -> (i32, i32) {
    %c0_i32 = arith.constant 0 : i32
    %c0_i32_0 = arith.constant 0 : i32
    %c0_i32_1 = arith.constant 0 : i32
    return %c0_i32, %c0_i32_0 : i32, i32
  }
  func.func @transform_3(%arg0: i32) -> (i32, i32) {
    %c0_i32 = arith.constant 0 : i32
    %c0_i32_0 = arith.constant 0 : i32
    %c0_i32_1 = arith.constant 0 : i32
    return %c0_i32, %c0_i32_0 : i32, i32
  }
  func.func @transform_4(%arg0: i32) -> (i32, i32) {
    %c0_i32 = arith.constant 0 : i32
    %c0_i32_0 = arith.constant 0 : i32
    %c0_i32_1 = arith.constant 0 : i32
    return %c0_i32, %c0_i32_0 : i32, i32
  }
  func.func @transform_5(%arg0: i32) -> (i32, i32) {
    %c0_i32 = arith.constant 0 : i32
    %c0_i32_0 = arith.constant 0 : i32
    %c0_i32_1 = arith.constant 0 : i32
    return %c0_i32, %c0_i32_0 : i32, i32
  }
}

</mosaic_0001>

<bundles_post_ra>
// kernel: location_cnn_forward.5
= control target key start
LH: loop header
LB: loop body
LE: loop exit
PB: predicated region body
PF: predicated region fallthrough
CT: control target
= control target key end

     0   :  { %10 = vsyncpa [#allocation4], 0  ;;  %s1006_s18 = smov 0   ;;  %s1112_s0 = inlined_call_operand.vmem [shape: bf16[2,2048], index: 0, kind: input, shape index: {}]   ;;  %s1113_s1 = inlined_call_operand.vmem [shape: bf16[2048,64], index: 1, kind: input, shape index: {}]   ;;  %s1114_s2 = inlined_call_operand.vmem [shape: f32[1,64], index: 2, kind: input, shape index: {}]   ;;  %s1115_s3 = inlined_call_operand.vmem [shape: bf16[64,2], index: 3, kind: input, shape index: {}]   ;;  %s1116_s4 = inlined_call_operand.vmem [shape: f32[1,2], index: 4, kind: input, shape index: {}]   ;;  %s1117_s5 = inlined_call_operand.hbm [shape: f32[2,2], index: 5, kind: output, shape index: {}]  }
   0x1 LB: > { %s1012_s19 = sadd.s32 4294967295, %s969_s18   ;;  %p767_p0 = scmp.ge.s32.totalorder %s969_s18, 1  ;;  %s969_s18 = sphi %s1006_s18, %s16_s18  }
   0x2   : > { %p194_p1 = scmp.lt.s32.totalorder %s969_s18, 5 }
   0x4   : > { %p195_p2 = pnand %p767_p0, %p194_p1 }
   0x5   : > { %s768_s20 = sshll.u32 (!%p195_p2), %s1012_s19, 2  ;;  %s769_s21 = sshll.u32 (!%p195_p2), %s1012_s19, 6 }
   0x6   : > { %198 = sbr.rel (%p195_p2) target bundleno = 530 (0x212), region = 40  ;;  %p222_p3 = scmp.lt.s32.totalorder (!%p195_p2), %s768_s20, 15 }
   0x7   : > { %p227_p4 = scmp.lt.s32.totalorder (!%p195_p2), %s769_s21, 255  ;;  %p771_p5 = scmp.ne.s32.totalorder (!%p195_p2), %s1012_s19, 0 }
   0xd   : > { %s1119_s20 = smov (!%p222_p3, %s768_s20), 15  ;;  %s1121_s21 = smov (!%p227_p4, %s769_s21), 255 }
   0xe   : > { %s224_s24 = scalar_lea.vmem %s1112_s0, %s1119_s20  ;;  %s770_s25 = sshll.u32 %s1121_s21, 2  ;;  %vm237_vm0 = vcmask (!%p771_p5), 517120   ;;  %v971_v0 = vmov (!%p771_p5), 0.0  }
   0xf   : > { %s1027_s28 = scalar_lea.vmem %s1113_s1, %s770_s25  ;;  %236 = sbr.rel (%p771_p5) target bundleno = 22 (0x16), region = 44  ;;  %238 = vst.msk [vmem:[#allocation2] sm:$0x3] (!%p771_p5), %vm237_vm0, %v971_v0 }
  0x16 PF: > { %v897_v1 = vld [vmem:[%s1027_s28 + $0x40] sm:$0xff]   ;;  %v901_v5 = vld [vmem:[%s1027_s28 + $0x48] sm:$0xff]   ;;  %v905_v9 = vld [vmem:[%s1027_s28 + $0x50] sm:$0xff]   ;;  %v317_v31 = vlaneseq  ;;  %v972_v35 = vmov 1966171168   ;;  %vm607_vm1 = vcmask 517120  }
  0x17   : > { %v898_v2 = vld [vmem:[%s1027_s28 + $0xc0] sm:$0xff]   ;;  %817 = vmatprep.subr.bf16.mxu0 %v897_v1  ;;  %v902_v6 = vld [vmem:[%s1027_s28 + $0xc8] sm:$0xff]   ;;  %v906_v10 = vld [vmem:[%s1027_s28 + $0xd0] sm:$0xff]   ;;  %v315_v36 = vunpack.c.l.s4 %v972_v35  ;;  %p805_p6 = scmp.ne.s32.totalorder %s1012_s19, 3 }
  0x18   : > { %v899_v3 = vld [vmem:[%s1027_s28] sm:$0xff]   ;;  %839 = vmatprep.subr.bf16.mxu1 %v898_v2  ;;  %v903_v7 = vld [vmem:[%s1027_s28 + $0x8] sm:$0xff]   ;;  %v907_v11 = vld [vmem:[%s1027_s28 + $0x10] sm:$0xff]   ;;  %v318_v37 = vshrl.u32 %v317_v31, 7  ;;  %v973_v59 = vmov (!%p805_p6), 0.0   ;;  %vm974_vm2 = vmmov (!%p805_p6), 0  }
  0x19   : > { %v900_v4 = vld [vmem:[%s1027_s28 + $0x80] sm:$0xff]   ;;  %818 = vmatpush3.bf16.msra.mxu0 %v899_v3  ;;  %v904_v8 = vld [vmem:[%s1027_s28 + $0x88] sm:$0xff]   ;;  %v908_v12 = vld [vmem:[%s1027_s28 + $0x90] sm:$0xff]   ;;  %v316_v39 = vunpack.c.0.s8 %v315_v36  ;;  %vm663_vm3 = vcmask (!%p805_p6), 523264   ;;  %vm707_vm4 = vcmask (!%p805_p6), 9216  }
  0x1a   : > { %840 = vmatpush3.bf16.msra.mxu1 %v900_v4  ;;  %819 = vmatprep.subr.bf16.mxu0 %v901_v5  ;;  %v909_v13 = vld [vmem:[%s1027_s28 + $0x58] sm:$0xff]   ;;  %v913_v17 = vld [vmem:[%s1027_s28 + $0x60] sm:$0xff]   ;;  %v917_v21 = vld [vmem:[%s1027_s28 + $0x68] sm:$0xff]  }
  0x1b   : > { %841 = vmatprep.subr.bf16.mxu1 %v902_v6  ;;  %v910_v14 = vld [vmem:[%s1027_s28 + $0xd8] sm:$0xff]   ;;  %v914_v18 = vld [vmem:[%s1027_s28 + $0xe0] sm:$0xff]   ;;  %v918_v22 = vld [vmem:[%s1027_s28 + $0xe8] sm:$0xff]   ;;  %v319_v40 = vsub.s32 %v316_v39, %v318_v37 }
  0x1c   : > { %v911_v15 = vld [vmem:[%s1027_s28 + $0x18] sm:$0xff]   ;;  %v915_v19 = vld [vmem:[%s1027_s28 + $0x20] sm:$0xff]   ;;  %v919_v23 = vld [vmem:[%s1027_s28 + $0x28] sm:$0xff]  }
  0x1d   : > { %820 = vmatpush3.bf16.msra.mxu0 %v903_v7  ;;  %v912_v16 = vld [vmem:[%s1027_s28 + $0x98] sm:$0xff]   ;;  %v916_v20 = vld [vmem:[%s1027_s28 + $0xa0] sm:$0xff]   ;;  %v920_v24 = vld [vmem:[%s1027_s28 + $0xa8] sm:$0xff]  }
  0x1e   : > { %842 = vmatpush3.bf16.msra.mxu1 %v904_v8  ;;  %821 = vmatprep.subr.bf16.mxu0 %v905_v9  ;;  %v921_v25 = vld [vmem:[%s1027_s28 + $0x70] sm:$0xff]   ;;  %v925_v29 = vld [vmem:[%s1027_s28 + $0x78] sm:$0xff]   ;;  %v772_v34 = vld.sshfl [vmem:[%s224_s24] sm:$0x33 pattern:$0x75316420] }
  0x1f   : > { %843 = vmatprep.subr.bf16.mxu1 %v906_v10  ;;  %v922_v26 = vld [vmem:[%s1027_s28 + $0xf0] sm:$0xff]   ;;  %v926_v30 = vld [vmem:[%s1027_s28 + $0xf8] sm:$0xff]   ;;  %v313_v38 = vcombine.high %v772_v34, %v772_v34  ;;  %v320_v42 = vrot.slane %v772_v34, %v319_v40  ;;  %v239_v54 = vld [vmem:[#allocation2] sm:$0x3] }
  0x20   : > { %v923_v27 = vld [vmem:[%s1027_s28 + $0x30] sm:$0xff]   ;;  %v927_v32 = vld [vmem:[%s1027_s28 + $0x38] sm:$0xff]   ;;  %v929_v58 = vld [vmem:[%s1115_s3] sm:$0xff] (!%p805_p6)  }
  0x21   : > { %822 = vmatpush3.bf16.msra.mxu0 %v907_v11  ;;  %v924_v28 = vld [vmem:[%s1027_s28 + $0xb0] sm:$0xff]   ;;  %v928_v33 = vld [vmem:[%s1027_s28 + $0xb8] sm:$0xff]   ;;  %v327_v41 = vrot.slane %v313_v38, %v319_v40  ;;  %v328_v44 = vcombine.high %v320_v42, %v320_v42  ;;  %v930_v60 = vld [vmem:[%s1115_s3 + $0x8] sm:$0xff] (!%p805_p6)  }
  0x22   : > { %844 = vmatpush3.bf16.msra.mxu1 %v908_v12  ;;  %823 = vmatprep.subr.bf16.mxu0 %v909_v13  ;;  %v806_v62 = vld [vmem:[%s1114_s2] ss:$0 sm:$0xff] (!%p805_p6)  ;;  %v931_v0 = vld [vmem:[%s1115_s3 + $0x10] sm:$0xff] (!%p805_p6)   ;;  %v932_v2 = vld [vmem:[%s1115_s3 + $0x18] sm:$0xff] (!%p805_p6)  }
  0x23   : > { %845 = vmatprep.subr.bf16.mxu1 %v910_v14  ;;  %558 = vmatprep.mubr.bf16.mxu0 %v327_v41  ;;  %v329_v43 = vcombine.high %v327_v41, %v327_v41  ;;  %v807_v4 = vld [vmem:[%s1116_s4] ss:$0 sm:$0xff] (!%p805_p6) }
  0x25   : > { %824 = vmatpush3.bf16.msra.mxu0 %v911_v15  ;;  %598 = vmatprep.mubr.bf16.mxu1 %v329_v43 }
  0x26   : > { %846 = vmatpush3.bf16.msra.mxu1 %v912_v16  ;;  %825 = vmatprep.subr.bf16.mxu0 %v913_v17 }
  0x27   : > { %847 = vmatprep.subr.bf16.mxu1 %v914_v18 }
  0x29   : > { %826 = vmatpush3.bf16.msra.mxu0 %v915_v19 }
  0x2a   : > { %848 = vmatpush3.bf16.msra.mxu1 %v916_v20  ;;  %827 = vmatprep.subr.bf16.mxu0 %v917_v21 }
  0x2b   : > { %849 = vmatprep.subr.bf16.mxu1 %v918_v22 }
  0x2d   : > { %828 = vmatpush3.bf16.msra.mxu0 %v919_v23 }
  0x2e   : > { %850 = vmatpush3.bf16.msra.mxu1 %v920_v24  ;;  %829 = vmatprep.subr.bf16.mxu0 %v921_v25 }
  0x2f   : > { %851 = vmatprep.subr.bf16.mxu1 %v922_v26 }
  0x31   : > { %830 = vmatpush3.bf16.msra.mxu0 %v923_v27 }
  0x32   : > { %852 = vmatpush3.bf16.msra.mxu1 %v924_v28  ;;  %831 = vmatprep.subr.bf16.mxu0 %v925_v29 }
  0x33   : > { %853 = vmatprep.subr.bf16.mxu1 %v926_v30 }
  0x35   : > { %832 = vmatpush3.bf16.msra.mxu0 %v927_v32 }
  0x36   : > { %854 = vmatpush3.bf16.msra.mxu1 %v928_v33  ;;  %866 = vmatprep.subr.bf16.mxu0 (!%p805_p6), %v973_v59 }
  0x38   : > { %559 = vmatmul.mubr.bf16.vlgmr.msra.gmra.mrb[0].mxu0 %v320_v42 }
  0x39   : > { %599 = vmatmul.mubr.bf16.vlgmr.msra.gmra.mrb[0].mxu1 %v328_v44  ;;  %867 = vmatpush3.bf16.msra.mxu0 (!%p805_p6), %v929_v58 }
  0x3a   : > { %874 = vmatprep.mubr.msk.bf16.mxu0 (!%p805_p6), %vm974_vm2, %v973_v59  ;;  %868 = vmatprep.subr.bf16.mxu0 (!%p805_p6), %v973_v59 }
  0x3d   : > { %869 = vmatpush3.bf16.msra.mxu0 (!%p805_p6), %v930_v60 }
  0x3e   : > { %870 = vmatprep.subr.bf16.mxu0 (!%p805_p6), %v973_v59 }
  0x41   : > { %871 = vmatpush3.bf16.msra.mxu0 (!%p805_p6), %v931_v0 }
  0x42   : > { %872 = vmatprep.subr.bf16.mxu0 (!%p805_p6), %v973_v59 }
  0x45   : > { %873 = vmatpush3.bf16.msra.mxu0 (!%p805_p6), %v932_v2 }
 0x10b   : > { %v833_v45 = vpop.f32.mrb[0].mxu0 }
 0x10c   : > { %v834_v46 = vpop.f32.mrb[1].mxu0  ;;  %v855_v47 = vpop.f32.mrb[0].mxu1 }
 0x10d   : > { %v835_v48 = vadd.f32 %v834_v46, %v833_v45  ;;  %v836_v49 = vpop.f32.mrb[2].mxu0  ;;  %v856_v50 = vpop.f32.mrb[1].mxu1 }
 0x10e   : > { %v837_v51 = vpop.f32.mrb[3].mxu0  ;;  %v857_v52 = vadd.f32 %v856_v50, %v855_v47  ;;  %v858_v53 = vpop.f32.mrb[2].mxu1  ;;  %612 = sbr.rel (%p805_p6) target bundleno = 505 (0x1f9), region = 48 }
 0x10f   : > { %v859_v55 = vpop.f32.mrb[3].mxu1 }
 0x110   : > { %v601_v56 = vadd.f32 %v857_v52, %v835_v48 }
 0x112   : > { %v606_v57 = vadd.f32 %v601_v56, %v239_v54 }
 0x114   : > { %608 = vst.msk [vmem:[#allocation2] sm:$0x3] %vm607_vm1, %v606_v57 }
 0x11b   : > { %v613_v61 = vld [vmem:[#allocation2] sm:$0x3] }
 0x11c   : > { %v621_v63 = vadd.f32 %v806_v62, %v613_v61 }
 0x11e   : > { %v622_v1 = vmax.f32 %v621_v63, 0.0 }
 0x120   : > { %v623_v3 = vpack.c.bf16 %v622_v1, %v622_v1 }
 0x122   : > { %875 = vmatmul.mubr.msk.bf16.vlgmr.msra.gmra.mrb[0].mxu0 %vm663_vm3, %v623_v3 }
 0x1f5   : > { %v701_v5 = vpop.f32.mrb[0].mxu0 }
 0x1f6   : > { %v702_v6 = vadd.f32 %v807_v4, %v701_v5  ;;  %v876_v7 = vpop.f32.mrb[1].mxu0 }
 0x1f7   : > { %v704_v8 = vpop.f32.mrb[2].mxu0 }
 0x1f8   : > { %708 = vst.msk [vmem:[#allocation3] sm:$0x3] %vm707_vm4, %v702_v6  ;;  %v877_v9 = vpop.f32.mrb[3].mxu0 }
 0x1f9 PF: > { %p882_p7 = scmp.eq.s32.totalorder %s1012_s19, 3  ;;  %s975_s20 = smov [#allocation3]  }
 0x1fa   : > { %s716_s21 = sshll.u32 %s975_s20, 4  ;;  %s717_s21 = int_to_ptr.vmem [resolvable:$true] %s716_s21 }
 0x1fb   : > { %s933_s22 = scalar_lea.vmem %s717_s21, 32  ;;  %p940_p11 = scmp.lt.s32.totalorder %s717_s21, %s717_s21 }
 0x1fc   : > { %p934_p8 = scmp.ne.s32.totalorder %s717_s21, %s933_s22  ;;  %p941_p12 = scmp.lt.s32.totalorder %s933_s22, %s933_s22 }
 0x1fe   : > { %p935_p9 = pnand %p934_p8, %p882_p7  ;;  %p942_p13 = por %p941_p12, %p940_p11 }
 0x200   : > { %p936_p10 = pneg %p935_p9 }
 0x202   : > { %p943_p0 = pnand %p942_p13, %p936_p10 }
 0x204   : > { %946 = shalt.err (!%p943_p0)
}
 0x205   : > { %s947_s25 = scalar_lea.hbm %s1117_s5, 32 }
 0x206   : > { %p948_p1 = scmp.ne.s32.totalorder %s1117_s5, %s947_s25  ;;  %p953_p4 = scmp.lt.u32.totalorder %s947_s25, %s1117_s5 }
 0x208   : > { %p949_p2 = pnand %p948_p1, %p882_p7 }
 0x20a   : > { %p950_p3 = pneg %p949_p2 }
 0x20c   : > { %p955_p5 = pnand %p953_p4, %p950_p3 }
 0x20e   : > { %958 = shalt.err (!%p955_p5)
}
 0x20f   : > { %879 = dma.vmem_to_hbm [thread:$0]  (%p882_p7), %s717_s21, 32, %s1117_s5, [#allocation4]  }
 0x210   : > { %964 = dma.done.wait (%p882_p7), [#allocation4], 32  }
 0x211   : > { %966 = vsyncadd (%p882_p7), [#allocation4], 4294967264 }
 0x212 PF: > { %s16_s18 = sadd.s32 1, %s969_s18  }
 0x213   : > { %p13_p6 = scmp.ge.s32.totalorder %s16_s18, 6  }
 0x215   :  { %15 = sbr.rel (!%p13_p6) target bundleno = 1 (0x1), region = 78 }
 0x21c   :  { %729 = vsyncpa [#allocation4], 1 }
 0x21d   :  { %731 = vsyncpa [#allocation4 + $0x1], 1 }

// kernel: location_cnn_forward.4
= control target key start
LH: loop header
LB: loop body
LE: loop exit
PB: predicated region body
PF: predicated region fallthrough
CT: control target
= control target key end

     0   :  { %s3690_s12 = smov 0   ;;  %s3692_s13 = smov 0   ;;  %s4625_s0 = inlined_call_operand.vmem [shape: bf16[2,18,18,16], index: 0, kind: input, shape index: {}]   ;;  %s4626_s1 = inlined_call_operand.vmem [shape: bf16[9,16,32], index: 1, kind: input, shape index: {}]   ;;  %s4627_s2 = inlined_call_operand.vmem [shape: f32[1,32], index: 2, kind: input, shape index: {}]   ;;  %s4628_s3 = inlined_call_operand.vmem [shape: bf16[2,8,8,32], index: 3, kind: output, shape index: {}]  }
   0x1   :  { %s3694_s14 = smov 0   ;;  %s3696_s15 = smov 0  }
   0x2   :  { %s3698_s16 = smov 0  }
   0x3 LB: > { %s22_s17 = sadd.s32 1, %s3660_s14  ;;  %s25_s18 = sadd.s32 1, %s3664_s15  ;;  %s3668_s16 = sphi %s3698_s16, %s13_s16   ;;  %s3664_s15 = sphi %s3696_s15, %s4654_s15   ;;  %s3660_s14 = sphi %s3694_s14, %s4653_s14   ;;  %s3656_s13 = sphi %s3692_s13, %s4652_s13   ;;  %s3652_s12 = sphi %s3690_s12, %s4651_s12  }
   0x4   : > { %p23_p0 = scmp.ge.s32.totalorder %s22_s17, 2  ;;  %p2877_p1 = scmp.ge.s32.totalorder %s3668_s16, 1 }
   0x5   : > { %p151_p2 = scmp.lt.s32.totalorder %s3668_s16, 5 }
   0x6   : > { %s4656_s17 = smov (%p23_p0, %s22_s17), 0  ;;  %s4658_s18 = smov (!%p23_p0, %s25_s18), %s3664_s15 }
   0x7   : > { %p152_p3 = pnand %p2877_p1, %p151_p2  ;;  %p27_p4 = scmp.ge.s32.totalorder %s4658_s18, 2 }
   0x9   : > { %s4660_s18 = smov (%p27_p4, %s4658_s18), 0  ;;  %155 = sbr.rel (%p152_p3) target bundleno = 435 (0x1b3), region = 32 }
  0x10   : > { %v3596_v0 = vld [vmem:[%s4626_s1 + $0x8] sm:$0xff]   ;;  %p179_p5 = scmp.lt.s32.totalorder %s3656_s13, 1  ;;  %v3597_v1 = vld [vmem:[%s4626_s1 + $0x20] sm:$0xff]   ;;  %s3181_s23 = smul.u32 96, %s3652_s12  ;;  %vm225_vm0 = vsmask.f32 3328 }
  0x11   : > { %3263 = vmatprep.subr.bf16.mxu1 %v3596_v0  ;;  %3335 = vmatprep.subr.bf16.mxu0 %v3597_v1  ;;  %v3735_v2 = vld [vmem:[%s4626_s1] sm:$0xff]   ;;  %v3740_v3 = vld [vmem:[%s4626_s1 + $0x28] sm:$0xff]   ;;  %vm226_vm1 = vsmask.f32 7440  ;;  %vm453_vm3 = vcmask 130048   ;;  %vm766_vm4 = vcmask 1042432  }
  0x12   : > { %s4662_s13 = smov (!%p179_p5, %s3656_s13), 1  ;;  %3264 = vmatpush3.bf16.msra.mxu1 %v3596_v0  ;;  %3336 = vmatpush3.bf16.msra.mxu0 %v3597_v1  ;;  %vm3778_vm2 = vmor %vm225_vm0, %vm226_vm1  ;;  %vm767_vm5 = vcmask 1046532   ;;  %v4569_v28 = vld [vmem:[%s4627_s2] ss:$0 sm:$0xff]  ;;  %s2879_s27 = sshll.u32 %s3652_s12, 2  ;;  %vm2742_vm7 = vcmask 261120  }
  0x13   : > { %s3555_s24 = smul.u32 216, %s4662_s13  ;;  %3281 = vmatprep.subr.bf16.mxu1 %v3735_v2  ;;  %3353 = vmatprep.subr.bf16.mxu0 %v3740_v3  ;;  %vm3929_vm6 = vmor %vm766_vm4, %vm767_vm5  ;;  %p187_p6 = scmp.lt.s32.totalorder %s2879_s27, 7  ;;  %vm2774_vm8 = vcmask 257024  }
  0x14   : > { %s2880_s12 = sshll.u32 %s4662_s13, 3 }
  0x15   : > { %s183_s4 = scalar_lea.vmem %s4625_s0, %s3555_s24  ;;  %s4664_s27 = smov (!%p187_p6, %s2879_s27), 7 }
  0x16   : > { %s3746_s5 = scalar_lea.vmem %s183_s4, %s3181_s23  ;;  %s190_s28 = sadd.s32 %s2880_s12, %s4664_s27 }
  0x17   : > { %v3750_v4 = vld [vmem:[%s3746_s5] sm:$0xf]  ;;  %v3753_v5 = vld [vmem:[%s3746_s5 + $0x4] sm:$0xf]  ;;  %v3756_v6 = vld [vmem:[%s3746_s5 + $0x8] sm:$0x1] }
  0x18   : > { %v229_v7 = vshrl.u32 %v3750_v4, 16  ;;  %v232_v8 = vshll.u32 %v3750_v4, 16  ;;  %v238_v9 = vshll.u32 %v3753_v5, 16  ;;  %v242_v10 = vshrl.u32 %v3753_v5, 16  ;;  %v2985_v11 = vld [vmem:[%s3746_s5 + $0xc] sm:$0xf] }
  0x19   : > { %v248_v12 = vshll.u32 %v3756_v6, 16  ;;  %v3765_v13 = vld [vmem:[%s3746_s5 + $0x10] sm:$0xf]  ;;  %v3768_v14 = vld [vmem:[%s3746_s5 + $0x14] sm:$0x1]  ;;  %v1226_v20 = vshrl.u32 %v2985_v11, 16 }
  0x1a   : > { %v231_v15 = vrot.slane %v229_v7, 4  ;;  %v234_v16 = vrot.slane %v232_v8, 5  ;;  %v240_v17 = vrot.slane %v238_v9, 5  ;;  %v244_v18 = vrot.slane %v242_v10, 4  ;;  %v3774_v27 = vld [vmem:[%s3746_s5 + $0xc] sm:$0xf] }
  0x1b   : > { %v250_v19 = vrot.slane %v248_v12, 5  ;;  %v1229_v21 = vshll.u32 %v2985_v11, 16  ;;  %v1235_v22 = vshll.u32 %v3765_v13, 16  ;;  %v1239_v25 = vshrl.u32 %v3765_v13, 16  ;;  %v3783_v32 = vld [vmem:[%s3746_s5 + $0x10] sm:$0xf] }
  0x1c   : > { %v235_v23 = vor.u32 %v234_v16, %v231_v15  ;;  %v245_v24 = vor.u32 %v244_v18, %v240_v17  ;;  %v1245_v26 = vshll.u32 %v3768_v14, 16  ;;  %v1228_v29 = vrot.slane %v1226_v20, 4  ;;  %v3786_v38 = vld [vmem:[%s3746_s5 + $0x14] sm:$0x1]  ;;  %v2988_v49 = vld [vmem:[%s3746_s5 + $0x18] sm:$0xf] }
  0x1d   : > { %v1231_v30 = vrot.slane %v1229_v21, 5  ;;  %v1237_v31 = vrot.slane %v1235_v22, 5  ;;  %v1241_v35 = vrot.slane %v1239_v25, 4  ;;  %v253_v39 = vshrl.u32 %v3774_v27, 16  ;;  %v3799_v54 = vld [vmem:[%s3746_s5 + $0x1c] sm:$0xf] }
  0x1e   : > { %v236_v33 = vrot.slane %v235_v23, 4  ;;  %v246_v34 = vrot.slane %v245_v24, 4  ;;  %v1247_v37 = vrot.slane %v1245_v26, 5  ;;  %v256_v40 = vshll.u32 %v3774_v27, 16  ;;  %v3807_v59 = vld [vmem:[%s3746_s5 + $0x20] sm:$0x1] }
  0x1f   : > { %v1232_v36 = vor.u32 %v1231_v30, %v1228_v29  ;;  %v1242_v43 = vor.u32 %v1241_v35, %v1237_v31  ;;  %v262_v44 = vshll.u32 %v3783_v32, 16  ;;  %v255_v47 = vrot.slane %v253_v39, 4  ;;  %v3815_v15 = vld [vmem:[%s3746_s5 + $0x18] sm:$0xf]  ;;  %v3822_v20 = vld [vmem:[%s3746_s5 + $0x1c] sm:$0xf] }
  0x20   : > { %v241_v41 = vsel %vm3778_vm2, %v236_v33, %v240_v17  ;;  %v251_v42 = vsel %vm3778_vm2, %v246_v34, %v250_v19  ;;  %v258_v48 = vrot.slane %v256_v40, 5  ;;  %v266_v52 = vshrl.u32 %v3783_v32, 16  ;;  %v3830_v29 = vld [vmem:[%s3746_s5 + $0x20] sm:$0x1]  ;;  %s2881_s29 = sshll.u32 %s190_s28, 2 }
  0x21   : > { %v2887_v45 = vcombine.low %v241_v41, %v251_v42  ;;  %v1233_v46 = vrot.slane %v1232_v36, 4  ;;  %v1243_v50 = vrot.slane %v1242_v43, 4  ;;  %v264_v51 = vrot.slane %v262_v44, 5  ;;  %v3840_v43 = vld [vmem:[%s3746_s5 + $0x28] sm:$0xf]  ;;  %v3845_v44 = vld [vmem:[%s4626_s1 + $0x10] sm:$0xff]   ;;  %s4589_s4 = scalar_lea.vmem %s4628_s3, %s2881_s29 }
  0x22   : > { %v272_v53 = vshll.u32 %v3786_v38, 16  ;;  %v1621_v56 = vrot.slane %v3765_v13, 5  ;;  %v1624_v57 = vrot.slane %v3768_v14, 5  ;;  %v259_v58 = vor.u32 %v258_v48, %v255_v47  ;;  %v3967_v14 = vld [vmem:[%s3746_s5 + $0x50] sm:$0x1] }
  0x23   : > { %3265 = vmatprep.mubr.msk.bf16.mxu1 %vm453_vm3, %v2887_v45  ;;  %v1238_v55 = vsel %vm3778_vm2, %v1233_v46, %v1237_v31  ;;  %v1248_v60 = vsel %vm3778_vm2, %v1243_v50, %v1247_v37  ;;  %v268_v61 = vrot.slane %v266_v52, 4  ;;  %v1250_v63 = vshrl.u32 %v2988_v49, 16  ;;  %v2991_v37 = vld [vmem:[%s3746_s5 + $0x24] sm:$0xf] }
  0x24   : > { %v274_v62 = vrot.slane %v272_v53, 5  ;;  %v3011_v0 = vcombine.low %v1238_v55, %v1248_v60  ;;  %v260_v1 = vrot.slane %v259_v58, 4  ;;  %v1253_v7 = vshll.u32 %v2988_v49, 16 }
  0x25   : > { %v1259_v8 = vshll.u32 %v3799_v54, 16  ;;  %v269_v9 = vor.u32 %v268_v61, %v264_v51  ;;  %v1252_v10 = vrot.slane %v1250_v63, 4  ;;  %v1263_v11 = vshrl.u32 %v3799_v54, 16 }
  0x26   : > { %v1269_v12 = vshll.u32 %v3807_v59, 16  ;;  %3337 = vmatprep.mubr.msk.bf16.mxu0 %vm453_vm3, %v3011_v0  ;;  %v265_v16 = vsel %vm3778_vm2, %v260_v1, %v264_v51  ;;  %v1255_v17 = vrot.slane %v1253_v7, 5  ;;  %v1628_v19 = vrot.slane %v3799_v54, 5  ;;  %v3852_v51 = vld [vmem:[%s3746_s5 + $0x2c] sm:$0x1] }
  0x27   : > { %v1261_v18 = vrot.slane %v1259_v8, 5  ;;  %v270_v21 = vrot.slane %v269_v9, 4  ;;  %v1265_v22 = vrot.slane %v1263_v11, 4  ;;  %v1631_v24 = vrot.slane %v3807_v59, 5  ;;  %v3862_v8 = vld [vmem:[%s3746_s5 + $0x28] sm:$0xf] }
  0x28   : > { %v1271_v23 = vrot.slane %v1269_v12, 5  ;;  %v1256_v25 = vor.u32 %v1255_v17, %v1252_v10  ;;  %v3827_v26 = vrot.slane %v1628_v19, 4  ;;  %v277_v30 = vshrl.u32 %v3815_v15, 16 }
  0x29   : > { %v280_v31 = vshll.u32 %v3815_v15, 16  ;;  %v275_v33 = vsel %vm3778_vm2, %v270_v21, %v274_v62  ;;  %v1266_v34 = vor.u32 %v1265_v22, %v1261_v18  ;;  %v286_v35 = vshll.u32 %v3822_v20, 16  ;;  %v3859_v62 = vld [vmem:[%s3746_s5 + $0x24] sm:$0xf] }
  0x2a   : > { %v290_v36 = vshrl.u32 %v3822_v20, 16  ;;  %v2888_v39 = vcombine.low %v265_v16, %v275_v33  ;;  %v1257_v40 = vrot.slane %v1256_v25, 4  ;;  %v279_v41 = vrot.slane %v277_v30, 4  ;;  %v2994_v33 = vld [vmem:[%s3746_s5 + $0x30] sm:$0xf] }
  0x2b   : > { %v282_v42 = vrot.slane %v280_v31, 5  ;;  %v1267_v45 = vrot.slane %v1266_v34, 4  ;;  %v288_v46 = vrot.slane %v286_v35, 5  ;;  %v296_v48 = vshll.u32 %v3830_v29, 16 }
  0x2c   : > { %v292_v47 = vrot.slane %v290_v36, 4  ;;  %3266 = vmatmul.mubr.msk.bf16.vlgmr.msra.gmra.mrb[0].mxu1 %vm453_vm3, %v2888_v39  ;;  %v1262_v49 = vsel %vm3778_vm2, %v1257_v40, %v1261_v18  ;;  %v1274_v52 = vshrl.u32 %v2991_v37, 16  ;;  %v1277_v53 = vshll.u32 %v2991_v37, 16  ;;  %v3876_v18 = vld [vmem:[%s3746_s5 + $0x2c] sm:$0x1] }
  0x2d   : > { %v283_v50 = vor.u32 %v282_v42, %v279_v41  ;;  %3282 = vmatpush3.bf16.msra.mxu1 %v3735_v2  ;;  %v1272_v55 = vsel %vm3778_vm2, %v1267_v45, %v1271_v23  ;;  %v298_v60 = vrot.slane %v296_v48, 5  ;;  %v1283_v61 = vshll.u32 %v3840_v43, 16  ;;  %v3867_v2 = vld [vmem:[%s4626_s1 + $0x30] sm:$0xff]  }
  0x2e   : > { %v293_v58 = vor.u32 %v292_v47, %v288_v46  ;;  %v3012_v63 = vcombine.low %v1262_v49, %v1272_v55  ;;  %v1276_v1 = vrot.slane %v1274_v52, 4  ;;  %v1279_v7 = vrot.slane %v1277_v53, 5  ;;  %3299 = vmatprep.subr.bf16.mxu1 %v3845_v44  ;;  %v3886_v39 = vld [vmem:[%s3746_s5 + $0x34] sm:$0xf]  ;;  %v3895_v47 = vld [vmem:[%s3746_s5 + $0x38] sm:$0x1] }
  0x2f   : > { %v284_v0 = vrot.slane %v283_v50, 4  ;;  %v1285_v10 = vrot.slane %v1283_v61, 5  ;;  %v1287_v11 = vshrl.u32 %v3840_v43, 16  ;;  %v1293_v12 = vshll.u32 %v3852_v51, 16 }
  0x30   : > { %v294_v9 = vrot.slane %v293_v58, 4  ;;  %3338 = vmatmul.mubr.msk.bf16.vlgmr.msra.gmra.mrb[0].mxu0 %vm453_vm3, %v3012_v63  ;;  %v1280_v17 = vor.u32 %v1279_v7, %v1276_v1  ;;  %v301_v21 = vshrl.u32 %v3859_v62, 16  ;;  %v304_v22 = vshll.u32 %v3859_v62, 16 }
  0x31   : > { %v289_v16 = vsel %vm3778_vm2, %v284_v0, %v288_v46  ;;  %3354 = vmatpush3.bf16.msra.mxu0 %v3740_v3  ;;  %v1289_v25 = vrot.slane %v1287_v11, 4  ;;  %v1295_v30 = vrot.slane %v1293_v12, 5  ;;  %v310_v31 = vshll.u32 %v3862_v8, 16  ;;  %v3900_v0 = vld [vmem:[%s3746_s5 + $0x30] sm:$0xf] }
  0x32   : > { %v299_v23 = vsel %vm3778_vm2, %v294_v9, %v298_v60  ;;  %v1281_v35 = vrot.slane %v1280_v17, 4  ;;  %v303_v36 = vrot.slane %v301_v21, 4  ;;  %v306_v37 = vrot.slane %v304_v22, 5  ;;  %3371 = vmatprep.subr.bf16.mxu0 %v3867_v2  ;;  %v3906_v11 = vld [vmem:[%s3746_s5 + $0x34] sm:$0xf] }
  0x33   : > { %v2889_v34 = vcombine.low %v289_v16, %v299_v23  ;;  %v1290_v3 = vor.u32 %v1289_v25, %v1285_v10  ;;  %v312_v40 = vrot.slane %v310_v31, 5  ;;  %v314_v41 = vshrl.u32 %v3862_v8, 16  ;;  %v3911_v22 = vld [vmem:[%s3746_s5 + $0x38] sm:$0x1] }
  0x34   : > { %v320_v42 = vshll.u32 %v3876_v18, 16  ;;  %v1286_v45 = vsel %vm3778_vm2, %v1281_v35, %v1285_v10  ;;  %v307_v46 = vor.u32 %v306_v37, %v303_v36  ;;  %v1298_v48 = vshrl.u32 %v2994_v33, 16  ;;  %v3028_v37 = vld [vmem:[%s3746_s5 + $0xc] sm:$0xe] }
  0x35   : > { %3269 = vmatprep.mubr.msk.bf16.mxu1 %vm453_vm3, %v2889_v34  ;;  %v1301_v49 = vshll.u32 %v2994_v33, 16  ;;  %v1291_v50 = vrot.slane %v1290_v3, 4  ;;  %v316_v52 = vrot.slane %v314_v41, 4  ;;  %v1307_v55 = vshll.u32 %v3886_v39, 16 }
  0x36   : > { %v322_v53 = vrot.slane %v320_v42, 5  ;;  %v308_v58 = vrot.slane %v307_v46, 4  ;;  %v1300_v60 = vrot.slane %v1298_v48, 4  ;;  %v1311_v63 = vshrl.u32 %v3886_v39, 16 }
  0x37   : > { %v1303_v61 = vrot.slane %v1301_v49, 5  ;;  %v1296_v1 = vsel %vm3778_vm2, %v1291_v50, %v1295_v30  ;;  %v317_v7 = vor.u32 %v316_v52, %v312_v40  ;;  %v1309_v9 = vrot.slane %v1307_v55, 5 }
  0x38   : > { %v1317_v10 = vshll.u32 %v3895_v47, 16  ;;  %v3013_v12 = vcombine.low %v1286_v45, %v1296_v1  ;;  %v313_v16 = vsel %vm3778_vm2, %v308_v58, %v312_v40  ;;  %v1313_v21 = vrot.slane %v1311_v63, 4  ;;  %v3923_v45 = vld [vmem:[%s3746_s5 + $0x3c] sm:$0xf]  ;;  %v3937_v63 = vld [vmem:[%s3746_s5 + $0x44] sm:$0x1] }
  0x39   : > { %v1304_v17 = vor.u32 %v1303_v61, %v1300_v60  ;;  %v318_v23 = vrot.slane %v317_v7, 4  ;;  %v325_v30 = vshrl.u32 %v3900_v0, 16  ;;  %v328_v31 = vshll.u32 %v3900_v0, 16  ;;  %v3029_v1 = vld [vmem:[%s3746_s5 + $0x18] sm:$0xe] }
  0x3a   : > { %v1319_v25 = vrot.slane %v1317_v10, 5  ;;  %3341 = vmatprep.mubr.msk.bf16.mxu0 %vm453_vm3, %v3013_v12  ;;  %v1314_v34 = vor.u32 %v1313_v21, %v1309_v9  ;;  %v334_v35 = vshll.u32 %v3906_v11, 16  ;;  %v338_v36 = vshrl.u32 %v3906_v11, 16 }
  0x3b   : > { %v1305_v33 = vrot.slane %v1304_v17, 4  ;;  %v323_v3 = vsel %vm3778_vm2, %v318_v23, %v322_v53  ;;  %v327_v40 = vrot.slane %v325_v30, 4  ;;  %v330_v41 = vrot.slane %v328_v31, 5  ;;  %v3934_v53 = vld [vmem:[%s3746_s5 + $0x40] sm:$0xf] }
  0x3c   : > { %v344_v42 = vshll.u32 %v3911_v22, 16  ;;  %v2890_v46 = vcombine.low %v313_v16, %v323_v3  ;;  %v1315_v49 = vrot.slane %v1314_v34, 4  ;;  %v336_v50 = vrot.slane %v334_v35, 5  ;;  %v3948_v16 = vld [vmem:[%s3746_s5 + $0x48] sm:$0xf] }
  0x3d   : > { %v1310_v48 = vsel %vm3778_vm2, %v1305_v33, %v1309_v9  ;;  %v331_v55 = vor.u32 %v330_v41, %v327_v40  ;;  %v340_v58 = vrot.slane %v338_v36, 4  ;;  %v3036_v61 = vrot.slane %v3028_v37, 9 }
  0x3e   : > { %v346_v60 = vrot.slane %v344_v42, 5  ;;  %3270 = vmatmul.mubr.msk.bf16.gmra.mrb[4].mxu1 %vm453_vm3, %v2890_v46  ;;  %v1320_v7 = vsel %vm3778_vm2, %v1315_v49, %v1319_v25  ;;  %v1623_v9 = vrot.slane %v1621_v56, 4  ;;  %v349_v10 = vshrl.u32 %v3923_v45, 16 }
  0x3f   : > { %v352_v12 = vshll.u32 %v3923_v45, 16  ;;  %v3014_v17 = vcombine.low %v1310_v48, %v1320_v7  ;;  %v332_v21 = vrot.slane %v331_v55, 4  ;;  %v341_v23 = vor.u32 %v340_v58, %v336_v50 }
  0x40   : > { %v1622_v30 = vsel %vm3929_vm6, %v3036_v61, %v1621_v56  ;;  %v1625_v25 = vsel %vm3929_vm6, %v1623_v9, %v1624_v57  ;;  %v351_v31 = vrot.slane %v349_v10, 4  ;;  %v358_v34 = vshll.u32 %v3934_v53, 16  ;;  %v3964_v56 = vld [vmem:[%s3746_s5 + $0x4c] sm:$0xf]  ;;  %v3986_v10 = vld [vmem:[%s3746_s5 + $0x54] sm:$0xf] }
  0x41   : > { %v354_v33 = vrot.slane %v352_v12, 5  ;;  %3342 = vmatmul.mubr.msk.bf16.gmra.mrb[4].mxu0 %vm453_vm3, %v3014_v17  ;;  %v337_v35 = vsel %vm3778_vm2, %v332_v21, %v336_v50  ;;  %v342_v36 = vrot.slane %v341_v23, 4  ;;  %v3046_v13 = vcombine.low %v1622_v30, %v1625_v25  ;;  %v3030_v50 = vld [vmem:[%s3746_s5 + $0x24] sm:$0xe]  ;;  %v4000_v17 = vld [vmem:[%s4626_s1 + $0x38] sm:$0xff]  }
  0x42   : > { %v362_v37 = vshrl.u32 %v3934_v53, 16  ;;  %v360_v57 = vrot.slane %v358_v34, 5  ;;  %v368_v40 = vshll.u32 %v3937_v63, 16  ;;  %v3037_v41 = vrot.slane %v3029_v1, 9 }
  0x43   : > { %v355_v3 = vor.u32 %v354_v33, %v351_v31  ;;  %v347_v42 = vsel %vm3778_vm2, %v342_v36, %v346_v60  ;;  %3355 = vmatprep.mubr.msk.bf16.mxu0 %vm453_vm3, %v3046_v13  ;;  %v1632_v48 = vsel %vm3929_vm6, %v3827_v26, %v1631_v24  ;;  %v373_v49 = vshrl.u32 %v3948_v16, 16  ;;  %v4005_v36 = vld [vmem:[%s3746_s5 + $0x5c] sm:$0x1] }
  0x44   : > { %v364_v46 = vrot.slane %v362_v37, 4  ;;  %v2891_v55 = vcombine.low %v337_v35, %v347_v42  ;;  %v370_v61 = vrot.slane %v368_v40, 5  ;;  %v1629_v60 = vsel %vm3929_vm6, %v3037_v41, %v1628_v19  ;;  %v3995_v19 = vld [vmem:[%s3746_s5 + $0x58] sm:$0xf]  ;;  %v3031_v42 = vld [vmem:[%s3746_s5 + $0x30] sm:$0xe] }
  0x45   : > { %v356_v58 = vrot.slane %v355_v3, 4  ;;  %v3047_v7 = vcombine.low %v1629_v60, %v1632_v48  ;;  %v375_v9 = vrot.slane %v373_v49, 4  ;;  %v376_v59 = vshll.u32 %v3948_v16, 16 }
  0x46   : > { %v365_v1 = vor.u32 %v364_v46, %v360_v57  ;;  %3273 = vmatprep.mubr.msk.bf16.mxu1 %vm453_vm3, %v2891_v55  ;;  %v382_v26 = vshll.u32 %v3964_v56, 16  ;;  %v386_v54 = vshrl.u32 %v3964_v56, 16  ;;  %v392_v12 = vshll.u32 %v3967_v14, 16 }
  0x47   : > { %v361_v24 = vsel %vm3778_vm2, %v356_v58, %v360_v57  ;;  %v378_v23 = vrot.slane %v376_v59, 5  ;;  %v3038_v30 = vrot.slane %v3030_v50, 9  ;;  %v1635_v25 = vrot.slane %v3840_v43, 5  ;;  %v3032_v59 = vld [vmem:[%s3746_s5 + $0x3c] sm:$0xe] }
  0x48   : > { %v366_v21 = vrot.slane %v365_v1, 4  ;;  %v384_v31 = vrot.slane %v382_v26, 5  ;;  %v388_v33 = vrot.slane %v386_v54, 4  ;;  %v394_v34 = vrot.slane %v392_v12, 5 }
  0x49   : > { %v1638_v35 = vrot.slane %v3852_v51, 5  ;;  %3356 = vmatmul.mubr.msk.bf16.vlgmr.msra.gmra.mrb[0].mxu0 %vm453_vm3, %v3047_v7  ;;  %v379_v37 = vor.u32 %v378_v23, %v375_v9  ;;  %v1636_v3 = vsel %vm3929_vm6, %v3038_v30, %v1635_v25  ;;  %v1637_v57 = vrot.slane %v1635_v25, 4  ;;  %v4034_v23 = vld [vmem:[%s3746_s5 + $0x44] sm:$0x1] }
  0x4a   : > { %v371_v13 = vsel %vm3778_vm2, %v366_v21, %v370_v61  ;;  %3372 = vmatpush3.bf16.msra.mxu0 %v3867_v2  ;;  %v389_v43 = vor.u32 %v388_v33, %v384_v31  ;;  %v397_v41 = vshrl.u32 %v3986_v10, 16  ;;  %v400_v51 = vshll.u32 %v3986_v10, 16  ;;  %v4031_v21 = vld [vmem:[%s3746_s5 + $0x40] sm:$0xf] }
  0x4b   : > { %v2892_v40 = vcombine.low %v361_v24, %v371_v13  ;;  %v380_v46 = vrot.slane %v379_v37, 4  ;;  %v1639_v48 = vsel %vm3929_vm6, %v1637_v57, %v1638_v35  ;;  %v406_v49 = vshll.u32 %v3995_v19, 16  ;;  %3389 = vmatprep.subr.bf16.mxu0 %v4000_v17 }
  0x4c   : > { %v410_v50 = vshrl.u32 %v3995_v19, 16  ;;  %v390_v2 = vrot.slane %v389_v43, 4  ;;  %v3048_v55 = vcombine.low %v1636_v3, %v1639_v48  ;;  %v399_v58 = vrot.slane %v397_v41, 4  ;;  %v4049_v41 = vld [vmem:[%s3746_s5 + $0x4c] sm:$0xf] }
  0x4d   : > { %3274 = vmatmul.mubr.msk.bf16.gmra.mrb[8].mxu1 %vm453_vm3, %v2892_v40  ;;  %v402_v61 = vrot.slane %v400_v51, 5  ;;  %v385_v60 = vsel %vm3778_vm2, %v380_v46, %v384_v31  ;;  %v408_v1 = vrot.slane %v406_v49, 5  ;;  %v416_v9 = vshll.u32 %v4005_v36, 16  ;;  %v4052_v51 = vld [vmem:[%s3746_s5 + $0x50] sm:$0x1] }
  0x4e   : > { %v412_v7 = vrot.slane %v410_v50, 4  ;;  %v395_v24 = vsel %vm3778_vm2, %v390_v2, %v394_v34  ;;  %3359 = vmatprep.mubr.msk.bf16.mxu0 %vm453_vm3, %v3048_v55  ;;  %v3039_v54 = vrot.slane %v3031_v42, 9  ;;  %v1642_v12 = vrot.slane %v3886_v39, 5  ;;  %v3033_v42 = vld [vmem:[%s3746_s5 + $0x48] sm:$0xe] }
  0x4f   : > { %v403_v26 = vor.u32 %v402_v61, %v399_v58  ;;  %v2893_v30 = vcombine.low %v385_v60, %v395_v24  ;;  %v418_v31 = vrot.slane %v416_v9, 5  ;;  %v1645_v33 = vrot.slane %v3895_v47, 5  ;;  %v4060_v55 = vld [vmem:[%s3746_s5 + $0x58] sm:$0xf]  ;;  %v4076_v24 = vld [vmem:[%s3746_s5 + $0x68] sm:$0x1] }
  0x50   : > { %v413_v25 = vor.u32 %v412_v7, %v408_v1  ;;  %v1643_v34 = vsel %vm3929_vm6, %v3039_v54, %v1642_v12  ;;  %v1644_v13 = vrot.slane %v1642_v12, 4  ;;  %v3040_v37 = vrot.slane %v3032_v59, 9  ;;  %v4069_v7 = vld [vmem:[%s3746_s5 + $0x5c] sm:$0x1]  ;;  %v4073_v59 = vld [vmem:[%s3746_s5 + $0x64] sm:$0xf] }
  0x51   : > { %v404_v35 = vrot.slane %v403_v26, 4  ;;  %3277 = vmatprep.mubr.msk.bf16.mxu1 %vm453_vm3, %v2893_v30  ;;  %v1649_v3 = vrot.slane %v4031_v21, 5  ;;  %v1652_v57 = vrot.slane %v4034_v23, 5  ;;  %v2904_v43 = vcombine.low %v3750_v4, %v3753_v5  ;;  %v3034_v4 = vld [vmem:[%s3746_s5 + $0x54] sm:$0xe]  ;;  %4638 = vst [vmem:[#allocation3_spill] sm:$0xff] %v4069_v7 }
  0x52   : > { %v414_v39 = vrot.slane %v413_v25, 4  ;;  %v1646_v47 = vsel %vm3929_vm6, %v1644_v13, %v1645_v33  ;;  %v3041_v61 = vrot.slane %v3033_v42, 9  ;;  %v1656_v60 = vrot.slane %v4049_v41, 5  ;;  %4639 = vst [vmem:[#allocation4_spill] sm:$0xff] %v4073_v59  ;;  %4640 = vst [vmem:[#allocation5_spill] sm:$0xff] %v4076_v24 }
  0x53   : > { %v409_v40 = vsel %vm3778_vm2, %v404_v35, %v408_v1  ;;  %v3049_v48 = vcombine.low %v1643_v34, %v1646_v47  ;;  %v1650_v49 = vsel %vm3929_vm6, %v3040_v37, %v1649_v3  ;;  %v1651_v50 = vrot.slane %v1649_v3, 4  ;;  %v3035_v25 = vld [vmem:[%s3746_s5 + $0x60] sm:$0xe]  ;;  %v743_v47 = vld [vmem:[%s3746_s5 + $0xc] sm:$0xe] }
  0x54   : > { %v419_v46 = vsel %vm3778_vm2, %v414_v39, %v418_v31  ;;  %v1659_v1 = vrot.slane %v4052_v51, 5  ;;  %v1657_v26 = vsel %vm3929_vm6, %v3041_v61, %v1656_v60  ;;  %v1658_v54 = vrot.slane %v1656_v60, 4  ;;  %v746_v60 = vld [vmem:[%s3746_s5 + $0x30] sm:$0xe] }
  0x55   : > { %v2894_v2 = vcombine.low %v409_v40, %v419_v46  ;;  %3360 = vmatmul.mubr.msk.bf16.gmra.mrb[4].mxu0 %vm453_vm3, %v3049_v48  ;;  %v1653_v58 = vsel %vm3929_vm6, %v1651_v50, %v1652_v57  ;;  %v3042_v12 = vrot.slane %v3034_v4, 9  ;;  %v1663_v30 = vrot.slane %v4060_v55, 5 }
  0x56   : > { %v3050_v9 = vcombine.low %v1650_v49, %v1653_v58  ;;  %v778_v31 = vrot.slane %v3783_v32, 5  ;;  %v1666_v33 = vrot.slane %v4069_v7, 5  ;;  %v1660_v35 = vsel %vm3929_vm6, %v1658_v54, %v1659_v1  ;;  %v4377_v7 = vld [vmem:[%s3746_s5 + $0x70] sm:$0xf] }
  0x57   : > { %3278 = vmatmul.mubr.msk.bf16.gmra.mrb[12].mxu1 %vm453_vm3, %v2894_v2  ;;  %v1664_v34 = vsel %vm3929_vm6, %v3042_v12, %v1663_v30  ;;  %v1665_v13 = vrot.slane %v1663_v30, 4  ;;  %v1670_v37 = vrot.slane %v4073_v59, 5  ;;  %v2905_v39 = vcombine.low %v3774_v27, %v3783_v32  ;;  %v4104_v27 = vld [vmem:[%s4626_s1 + $0x18] sm:$0xff]   ;;  %v745_v32 = vld [vmem:[%s3746_s5 + $0x24] sm:$0xe] }
  0x58   : > { %3283 = vmatprep.mubr.msk.bf16.mxu1 %vm453_vm3, %v2904_v43  ;;  %3363 = vmatprep.mubr.msk.bf16.mxu0 %vm453_vm3, %v3050_v9  ;;  %v3051_v3 = vcombine.low %v1657_v26, %v1660_v35  ;;  %v3043_v57 = vrot.slane %v3035_v25, 9  ;;  %v1673_v40 = vrot.slane %v4076_v24, 5  ;;  %v744_v43 = vld [vmem:[%s3746_s5 + $0x18] sm:$0xe]  ;;  %v781_v42 = vrot.slane %v3786_v38, 5 }
  0x59   : > { %v2906_v46 = vcombine.low %v3815_v15, %v3822_v20  ;;  %v1667_v48 = vsel %vm3929_vm6, %v1665_v13, %v1666_v33  ;;  %v1672_v49 = vrot.slane %v1670_v37, 4  ;;  %v2922_v2 = vrot.slane %v743_v47, 9  ;;  %v3607_v35 = vld [vmem:[%s3746_s5 + $0x18] sm:$0xff]   ;;  %v3121_v24 = vld [vmem:[%s3746_s5 + $0x6c] sm:$0xf] }
  0x5a   : > { %v3052_v50 = vcombine.low %v1664_v34, %v1667_v48  ;;  %v780_v4 = vrot.slane %v778_v31, 4  ;;  %v2923_v38 = vrot.slane %v744_v43, 9  ;;  %v1671_v15 = vsel %vm3929_vm6, %v3043_v57, %v1670_v37  ;;  %v3118_v48 = vld [vmem:[%s3746_s5 + $0x60] sm:$0xf] }
  0x5b   : > { %v1674_v58 = vsel %vm3929_vm6, %v1672_v49, %v1673_v40  ;;  %v785_v61 = vrot.slane %v3822_v20, 5  ;;  %v4120_v1 = vsel %vm3929_vm6, %v2922_v2, %v778_v31  ;;  %v788_v26 = vrot.slane %v3830_v29, 5  ;;  %v3610_v49 = vld [vmem:[%s3746_s5 + $0x24] sm:$0xff]  }
  0x5c   : > { %v4124_v9 = vsel %vm3929_vm6, %v780_v4, %v781_v42  ;;  %v2924_v54 = vrot.slane %v745_v32, 9  ;;  %v3053_v30 = vcombine.low %v1671_v15, %v1674_v58  ;;  %v792_v25 = vrot.slane %v3862_v8, 5  ;;  %v3100_v42 = vld [vmem:[%s3746_s5 + $0x18] sm:$0xf] }
  0x5d   : > { %3364 = vmatmul.mubr.msk.bf16.gmra.mrb[8].mxu0 %vm453_vm3, %v3051_v3  ;;  %v2932_v20 = vcombine.low %v4120_v1, %v4124_v9  ;;  %v787_v12 = vrot.slane %v785_v61, 4  ;;  %v795_v31 = vrot.slane %v3876_v18, 5  ;;  %v2925_v33 = vrot.slane %v746_v60, 9 }
  0x5e   : > { %3367 = vmatprep.mubr.msk.bf16.mxu0 %vm453_vm3, %v3052_v50  ;;  %v2907_v29 = vcombine.low %v3859_v62, %v3862_v8  ;;  %v799_v13 = vrot.slane %v3906_v11, 5  ;;  %v802_v37 = vrot.slane %v3911_v22, 5  ;;  %v4151_v3 = vsel %vm3929_vm6, %v2924_v54, %v792_v25  ;;  %v747_v8 = vld [vmem:[%s3746_s5 + $0x3c] sm:$0xe] }
  0x5f   : > { %3284 = vmatmul.mubr.msk.bf16.vlgmr.msra.gmra.mrb[0].mxu1 %vm453_vm3, %v2905_v39  ;;  %v4141_v34 = vsel %vm3929_vm6, %v787_v12, %v788_v26  ;;  %v2908_v39 = vcombine.low %v3900_v0, %v3906_v11  ;;  %v794_v62 = vrot.slane %v792_v25, 4  ;;  %v771_v57 = vrot.slane %v3753_v5, 5  ;;  %v742_v0 = vld [vmem:[%s3746_s5] sm:$0xe]  ;;  %v4349_v5 = vld [vmem:[%s3746_s5 + $0x64] sm:$0xf] }
  0x60   : > { %3300 = vmatpush3.bf16.msra.mxu1 %v3845_v44  ;;  %3287 = vmatprep.mubr.msk.bf16.mxu1 %vm453_vm3, %v2906_v46  ;;  %v4132_v44 = vsel %vm3929_vm6, %v2923_v38, %v785_v61  ;;  %v4157_v22 = vsel %vm3929_vm6, %v2925_v33, %v799_v13  ;;  %v801_v40 = vrot.slane %v799_v13, 4  ;;  %v774_v47 = vrot.slane %v3756_v6, 5  ;;  %v4179_v6 = vld [vmem:[%s3746_s5 + $0x1c] sm:$0xf]  ;;  %v748_v61 = vld [vmem:[%s3746_s5 + $0x48] sm:$0xe] }
  0x61   : > { %3317 = vmatprep.subr.bf16.mxu1 %v4104_v27  ;;  %v2933_v18 = vcombine.low %v4132_v44, %v4141_v34  ;;  %v4163_v11 = vsel %vm3929_vm6, %v794_v62, %v795_v31  ;;  %v2926_v46 = vrot.slane %v747_v8, 9  ;;  %v2921_v50 = vrot.slane %v742_v0, 9  ;;  %v4203_v25 = vld [vmem:[%s4626_s1 + $0x40] sm:$0xff]   ;;  %4641 = vst [vmem:[#allocation6_spill] sm:$0xff] %v4349_v5 }
  0x62   : > { %v4172_v43 = vsel %vm3929_vm6, %v801_v40, %v802_v37  ;;  %v773_v32 = vrot.slane %v771_v57, 4  ;;  %v806_v2 = vrot.slane %v3934_v53, 5  ;;  %v809_v4 = vrot.slane %v3937_v63, 5  ;;  %v3612_v63 = vld [vmem:[%s3746_s5 + $0x30] sm:$0xff]   ;;  %v3103_v8 = vld [vmem:[%s3746_s5 + $0x24] sm:$0xf] }
  0x63   : > { %v2909_v38 = vcombine.low %v3923_v45, %v3934_v53  ;;  %v2076_v15 = vshrl.u32 %v3100_v42, 16  ;;  %v2079_v58 = vshll.u32 %v3100_v42, 16  ;;  %v2085_v60 = vshll.u32 %v4179_v6, 16  ;;  %v4327_v44 = vld [vmem:[%s3746_s5 + $0x44] sm:$0x1] }
  0x64   : > { %v2089_v26 = vshrl.u32 %v4179_v6, 16  ;;  %v4191_v54 = vsel %vm3929_vm6, %v2926_v46, %v806_v2  ;;  %v808_v12 = vrot.slane %v806_v2, 4  ;;  %v772_v45 = vsel %vm3929_vm6, %v2921_v50, %v771_v57  ;;  %v749_v46 = vld [vmem:[%s3746_s5 + $0x54] sm:$0xe] }
  0x65   : > { %3368 = vmatmul.mubr.msk.bf16.gmra.mrb[12].mxu0 %vm453_vm3, %v3053_v30  ;;  %v2910_v30 = vcombine.low %v3948_v16, %v3964_v56  ;;  %v775_v53 = vsel %vm3929_vm6, %v773_v32, %v774_v47  ;;  %v2927_v33 = vrot.slane %v748_v61, 9  ;;  %v4211_v16 = vld [vmem:[%s3746_s5 + $0x20] sm:$0x1]  ;;  %v813_v37 = vrot.slane %v3964_v56, 5  ;;  %v4225_v56 = vld [vmem:[%s3746_s5 + $0x28] sm:$0xf] }
  0x66   : > { %3373 = vmatprep.mubr.msk.bf16.mxu0 %vm453_vm3, %v3607_v35  ;;  %v4207_v31 = vsel %vm3929_vm6, %v808_v12, %v809_v4  ;;  %v2081_v35 = vrot.slane %v2079_v58, 5  ;;  %v2091_v62 = vrot.slane %v2089_v26, 4  ;;  %v816_v57 = vrot.slane %v3967_v14, 5  ;;  %v3106_v14 = vld [vmem:[%s3746_s5 + $0x30] sm:$0xf] }
  0x67   : > { %3288 = vmatmul.mubr.msk.bf16.gmra.mrb[4].mxu1 %vm453_vm3, %v2907_v29  ;;  %v2078_v29 = vrot.slane %v2076_v15, 4  ;;  %v4229_v40 = vsel %vm3929_vm6, %v2927_v33, %v813_v37  ;;  %v2911_v0 = vcombine.low %v3986_v10, %v3995_v19  ;;  %v2931_v47 = vcombine.low %v772_v45, %v775_v53  ;;  %v3616_v15 = vld [vmem:[%s3746_s5 + $0x48] sm:$0xff]  }
  0x68   : > { %3291 = vmatprep.mubr.msk.bf16.mxu1 %vm453_vm3, %v2908_v39  ;;  %v4218_v39 = vrot.slane %v2085_v60, 5  ;;  %v2095_v42 = vshll.u32 %v4211_v16, 16  ;;  %v2100_v32 = vshrl.u32 %v3103_v8, 16  ;;  %v2103_v2 = vshll.u32 %v3103_v8, 16 }
  0x69   : > { %v2082_v50 = vor.u32 %v2081_v35, %v2078_v29  ;;  %v2109_v58 = vshll.u32 %v4225_v56, 16  ;;  %v2113_v61 = vshrl.u32 %v4225_v56, 16  ;;  %v2124_v26 = vshrl.u32 %v3106_v14, 16 }
  0x6a   : > { %v2092_v10 = vor.u32 %v2091_v62, %v4218_v39  ;;  %v2127_v12 = vshll.u32 %v3106_v14, 16  ;;  %v823_v33 = vrot.slane %v4005_v36, 5  ;;  %v2097_v35 = vrot.slane %v2095_v42, 5 }
  0x6b   : > { %v2083_v29 = vrot.slane %v2082_v50, 4  ;;  %v2102_v8 = vrot.slane %v2100_v32, 4  ;;  %v2105_v36 = vrot.slane %v2103_v2, 5  ;;  %v2115_v42 = vrot.slane %v2113_v61, 4 }
  0x6c   : > { %v2126_v14 = vrot.slane %v2124_v26, 4 }
  0x6d   : > { %3374 = vmatmul.mubr.msk.bf16.vlgmr.msra.gmra.mrb[0].mxu0 %vm453_vm3, %v3610_v49  ;;  %v3614_v49 = vld [vmem:[%s3746_s5 + $0x3c] sm:$0xff]   ;;  %v2088_v61 = vsel %vm3778_vm2, %v2083_v29, %v4218_v39 }
  0x6e   : > { %3390 = vmatpush3.bf16.msra.mxu0 %v4000_v17  ;;  %3377 = vmatprep.mubr.msk.bf16.mxu0 %vm453_vm3, %v3612_v63  ;;  %v815_v17 = vrot.slane %v813_v37, 4  ;;  %v820_v63 = vrot.slane %v3995_v19, 5  ;;  %v2093_v19 = vrot.slane %v2092_v10, 4  ;;  %v4282_v10 = vld [vmem:[%s3746_s5 + $0x40] sm:$0xf] }
  0x6f   : > { %3292 = vmatmul.mubr.msk.bf16.gmra.mrb[8].mxu1 %vm453_vm3, %v2909_v38  ;;  %3407 = vmatprep.subr.bf16.mxu0 %v4203_v25  ;;  %v4243_v38 = vld [vmem:[%s3746_s5 + $0x34] sm:$0xf]  ;;  %v2157_v39 = vshll.u32 %v4282_v10, 16  ;;  %v2161_v29 = vshrl.u32 %v4282_v10, 16 }
  0x70   : > { %3295 = vmatprep.mubr.msk.bf16.mxu1 %vm453_vm3, %v2910_v30  ;;  %v4240_v4 = vsel %vm3929_vm6, %v815_v17, %v816_v57  ;;  %v2928_v30 = vrot.slane %v749_v46, 9  ;;  %v2133_v45 = vshll.u32 %v4243_v38, 16  ;;  %v2137_v53 = vshrl.u32 %v4243_v38, 16  ;;  %v4266_v17 = vld [vmem:[%s3746_s5 + $0x2c] sm:$0x1] }
  0x71   : > { %v822_v62 = vrot.slane %v820_v63, 4  ;;  %v4262_v57 = vrot.slane %v2109_v58, 5  ;;  %v3618_v58 = vld [vmem:[%s3746_s5 + $0x60] sm:$0xff]   ;;  %v2098_v26 = vsel %vm3778_vm2, %v2093_v19, %v2097_v35 }
  0x72   : > { %v4258_v37 = vsel %vm3929_vm6, %v2928_v30, %v820_v63  ;;  %v4275_v50 = vrot.slane %v2133_v45, 5  ;;  %v2139_v32 = vrot.slane %v2137_v53, 4  ;;  %v2119_v30 = vshll.u32 %v4266_v17, 16  ;;  %v3112_v63 = vld [vmem:[%s3746_s5 + $0x48] sm:$0xf] }
  0x73   : > { %v4270_v46 = vsel %vm3929_vm6, %v822_v62, %v823_v33  ;;  %v4293_v45 = vld [vmem:[%s3746_s5 + $0x4c] sm:$0xf]  ;;  %v2116_v53 = vor.u32 %v2115_v42, %v4262_v57  ;;  %v2172_v35 = vshrl.u32 %v3112_v63, 16  ;;  %v2175_v19 = vshll.u32 %v3112_v63, 16 }
  0x74   : > { %v2140_v60 = vor.u32 %v2139_v32, %v4275_v50  ;;  %v3115_v32 = vld [vmem:[%s3746_s5 + $0x54] sm:$0xf] }
  0x75   : > { %3378 = vmatmul.mubr.msk.bf16.gmra.mrb[4].mxu0 %vm453_vm3, %v3614_v49  ;;  %v4273_v49 = vld [vmem:[%s3746_s5 + $0x38] sm:$0x1]  ;;  %v2174_v34 = vrot.slane %v2172_v35, 4 }
  0x76   : > { %3381 = vmatprep.mubr.msk.bf16.mxu0 %vm453_vm3, %v3616_v15  ;;  %v3617_v15 = vld [vmem:[%s3746_s5 + $0x54] sm:$0xff]   ;;  %v2143_v62 = vshll.u32 %v4273_v49, 16 }
  0x77   : > { %3296 = vmatmul.mubr.msk.bf16.gmra.mrb[12].mxu1 %vm453_vm3, %v2911_v0  ;;  %v2129_v0 = vrot.slane %v2127_v12, 5  ;;  %v2106_v12 = vor.u32 %v2105_v36, %v2102_v8  ;;  %v2181_v8 = vshll.u32 %v4293_v45, 16  ;;  %v3126_v36 = vcombine.low %v2088_v61, %v2098_v26 }
  0x78   : > { %3301 = vmatprep.mubr.msk.bf16.mxu1 %vm453_vm3, %v2931_v47  ;;  %v3109_v47 = vld [vmem:[%s3746_s5 + $0x3c] sm:$0xf]  ;;  %v2145_v9 = vrot.slane %v2143_v62, 5  ;;  %v2141_v61 = vrot.slane %v2140_v60, 4  ;;  %v2196_v60 = vshrl.u32 %v3115_v32, 16 }
  0x79   : > { %v2130_v33 = vor.u32 %v2129_v0, %v2126_v14  ;;  %v2148_v2 = vshrl.u32 %v3109_v47, 16  ;;  %v2151_v13 = vshll.u32 %v3109_v47, 16  ;;  %v2107_v42 = vrot.slane %v2106_v12, 4 }
  0x7a   : > { %v2121_v14 = vrot.slane %v2119_v30, 5  ;;  %v2185_v0 = vshrl.u32 %v4293_v45, 16  ;;  %v2117_v47 = vrot.slane %v2116_v53, 4  ;;  %v4318_v12 = vrot.slane %v2157_v39, 5 }
  0x7b   : > { %v2131_v1 = vrot.slane %v2130_v33, 4  ;;  %v2153_v26 = vrot.slane %v2151_v13, 5  ;;  %v2163_v30 = vrot.slane %v2161_v29, 4  ;;  %v4332_v13 = vld [vmem:[%s3746_s5 + $0x50] sm:$0x1]  ;;  %v2199_v53 = vshll.u32 %v3115_v32, 16 }
  0x7c   : > { %v2187_v63 = vrot.slane %v2185_v0, 4  ;;  %v1355_v39 = vshll.u32 %v4049_v41, 16  ;;  %v2112_v29 = vsel %vm3778_vm2, %v2107_v42, %v4262_v57  ;;  %v2122_v35 = vsel %vm3778_vm2, %v2117_v47, %v2121_v14 }
  0x7d   : > { %3382 = vmatmul.mubr.msk.bf16.gmra.mrb[8].mxu0 %vm453_vm3, %v3617_v15  ;;  %v4315_v15 = vld [vmem:[%s3746_s5 + $0x58] sm:$0xf]  ;;  %v2164_v0 = vor.u32 %v2163_v30, %v4318_v12  ;;  %v2167_v32 = vshll.u32 %v4327_v44, 16  ;;  %v2146_v57 = vsel %vm3778_vm2, %v2141_v61, %v2145_v9  ;;  %v2191_v14 = vshll.u32 %v4332_v13, 16  ;;  %v4368_v61 = vld [vmem:[%s3746_s5 + $0x5c] sm:$0x1] }
  0x7e   : > { %3385 = vmatprep.mubr.msk.bf16.mxu0 %vm453_vm3, %v3618_v58  ;;  %v3619_v58 = vld [vmem:[%s3746_s5 + $0x6c] sm:$0xff]   ;;  %v2205_v33 = vshll.u32 %v4315_v15, 16  ;;  %v2209_v62 = vshrl.u32 %v4315_v15, 16  ;;  %v2198_v47 = vrot.slane %v2196_v60, 4  ;;  %v4643_v9 = vcombine.low %v4157_v22, %v4172_v43 }
  0x7f   : > { %3302 = vmatmul.mubr.msk.bf16.vlgmr.msra.gmra.mrb[0].mxu1 %vm453_vm3, %v2932_v20  ;;  %v2150_v20 = vrot.slane %v2148_v2, 4  ;;  %v4329_v2 = vrot.slane %v2181_v8, 5  ;;  %v2220_v30 = vshrl.u32 %v3118_v48, 16  ;;  %v2165_v60 = vrot.slane %v2164_v0, 4 }
  0x80   : > { %3318 = vmatpush3.bf16.msra.mxu1 %v4104_v27  ;;  %3305 = vmatprep.mubr.msk.bf16.mxu1 %vm453_vm3, %v2933_v18  ;;  %v4323_v27 = vld [vmem:[%s4626_s1 + $0x20] sm:$0xff]   ;;  %v2177_v18 = vrot.slane %v2175_v19, 5  ;;  %v2136_v19 = vsel %vm3778_vm2, %v2131_v1, %v4275_v50  ;;  %v4642_v50 = vcombine.low %v4151_v3, %v4163_v11  ;;  %v2223_v3 = vshll.u32 %v3118_v48, 16 }
  0x81   : > { %3425 = vmatprep.subr.bf16.mxu1 %v4323_v27  ;;  %v2154_v8 = vor.u32 %v2153_v26, %v2150_v20  ;;  %v2188_v1 = vor.u32 %v2187_v63, %v4329_v2  ;;  %v2201_v20 = vrot.slane %v2199_v53, 5  ;;  %v4361_v26 = vrot.slane %v2205_v33, 5 }
  0x82   : > { %v2178_v42 = vor.u32 %v2177_v18, %v2174_v34  ;;  %v2229_v11 = vshll.u32 %v4349_v5, 16  ;;  %v1359_v34 = vshrl.u32 %v4049_v41, 16  ;;  %v2169_v63 = vrot.slane %v2167_v32, 5  ;;  %v4389_v32 = vld [vmem:[%s3746_s5 + $0x68] sm:$0x1] }
  0x83   : > { %v2155_v18 = vrot.slane %v2154_v8, 4  ;;  %v3127_v53 = vcombine.low %v2112_v29, %v2122_v35  ;;  %v3128_v33 = vcombine.low %v2136_v19, %v2146_v57  ;;  %v2193_v43 = vrot.slane %v2191_v14, 5 }
  0x84   : > { %v2179_v22 = vrot.slane %v2178_v42, 4  ;;  %v2215_v48 = vshll.u32 %v4368_v61, 16  ;;  %v2222_v59 = vrot.slane %v2220_v30, 4  ;;  %v4379_v41 = vrot.slane %v2229_v11, 5 }
  0x85   : > { %3386 = vmatmul.mubr.msk.bf16.gmra.mrb[12].mxu0 %vm453_vm3, %v3619_v58  ;;  %v2211_v58 = vrot.slane %v2209_v62, 4  ;;  %v2189_v62 = vrot.slane %v2188_v1, 4  ;;  %v4381_v0 = vrot.slane %v1355_v39, 5  ;;  %v1361_v29 = vrot.slane %v1359_v34, 4 }
  0x86   : > { %3391 = vmatprep.mubr.msk.bf16.mxu0 %vm453_vm3, %v3126_v36  ;;  %v2233_v36 = vshrl.u32 %v4349_v5, 16  ;;  %v2225_v5 = vrot.slane %v2223_v3, 5  ;;  %v2160_v35 = vsel %vm3778_vm2, %v2155_v18, %v4318_v12  ;;  %v2170_v19 = vsel %vm3778_vm2, %v2165_v60, %v2169_v63  ;;  %v3621_v60 = vld [vmem:[%s3746_s5 + $0xc] sm:$0xff]  }
  0x87   : > { %3306 = vmatmul.mubr.msk.bf16.gmra.mrb[4].mxu1 %vm453_vm3, %v4642_v50  ;;  %v2202_v50 = vor.u32 %v2201_v20, %v2198_v47  ;;  %v2244_v57 = vshrl.u32 %v3121_v24, 16  ;;  %v2247_v42 = vshll.u32 %v3121_v24, 16  ;;  %v2253_v14 = vshll.u32 %v4377_v7, 16 }
  0x88   : > { %3309 = vmatprep.mubr.msk.bf16.mxu1 %vm453_vm3, %v4643_v9  ;;  %v2212_v9 = vor.u32 %v2211_v58, %v4361_v26  ;;  %v2235_v8 = vrot.slane %v2233_v36, 4  ;;  %v2257_v47 = vshrl.u32 %v4377_v7, 16  ;;  %v4644_v39 = vcombine.low %v4191_v54, %v4207_v31 }
  0x89   : > { %v2184_v12 = vsel %vm3778_vm2, %v2179_v22, %v4329_v2  ;;  %v2194_v1 = vsel %vm3778_vm2, %v2189_v62, %v2193_v43  ;;  %v2203_v20 = vrot.slane %v2202_v50, 4  ;;  %v2217_v24 = vrot.slane %v2215_v48, 5  ;;  %v3000_v50 = vld [vmem:[%s3746_s5 + $0x48] sm:$0xf] }
  0x8a   : > { %v4645_v58 = vcombine.low %v4229_v40, %v4240_v4  ;;  %v2213_v54 = vrot.slane %v2212_v9, 4  ;;  %v2236_v31 = vor.u32 %v2235_v8, %v4379_v41  ;;  %v2239_v2 = vshll.u32 %v4389_v32, 16  ;;  %v3143_v8 = vld [vmem:[%s3746_s5 + $0x18] sm:$0xe] }
  0x8b   : > { %v1362_v30 = vor.u32 %v1361_v29, %v4381_v0  ;;  %v1365_v3 = vshll.u32 %v4052_v51, 16  ;;  %v3129_v11 = vcombine.low %v2160_v35, %v2170_v19  ;;  %v2246_v36 = vrot.slane %v2244_v57, 4 }
  0x8c   : > { %v2249_v40 = vrot.slane %v2247_v42, 5  ;;  %v4413_v4 = vrot.slane %v2253_v14, 5  ;;  %v2259_v34 = vrot.slane %v2257_v47, 4  ;;  %v3130_v18 = vcombine.low %v2184_v12, %v2194_v1 }
  0x8d   : > { %3392 = vmatmul.mubr.msk.bf16.vlgmr.msra.gmra.mrb[0].mxu0 %vm453_vm3, %v3127_v53  ;;  %v2218_v63 = vsel %vm3778_vm2, %v2213_v54, %v2217_v24  ;;  %v2237_v53 = vrot.slane %v2236_v31, 4  ;;  %v1363_v22 = vrot.slane %v1362_v30, 4  ;;  %v1367_v43 = vrot.slane %v1365_v3, 5 }
  0x8e   : > { %3408 = vmatpush3.bf16.msra.mxu0 %v4203_v25  ;;  %3395 = vmatprep.mubr.msk.bf16.mxu0 %vm453_vm3, %v3128_v33  ;;  %v2226_v25 = vor.u32 %v2225_v5, %v2222_v59  ;;  %v2208_v59 = vsel %vm3778_vm2, %v2203_v20, %v4361_v26  ;;  %v4419_v5 = vld [vmem:[%s3746_s5 + $0x74] sm:$0x1]  ;;  %v2241_v33 = vrot.slane %v2239_v2, 5  ;;  %v2471_v62 = vrot.slane %v4179_v6, 5 }
  0x8f   : > { %3310 = vmatmul.mubr.msk.bf16.gmra.mrb[8].mxu1 %vm453_vm3, %v4644_v39  ;;  %v2250_v9 = vor.u32 %v2249_v40, %v2246_v36  ;;  %v2260_v48 = vor.u32 %v2259_v34, %v4413_v4  ;;  %v2263_v26 = vshll.u32 %v4419_v5, 16  ;;  %v4646_v29 = vcombine.low %v4258_v37, %v4270_v46  ;;  %v3145_v40 = vld [vmem:[%s3746_s5 + $0x30] sm:$0xe] }
  0x90   : > { %3313 = vmatprep.mubr.msk.bf16.mxu1 %vm453_vm3, %v4645_v58  ;;  %v2227_v51 = vrot.slane %v2226_v25, 4  ;;  %v3131_v35 = vcombine.low %v2208_v59, %v2218_v63  ;;  %v2242_v19 = vsel %vm3778_vm2, %v2237_v53, %v2241_v33  ;;  %v1346_v57 = vshrl.u32 %v3000_v50, 16  ;;  %v2997_v58 = vld [vmem:[%s3746_s5 + $0x3c] sm:$0xf]  ;;  %v3623_v25 = vld [vmem:[%s3746_s5 + $0x24] sm:$0xff]  }
  0x91   : > { %v1349_v42 = vshll.u32 %v3000_v50, 16  ;;  %v3151_v37 = vrot.slane %v3143_v8, 9  ;;  %v2473_v46 = vrot.slane %v2471_v62, 4  ;;  %v2474_v14 = vrot.slane %v4211_v16, 5  ;;  %v3144_v16 = vld [vmem:[%s3746_s5 + $0x24] sm:$0xe] }
  0x92   : > { %v2232_v6 = vsel %vm3778_vm2, %v2227_v51, %v4379_v41  ;;  %v1368_v47 = vsel %vm3778_vm2, %v1363_v22, %v1367_v43  ;;  %v2251_v39 = vrot.slane %v2250_v9, 4  ;;  %v2261_v12 = vrot.slane %v2260_v48, 4  ;;  %v3622_v41 = vld [vmem:[%s3746_s5 + $0x18] sm:$0xff]   ;;  %v3624_v50 = vld [vmem:[%s3746_s5 + $0x30] sm:$0xff]  }
  0x93   : > { %v2265_v1 = vrot.slane %v2263_v26, 5  ;;  %v1348_v20 = vrot.slane %v1346_v57, 4  ;;  %v3132_v24 = vcombine.low %v2232_v6, %v2242_v19  ;;  %v1351_v54 = vrot.slane %v1349_v42, 5  ;;  %v3625_v8 = vld [vmem:[%s3746_s5 + $0x3c] sm:$0xff]   ;;  %v3003_v57 = vld [vmem:[%s3746_s5 + $0x54] sm:$0xf] }
  0x94   : > { %v2472_v31 = vsel %vm3929_vm6, %v3151_v37, %v2471_v62  ;;  %v2475_v2 = vsel %vm3929_vm6, %v2473_v46, %v2474_v14  ;;  %v2478_v30 = vrot.slane %v4225_v56, 5  ;;  %v2485_v34 = vrot.slane %v4243_v38, 5  ;;  %v3147_v14 = vld [vmem:[%s3746_s5 + $0x48] sm:$0xe] }
  0x95   : > { %3396 = vmatmul.mubr.msk.bf16.gmra.mrb[4].mxu0 %vm453_vm3, %v3129_v11  ;;  %v1352_v3 = vor.u32 %v1351_v54, %v1348_v20  ;;  %v2256_v11 = vsel %vm3778_vm2, %v2251_v39, %v4413_v4  ;;  %v2266_v36 = vsel %vm3778_vm2, %v2261_v12, %v2265_v1  ;;  %v1325_v59 = vshll.u32 %v2997_v58, 16 }
  0x96   : > { %3399 = vmatprep.mubr.msk.bf16.mxu0 %vm453_vm3, %v3130_v18  ;;  %v1322_v18 = vshrl.u32 %v2997_v58, 16  ;;  %v1331_v56 = vshll.u32 %v4031_v21, 16  ;;  %v3152_v4 = vrot.slane %v3144_v16, 9  ;;  %v2481_v38 = vrot.slane %v4266_v17, 5 }
  0x97   : > { %3314 = vmatmul.mubr.msk.bf16.gmra.mrb[12].mxu1 %vm453_vm3, %v4646_v29  ;;  %v1353_v63 = vrot.slane %v1352_v3, 4  ;;  %v3161_v51 = vcombine.low %v2472_v31, %v2475_v2  ;;  %v2480_v53 = vrot.slane %v2478_v30, 4  ;;  %v3153_v33 = vrot.slane %v3145_v40, 9  ;;  %v3626_v31 = vld [vmem:[%s3746_s5 + $0x48] sm:$0xff]   ;;  %v3627_v3 = vld [vmem:[%s3746_s5 + $0x54] sm:$0xff]  }
  0x98   : > { %3319 = vmatprep.mubr.msk.bf16.mxu1 %vm453_vm3, %v3621_v60  ;;  %v1335_v60 = vshrl.u32 %v4031_v21, 16  ;;  %v3133_v43 = vcombine.low %v2256_v11, %v2266_v36  ;;  %v2487_v62 = vrot.slane %v2485_v34, 4  ;;  %v2488_v21 = vrot.slane %v4273_v49, 5 }
  0x99   : > { %v1358_v22 = vsel %vm3778_vm2, %v1353_v63, %v4381_v0  ;;  %v1324_v9 = vrot.slane %v1322_v18, 4  ;;  %v1327_v48 = vrot.slane %v1325_v59, 5  ;;  %v4475_v26 = vrot.slane %v1331_v56, 5 }
  0x9a   : > { %v1337_v17 = vrot.slane %v1335_v60, 4  ;;  %v2479_v29 = vsel %vm3929_vm6, %v3152_v4, %v2478_v30  ;;  %v2482_v0 = vsel %vm3929_vm6, %v2480_v53, %v2481_v38  ;;  %v2486_v49 = vsel %vm3929_vm6, %v3153_v33, %v2485_v34  ;;  %v3006_v34 = vld [vmem:[%s3746_s5 + $0x60] sm:$0xf]  ;;  %v3148_v4 = vld [vmem:[%s3746_s5 + $0x54] sm:$0xe]  ;;  %v4647_v38 = vld [vmem:[#allocation6_spill] sm:$0xff] }
  0x9b   : > { %v2492_v6 = vrot.slane %v4282_v10, 5  ;;  %v1341_v19 = vshll.u32 %v4034_v23, 16  ;;  %v2489_v42 = vsel %vm3929_vm6, %v2487_v62, %v2488_v21  ;;  %v1328_v37 = vor.u32 %v1327_v48, %v1324_v9  ;;  %v4649_v48 = vld [vmem:[#allocation3_spill] sm:$0xff] }
  0x9c   : > { %v1338_v46 = vor.u32 %v1337_v17, %v4475_v26  ;;  %v3162_v10 = vcombine.low %v2479_v29, %v2482_v0  ;;  %v2495_v39 = vrot.slane %v4327_v44, 5  ;;  %v1370_v12 = vshrl.u32 %v3003_v57, 16 }
  0x9d   : > { %3400 = vmatmul.mubr.msk.bf16.gmra.mrb[8].mxu0 %vm453_vm3, %v3131_v35  ;;  %v3146_v35 = vld [vmem:[%s3746_s5 + $0x3c] sm:$0xe]  ;;  %v1373_v1 = vshll.u32 %v3003_v57, 16  ;;  %v1379_v20 = vshll.u32 %v4060_v55, 16  ;;  %v2494_v58 = vrot.slane %v2492_v6, 4  ;;  %v1343_v54 = vrot.slane %v1341_v19, 5 }
  0x9e   : > { %3403 = vmatprep.mubr.msk.bf16.mxu0 %vm453_vm3, %v3132_v24  ;;  %v3154_v23 = vrot.slane %v3146_v35, 9  ;;  %v3163_v24 = vcombine.low %v2486_v49, %v2489_v42  ;;  %v1339_v2 = vrot.slane %v1338_v46, 4  ;;  %v2502_v30 = vrot.slane %v4332_v13, 5  ;;  %v3628_v35 = vld [vmem:[%s3746_s5 + $0x60] sm:$0xff]  }
  0x9f   : > { %3320 = vmatmul.mubr.msk.bf16.vlgmr.msra.gmra.mrb[0].mxu1 %vm453_vm3, %v3622_v41  ;;  %v1383_v41 = vshrl.u32 %v4060_v55, 16  ;;  %v1372_v44 = vrot.slane %v1370_v12, 4  ;;  %v1375_v11 = vrot.slane %v1373_v1, 5  ;;  %v1381_v36 = vrot.slane %v1379_v20, 5 }
  0xa0   : > { %3426 = vmatpush3.bf16.msra.mxu1 %v4323_v27  ;;  %3323 = vmatprep.mubr.msk.bf16.mxu1 %vm453_vm3, %v3623_v25  ;;  %v4472_v27 = vcombine.low %v1358_v22, %v1368_v47  ;;  %v2499_v47 = vrot.slane %v4293_v45, 5  ;;  %v3155_v25 = vrot.slane %v3147_v14, 9  ;;  %v1329_v45 = vrot.slane %v1328_v37, 4  ;;  %v4648_v22 = vld [vmem:[#allocation4_spill] sm:$0xff] }
  0xa1   : > { %v1385_v40 = vrot.slane %v1383_v41, 4  ;;  %v2493_v55 = vsel %vm3929_vm6, %v3154_v23, %v2492_v6  ;;  %v2496_v18 = vsel %vm3929_vm6, %v2494_v58, %v2495_v39  ;;  %v2506_v13 = vrot.slane %v4315_v15, 5  ;;  %v3149_v15 = vld [vmem:[%s3746_s5 + $0x60] sm:$0xe] }
  0xa2   : > { %v2501_v16 = vrot.slane %v2499_v47, 4  ;;  %v2500_v59 = vsel %vm3929_vm6, %v3155_v25, %v2499_v47  ;;  %v1334_v56 = vsel %vm3778_vm2, %v1329_v45, %v4475_v26  ;;  %v1344_v60 = vsel %vm3778_vm2, %v1339_v2, %v1343_v54  ;;  %v3150_v54 = vld [vmem:[%s3746_s5 + $0x6c] sm:$0xe] }
  0xa3   : > { %v1394_v53 = vshrl.u32 %v3006_v34, 16  ;;  %v1397_v33 = vshll.u32 %v3006_v34, 16  ;;  %v1407_v62 = vshrl.u32 %v4648_v22, 16  ;;  %v3164_v21 = vcombine.low %v2493_v55, %v2496_v18 }
  0xa4   : > { %v2503_v63 = vsel %vm3929_vm6, %v2501_v16, %v2502_v30  ;;  %v1386_v9 = vor.u32 %v1385_v40, %v1381_v36  ;;  %v1389_v26 = vshll.u32 %v4649_v48, 16  ;;  %v2508_v29 = vrot.slane %v2506_v13, 4 }
  0xa5   : > { %3404 = vmatmul.mubr.msk.bf16.gmra.mrb[12].mxu0 %vm453_vm3, %v3133_v43  ;;  %v1403_v43 = vshll.u32 %v4648_v22, 16  ;;  %v3165_v17 = vcombine.low %v2500_v59, %v2503_v63  ;;  %v2509_v0 = vrot.slane %v4368_v61, 5  ;;  %v3015_v49 = vcombine.low %v1334_v56, %v1344_v60 }
  0xa6   : > { %3409 = vmatprep.mubr.msk.bf16.mxu0 %vm453_vm3, %v3161_v51  ;;  %v2513_v51 = vrot.slane %v4647_v38, 5  ;;  %v3157_v6 = vrot.slane %v3149_v15, 9  ;;  %v2516_v57 = vrot.slane %v4389_v32, 5  ;;  %v1396_v42 = vrot.slane %v1394_v53, 4 }
  0xa7   : > { %3324 = vmatmul.mubr.msk.bf16.gmra.mrb[4].mxu1 %vm453_vm3, %v3624_v50  ;;  %v1376_v50 = vor.u32 %v1375_v11, %v1372_v44  ;;  %v1399_v37 = vrot.slane %v1397_v33, 5  ;;  %v1405_v46 = vrot.slane %v1403_v43, 5  ;;  %v1409_v14 = vrot.slane %v1407_v62, 4 }
  0xa8   : > { %3327 = vmatprep.mubr.msk.bf16.mxu1 %vm453_vm3, %v3625_v8  ;;  %v3156_v8 = vrot.slane %v3148_v4, 9  ;;  %v2515_v19 = vrot.slane %v2513_v51, 4  ;;  %v1391_v23 = vrot.slane %v1389_v26, 5  ;;  %v2510_v32 = vsel %vm3929_vm6, %v2508_v29, %v2509_v0 }
  0xa9   : > { %v1377_v47 = vrot.slane %v1376_v50, 4  ;;  %v2514_v39 = vsel %vm3929_vm6, %v3157_v6, %v2513_v51  ;;  %v2520_v12 = vrot.slane %v4377_v7, 5  ;;  %v1400_v20 = vor.u32 %v1399_v37, %v1396_v42 }
  0xaa   : > { %v2507_v61 = vsel %vm3929_vm6, %v3156_v8, %v2506_v13  ;;  %v2517_v1 = vsel %vm3929_vm6, %v2515_v19, %v2516_v57  ;;  %v1410_v41 = vor.u32 %v1409_v14, %v1405_v46  ;;  %v3158_v16 = vrot.slane %v3150_v54, 9 }
  0xab   : > { %v1382_v25 = vsel %vm3778_vm2, %v1377_v47, %v1381_v36  ;;  %v3166_v45 = vcombine.low %v2507_v61, %v2510_v32  ;;  %v3167_v2 = vcombine.low %v2514_v39, %v2517_v1  ;;  %v2522_v7 = vrot.slane %v2520_v12, 4 }
  0xac   : > { %v2523_v30 = vrot.slane %v4419_v5, 5  ;;  %v1401_v44 = vrot.slane %v1400_v20, 4  ;;  %v1411_v11 = vrot.slane %v1410_v41, 4  ;;  %v2521_v36 = vsel %vm3929_vm6, %v3158_v16, %v2520_v12 }
  0xad   : > { %3410 = vmatmul.mubr.msk.bf16.vlgmr.msra.gmra.mrb[0].mxu0 %vm453_vm3, %v3162_v10  ;;  %v1387_v10 = vrot.slane %v1386_v9, 4 }
  0xae   : > { %3413 = vmatprep.mubr.msk.bf16.mxu0 %vm453_vm3, %v3163_v24  ;;  %v4650_v24 = vld [vmem:[#allocation5_spill] sm:$0xff]  ;;  %v2524_v34 = vsel %vm3929_vm6, %v2522_v7, %v2523_v30  ;;  %v1406_v5 = vsel %vm3778_vm2, %v1401_v44, %v1405_v46 }
  0xaf   : > { %3328 = vmatmul.mubr.msk.bf16.gmra.mrb[8].mxu1 %vm453_vm3, %v3626_v31  ;;  %v1413_v58 = vshll.u32 %v4650_v24, 16  ;;  %v1392_v31 = vsel %vm3778_vm2, %v1387_v10, %v1391_v23  ;;  %v3168_v18 = vcombine.low %v2521_v36, %v2524_v34 }
  0xb0   : > { %3331 = vmatprep.mubr.msk.bf16.mxu1 %vm453_vm3, %v3627_v3  ;;  %v3017_v3 = vcombine.low %v1382_v25, %v1392_v31 }
  0xb1   : > { %v1415_v40 = vrot.slane %v1413_v58, 5 }
  0xb3   : > { %v1416_v55 = vsel %vm3778_vm2, %v1411_v11, %v1415_v40 }
  0xb4   : > { %v3018_v59 = vcombine.low %v1406_v5, %v1416_v55 }
  0xb5   : > { %3414 = vmatmul.mubr.msk.bf16.gmra.mrb[4].mxu0 %vm453_vm3, %v3164_v21 }
  0xb6   : > { %3417 = vmatprep.mubr.msk.bf16.mxu0 %vm453_vm3, %v3165_v17 }
  0xb7   : > { %3332 = vmatmul.mubr.msk.bf16.gmra.mrb[12].mxu1 %vm453_vm3, %v3628_v35 }
  0xb8   : > { %3345 = vmatprep.mubr.msk.bf16.mxu1 %vm453_vm3, %v3015_v49 }
  0xbd   : > { %3418 = vmatmul.mubr.msk.bf16.gmra.mrb[8].mxu0 %vm453_vm3, %v3166_v45 }
  0xbe   : > { %3421 = vmatprep.mubr.msk.bf16.mxu0 %vm453_vm3, %v3167_v2 }
  0xbf   : > { %3346 = vmatmul.mubr.msk.bf16.vlgmr.msra.gmra.mrb[8].mxu1 %vm453_vm3, %v4472_v27 }
  0xc0   : > { %3349 = vmatprep.mubr.msk.bf16.mxu1 %vm453_vm3, %v3017_v3 }
  0xc5   : > { %3422 = vmatmul.mubr.msk.bf16.gmra.mrb[12].mxu0 %vm453_vm3, %v3168_v18 }
  0xc7   : > { %3350 = vmatmul.mubr.msk.bf16.gmra.mrb[12].mxu1 %vm453_vm3, %v3018_v59 }
 0x172   : > { %v3321_v27 = vpop.f32.mrb[0].mxu1 }
 0x173   : > { %v1122_v13 = vpop.f32.mrb[1].mxu1 }
 0x174   : > { %v3322_v56 = vpop.f32.mrb[2].mxu1 }
 0x175   : > { %v1125_v52 = vpop.f32.mrb[3].mxu1 }
 0x17a   : > { %v3325_v60 = vpop.f32.mrb[4].mxu1 }
 0x17b   : > { %v1138_v63 = vpop.f32.mrb[5].mxu1 }
 0x17c   : > { %v3326_v4 = vpop.f32.mrb[6].mxu1 }
 0x17d   : > { %v1141_v38 = vpop.f32.mrb[7].mxu1 }
 0x180   : > { %v3411_v51 = vpop.f32.mrb[0].mxu0 }
 0x181   : > { %v3427_v15 = vadd.f32 %v3411_v51, %v3321_v27  ;;  %v2616_v53 = vpop.f32.mrb[1].mxu0 }
 0x182   : > { %v3428_v33 = vadd.f32 %v2616_v53, %v1122_v13  ;;  %v3412_v22 = vpop.f32.mrb[2].mxu0 }
 0x183   : > { %v2704_v43 = vadd.f32 %v3427_v15, %v4569_v28  ;;  %v3429_v62 = vadd.f32 %v3412_v22, %v3322_v56  ;;  %v2619_v21 = vpop.f32.mrb[3].mxu0 }
 0x184   : > { %v2702_v50 = vadd.f32 %v3428_v33, %v4569_v28  ;;  %v3430_v9 = vadd.f32 %v2619_v21, %v1125_v52 }
 0x185   : > { %v2720_v48 = vmax.f32 %v2704_v43, 0.0  ;;  %v2705_v26 = vadd.f32 %v3429_v62, %v4569_v28 }
 0x186   : > { %v2718_v17 = vmax.f32 %v2702_v50, 0.0  ;;  %v2703_v8 = vadd.f32 %v3430_v9, %v4569_v28 }
 0x187   : > { %v2721_v29 = vmax.f32 %v2705_v26, 0.0 }
 0x188   : > { %v2734_v0 = vmax.f32 %v2718_v17, %v2720_v48  ;;  %v2719_v35 = vmax.f32 %v2703_v8, 0.0  ;;  %v3415_v49 = vpop.f32.mrb[4].mxu0 }
 0x189   : > { %v3431_v6 = vadd.f32 %v3415_v49, %v3325_v60  ;;  %v2632_v19 = vpop.f32.mrb[5].mxu0 }
 0x18a   : > { %2743 = vst.msk [vmem:[#allocation2] sm:$0xff] %vm2742_vm7, %v2734_v0  ;;  %v2735_v57 = vmax.f32 %v2719_v35, %v2721_v29  ;;  %v3432_v42 = vadd.f32 %v2632_v19, %v1138_v63  ;;  %v3416_v37 = vpop.f32.mrb[6].mxu0 }
 0x18b   : > { %v2708_v46 = vadd.f32 %v3431_v6, %v4569_v28  ;;  %v3433_v14 = vadd.f32 %v3416_v37, %v3326_v4  ;;  %v2635_v47 = vpop.f32.mrb[7].mxu0 }
 0x18c   : > { %2744 = vst.msk [vmem:[#allocation2 + $0x8] sm:$0xff] %vm2742_vm7, %v2735_v57  ;;  %v2706_v10 = vadd.f32 %v3432_v42, %v4569_v28  ;;  %v3434_v23 = vadd.f32 %v2635_v47, %v1141_v38 }
 0x18d   : > { %v2724_v61 = vmax.f32 %v2708_v46, 0.0  ;;  %v2709_v32 = vadd.f32 %v3433_v14, %v4569_v28 }
 0x18e   : > { %v2722_v39 = vmax.f32 %v2706_v10, 0.0  ;;  %v2707_v12 = vadd.f32 %v3434_v23, %v4569_v28 }
 0x18f   : > { %v2725_v1 = vmax.f32 %v2709_v32, 0.0 }
 0x190   : > { %v2736_v20 = vmax.f32 %v2722_v39, %v2724_v61  ;;  %v2723_v41 = vmax.f32 %v2707_v12, 0.0  ;;  %v3419_v24 = vpop.f32.mrb[8].mxu0 }
 0x191   : > { %v2648_v54 = vpop.f32.mrb[9].mxu0 }
 0x192   : > { %v3347_v58 = vpop.f32.mrb[8].mxu1  ;;  %2745 = vst.msk [vmem:[#allocation2 + $0x10] sm:$0xff] %vm2742_vm7, %v2736_v20  ;;  %v2737_v25 = vmax.f32 %v2723_v41, %v2725_v1  ;;  %v3420_v2 = vpop.f32.mrb[10].mxu0 }
 0x193   : > { %v3435_v31 = vadd.f32 %v3419_v24, %v3347_v58  ;;  %v1540_v45 = vpop.f32.mrb[9].mxu1  ;;  %v2751_v16 = vld [vmem:[#allocation2] ss:$2 sm:$0xff]  ;;  %v2759_v7 = vld [vmem:[#allocation2 + $0x1] ss:$2 sm:$0xff]  ;;  %v2651_v44 = vpop.f32.mrb[11].mxu0 }
 0x194   : > { %v3436_v30 = vadd.f32 %v2648_v54, %v1540_v45  ;;  %v3348_v3 = vpop.f32.mrb[10].mxu1  ;;  %v2766_v11 = vmax.f32 %v2751_v16, %v2759_v7  ;;  %2746 = vst.msk [vmem:[#allocation2 + $0x18] sm:$0xff] %vm2742_vm7, %v2737_v25 }
 0x195   : > { %v2712_v40 = vadd.f32 %v3435_v31, %v4569_v28  ;;  %v3437_v36 = vadd.f32 %v3420_v2, %v3348_v3  ;;  %v1543_v34 = vpop.f32.mrb[11].mxu1 }
 0x196   : > { %v2710_v5 = vadd.f32 %v3436_v30, %v4569_v28  ;;  %v3438_v55 = vadd.f32 %v2651_v44, %v1543_v34  ;;  %v2770_v18 = vpack.c.bf16 %v2766_v11, %v2766_v11 }
 0x197   : > { %v2728_v59 = vmax.f32 %v2712_v40, 0.0  ;;  %v2713_v27 = vadd.f32 %v3437_v36, %v4569_v28 }
 0x198   : > { %v2726_v13 = vmax.f32 %v2710_v5, 0.0  ;;  %v2711_v56 = vadd.f32 %v3438_v55, %v4569_v28  ;;  %2775 = vst.msk [vmem:[%s4589_s4] sm:$0xf] %vm2774_vm8, %v2770_v18  ;;  %v3423_v60 = vpop.f32.mrb[12].mxu0 }
 0x199   : > { %v2729_v52 = vmax.f32 %v2713_v27, 0.0  ;;  %v2664_v51 = vpop.f32.mrb[13].mxu0 }
 0x19a   : > { %v2738_v63 = vmax.f32 %v2726_v13, %v2728_v59  ;;  %v2727_v4 = vmax.f32 %v2711_v56, 0.0  ;;  %v3351_v38 = vpop.f32.mrb[12].mxu1  ;;  %v3424_v33 = vpop.f32.mrb[14].mxu0 }
 0x19b   : > { %v3439_v15 = vadd.f32 %v3423_v60, %v3351_v38  ;;  %v1556_v53 = vpop.f32.mrb[13].mxu1  ;;  %v2753_v22 = vld [vmem:[#allocation2 + $0x10] ss:$2 sm:$0xff]  ;;  %v2761_v43 = vld [vmem:[#allocation2 + $0x11] ss:$2 sm:$0xff]  ;;  %v2667_v9 = vpop.f32.mrb[15].mxu0 }
 0x19c   : > { %2747 = vst.msk [vmem:[#allocation2 + $0x20] sm:$0xff] %vm2742_vm7, %v2738_v63  ;;  %v2739_v62 = vmax.f32 %v2727_v4, %v2729_v52  ;;  %v3440_v21 = vadd.f32 %v2664_v51, %v1556_v53  ;;  %v3352_v50 = vpop.f32.mrb[14].mxu1  ;;  %v2767_v48 = vmax.f32 %v2753_v22, %v2761_v43 }
 0x19d   : > { %v2716_v26 = vadd.f32 %v3439_v15, %v4569_v28  ;;  %v3441_v17 = vadd.f32 %v3424_v33, %v3352_v50  ;;  %v1559_v8 = vpop.f32.mrb[15].mxu1 }
 0x19e   : > { %2748 = vst.msk [vmem:[#allocation2 + $0x28] sm:$0xff] %vm2742_vm7, %v2739_v62  ;;  %v2714_v29 = vadd.f32 %v3440_v21, %v4569_v28  ;;  %v3442_v0 = vadd.f32 %v2667_v9, %v1559_v8  ;;  %v2771_v35 = vpack.c.bf16 %v2767_v48, %v2767_v48 }
 0x19f   : > { %v2732_v49 = vmax.f32 %v2716_v26, 0.0  ;;  %v2717_v6 = vadd.f32 %v3441_v17, %v4569_v28 }
 0x1a0   : > { %v2730_v19 = vmax.f32 %v2714_v29, 0.0  ;;  %v2715_v57 = vadd.f32 %v3442_v0, %v4569_v28  ;;  %2776 = vst.msk [vmem:[%s4589_s4 + $0x4] sm:$0xf] %vm2774_vm8, %v2771_v35 }
 0x1a1   : > { %v2733_v42 = vmax.f32 %v2717_v6, 0.0 }
 0x1a2   : > { %v2740_v37 = vmax.f32 %v2730_v19, %v2732_v49  ;;  %v2731_v46 = vmax.f32 %v2715_v57, 0.0 }
 0x1a4   : > { %2749 = vst.msk [vmem:[#allocation2 + $0x30] sm:$0xff] %vm2742_vm7, %v2740_v37  ;;  %v2741_v14 = vmax.f32 %v2731_v46, %v2733_v42 }
 0x1a5   : > { %v2755_v47 = vld [vmem:[#allocation2 + $0x20] ss:$2 sm:$0xff]  ;;  %v2763_v10 = vld [vmem:[#allocation2 + $0x21] ss:$2 sm:$0xff] }
 0x1a6   : > { %v2768_v23 = vmax.f32 %v2755_v47, %v2763_v10  ;;  %2750 = vst.msk [vmem:[#allocation2 + $0x38] sm:$0xff] %vm2742_vm7, %v2741_v14 }
 0x1a8   : > { %v2772_v61 = vpack.c.bf16 %v2768_v23, %v2768_v23 }
 0x1aa   : > { %2777 = vst.msk [vmem:[%s4589_s4 + $0x8] sm:$0xf] %vm2774_vm8, %v2772_v61 }
 0x1ad   : > { %v2757_v32 = vld [vmem:[#allocation2 + $0x30] ss:$2 sm:$0xff]  ;;  %v2765_v39 = vld [vmem:[#allocation2 + $0x31] ss:$2 sm:$0xff] }
 0x1ae   : > { %v2769_v28 = vmax.f32 %v2757_v32, %v2765_v39 }
 0x1b0   : > { %v2773_v12 = vpack.c.bf16 %v2769_v28, %v2769_v28 }
 0x1b2   : > { %2778 = vst.msk [vmem:[%s4589_s4 + $0xc] sm:$0xf] %vm2774_vm8, %v2773_v12 }
 0x1b3 PF: > { %s13_s16 = sadd.s32 1, %s3668_s16   ;;  %s4651_s12 = smov %s3660_s14 }
 0x1b4   : > { %p10_p7 = scmp.ge.s32.totalorder %s13_s16, 6   ;;  %s4652_s13 = smov %s3664_s15 }
 0x1b5   : > { %s4653_s14 = smov %s4656_s17  ;;  %s4654_s15 = smov %s4660_s18 }
 0x1b6   :  { %12 = sbr.rel (!%p10_p7) target bundleno = 3 (0x3), region = 80 }

// kernel: location_cnn_forward.3
= control target key start
LH: loop header
LB: loop body
LE: loop exit
PB: predicated region body
PF: predicated region fallthrough
CT: control target
= control target key end

     0   :  { %s6277_s12 = smov 0   ;;  %s6279_s13 = smov 0   ;;  %s8106_s0 = inlined_call_operand.vmem [shape: bf16[2,34,34,3], index: 0, kind: input, shape index: {}]   ;;  %s8107_s1 = inlined_call_operand.vmem [shape: bf16[9,3,16], index: 1, kind: input, shape index: {}]   ;;  %s8108_s2 = inlined_call_operand.vmem [shape: f32[1,16], index: 2, kind: input, shape index: {}]   ;;  %s8109_s3 = inlined_call_operand.vmem [shape: bf16[2,16,16,16], index: 3, kind: output, shape index: {}]  }
   0x1   :  { %s6281_s14 = smov 0   ;;  %s6283_s15 = smov 0  }
   0x2   :  { %s6285_s16 = smov 0  }
   0x3 LB: > { %s22_s17 = sadd.s32 1, %s6246_s14  ;;  %s25_s18 = sadd.s32 1, %s6250_s15  ;;  %s6254_s16 = sphi %s6285_s16, %s13_s16   ;;  %s6250_s15 = sphi %s6283_s15, %s8187_s15   ;;  %s6246_s14 = sphi %s6281_s14, %s8186_s14   ;;  %s6242_s13 = sphi %s6279_s13, %s8185_s13   ;;  %s6238_s12 = sphi %s6277_s12, %s8184_s12  }
   0x4   : > { %p23_p0 = scmp.ge.s32.totalorder %s22_s17, 4  ;;  %p4857_p1 = scmp.ge.s32.totalorder %s6254_s16, 1 }
   0x5   : > { %p151_p2 = scmp.lt.s32.totalorder %s6254_s16, 9 }
   0x6   : > { %s8189_s17 = smov (%p23_p0, %s22_s17), 0  ;;  %s8191_s18 = smov (!%p23_p0, %s25_s18), %s6250_s15 }
   0x7   : > { %p152_p3 = pnand %p4857_p1, %p151_p2  ;;  %p27_p4 = scmp.ge.s32.totalorder %s8191_s18, 2 }
   0x9   : > { %s8193_s18 = smov (%p27_p4, %s8191_s18), 0  ;;  %155 = sbr.rel (%p152_p3) target bundleno = 598 (0x256), region = 32 }
  0x10   : > { %v4866_v0 = vld [vmem:[%s8107_s1 + $0x2] sm:$0x3]  ;;  %vm696_vm0 = vcmask 1040384   ;;  %vm697_vm1 = vcmask 1041408   ;;  %p180_p5 = scmp.lt.s32.totalorder %s6242_s13, 1  ;;  %v6256_v1 = vmov 65535  }
  0x11   : > { %v698_v2 = vsel %vm696_vm0, 4294967295, %v6256_v1  ;;  %v5079_v3 = vld [vmem:[%s8107_s1 + $0x8] sm:$0x3]  ;;  %s5361_s23 = smul.u32 160, %s6238_s12  ;;  %v233_v7 = vld [vmem:[%s8107_s1] sm:$0x3] }
  0x12   : > { %v6315_v4 = vsel %vm697_vm1, %v698_v2, 0  ;;  %s8195_s13 = smov (!%p180_p5, %s6242_s13), 1  ;;  %v5128_v8 = vld [vmem:[%s8107_s1 + $0xa] sm:$0x3]  ;;  %vm242_vm2 = vsmask.f32 3328 }
  0x13   : > { %v701_v5 = vand.u32 %v4866_v0, %v6315_v4  ;;  %v6321_v6 = vand.u32 %v5079_v3, %v6315_v4  ;;  %s6087_s28 = smul.u32 680, %s8195_s13  ;;  %v6332_v9 = vand.u32 %v6315_v4, %v233_v7  ;;  %v6335_v10 = vand.u32 %v5128_v8, %v6315_v4  ;;  %v5195_v11 = vld [vmem:[%s8107_s1 + $0xc] sm:$0x3]  ;;  %v4939_v37 = vld [vmem:[%s8107_s1 + $0x4] sm:$0x3]  ;;  %s4859_s25 = sshll.u32 %s6238_s12, 2 }
  0x14   : > { %vm243_vm3 = vsmask.f32 7440  ;;  %vm647_vm4 = vcmask 23552   ;;  %v6357_v23 = vand.u32 %v5195_v11, %v6315_v4  ;;  %v6378_v52 = vand.u32 %v4939_v37, %v6315_v4  ;;  %p8015_p6 = scmp.lt.s32.totalorder %s4859_s25, 15  ;;  %s4861_s27 = sshll.u32 %s8195_s13, 5 }
  0x15   : > { %8125 = vst [vmem:[#allocation3_spill] sm:$0xff] %v6321_v6  ;;  %5523 = vmatprep.subr.bf16.mxu1 %v701_v5  ;;  %5659 = vmatprep.subr.bf16.mxu0 %v6321_v6  ;;  %s184_s4 = scalar_lea.vmem %s8106_s0, %s6087_s28  ;;  %vm6369_vm5 = vmor %vm242_vm2, %vm243_vm3  ;;  %vm1180_vm6 = vcmask 1042432   ;;  %vm1181_vm7 = vcmask 1046532   ;;  %vm4656_vm9 = vcmask 130048   ;;  %vm4744_vm10 = vcmask 125952  }
  0x16   : > { %5524 = vmatpush3.bf16.msra.mxu1 %v701_v5  ;;  %5660 = vmatpush3.bf16.msra.mxu0 %v6321_v6  ;;  %s6342_s5 = scalar_lea.vmem %s184_s4, %s5361_s23  ;;  %vm6587_vm8 = vmor %vm1180_vm6, %vm1181_vm7  ;;  %s8197_s25 = smov (!%p8015_p6, %s4859_s25), 15 }
  0x17   : > { %5557 = vmatprep.subr.bf16.mxu1 %v6332_v9  ;;  %5693 = vmatprep.subr.bf16.mxu0 %v6335_v10  ;;  %v201_v12 = vld [vmem:[%s6342_s5] sm:$0xf]  ;;  %v202_v13 = vld [vmem:[%s6342_s5 + $0x4] sm:$0xf]  ;;  %v203_v14 = vld [vmem:[%s6342_s5 + $0x8] sm:$0xf] }
  0x18   : > { %v246_v15 = vshrl.u32 %v201_v12, 16  ;;  %v249_v16 = vshll.u32 %v201_v12, 16  ;;  %v255_v17 = vshll.u32 %v202_v13, 16  ;;  %v259_v18 = vshrl.u32 %v202_v13, 16  ;;  %v5039_v21 = vld [vmem:[%s6342_s5 + $0x14] sm:$0xf] }
  0x19   : > { %v265_v19 = vshll.u32 %v203_v14, 16  ;;  %v269_v20 = vshrl.u32 %v203_v14, 16  ;;  %v6354_v22 = vld [vmem:[%s6342_s5 + $0x18] sm:$0xf]  ;;  %v6360_v28 = vld [vmem:[%s6342_s5 + $0x1c] sm:$0xf] }
  0x1a   : > { %v248_v24 = vrot.slane %v246_v15, 4  ;;  %v251_v25 = vrot.slane %v249_v16, 5  ;;  %v257_v26 = vrot.slane %v255_v17, 5  ;;  %v261_v27 = vrot.slane %v259_v18, 4  ;;  %v204_v47 = vld [vmem:[%s6342_s5 + $0xc] sm:$0xf] }
  0x1b   : > { %v267_v29 = vrot.slane %v265_v19, 5  ;;  %v271_v30 = vrot.slane %v269_v20, 4  ;;  %v1984_v31 = vshrl.u32 %v5039_v21, 16  ;;  %v1987_v32 = vshll.u32 %v5039_v21, 16  ;;  %v234_v51 = vld [vmem:[%s6342_s5 + $0x10] sm:$0x1] }
  0x1c   : > { %v252_v33 = vor.u32 %v251_v25, %v248_v24  ;;  %v262_v34 = vor.u32 %v261_v27, %v257_v26  ;;  %v1993_v35 = vshll.u32 %v6354_v22, 16  ;;  %v1997_v36 = vshrl.u32 %v6354_v22, 16  ;;  %v6386_v1 = vld [vmem:[%s6342_s5 + $0x20] sm:$0xf]  ;;  %v6397_v8 = vld [vmem:[%s6342_s5 + $0x24] sm:$0x1] }
  0x1d   : > { %v272_v39 = vor.u32 %v271_v30, %v267_v29  ;;  %v1986_v40 = vrot.slane %v1984_v31, 4  ;;  %v1989_v41 = vrot.slane %v1987_v32, 5  ;;  %v2003_v42 = vshll.u32 %v6360_v28, 16  ;;  %v205_v15 = vld [vmem:[%s6342_s5 + $0x14] sm:$0xf]  ;;  %s4860_s12 = sshll.u32 %s8197_s25, 1 }
  0x1e   : > { %v253_v43 = vrot.slane %v252_v33, 4  ;;  %v263_v44 = vrot.slane %v262_v34, 4  ;;  %v1995_v45 = vrot.slane %v1993_v35, 5  ;;  %v1999_v46 = vrot.slane %v1997_v36, 4  ;;  %v207_v31 = vld [vmem:[%s6342_s5 + $0x1c] sm:$0xf]  ;;  %s192_s28 = sadd.s32 %s4861_s27, %s4860_s12 }
  0x1f   : > { %v1990_v48 = vor.u32 %v1989_v41, %v1986_v40  ;;  %v2005_v49 = vrot.slane %v2003_v42, 5  ;;  %v2007_v50 = vshrl.u32 %v6360_v28, 16  ;;  %v273_v55 = vrot.slane %v272_v39, 4  ;;  %v5044_v37 = vld [vmem:[%s6342_s5 + $0x28] sm:$0xf]  ;;  %s4862_s29 = sshll.u32 %s192_s28, 2 }
  0x20   : > { %v258_v53 = vsel %vm6369_vm5, %v253_v43, %v257_v26  ;;  %v268_v54 = vsel %vm6369_vm5, %v263_v44, %v267_v29  ;;  %v2000_v56 = vor.u32 %v1999_v46, %v1995_v45  ;;  %v2682_v60 = vrot.slane %v6360_v28, 5  ;;  %v206_v26 = vld [vmem:[%s6342_s5 + $0x18] sm:$0xf]  ;;  %s8040_s4 = scalar_lea.vmem %s8109_s3, %s4862_s29 }
  0x21   : > { %v4867_v57 = vcombine.low %v258_v53, %v268_v54  ;;  %v1991_v58 = vrot.slane %v1990_v48, 4  ;;  %v2009_v59 = vrot.slane %v2007_v50, 4  ;;  %v275_v62 = vshll.u32 %v204_v47, 16 }
  0x22   : > { %v2001_v61 = vrot.slane %v2000_v56, 4  ;;  %v279_v63 = vshrl.u32 %v204_v47, 16  ;;  %v285_v0 = vshll.u32 %v234_v51, 16  ;;  %v2679_v5 = vrot.slane %v6354_v22, 5  ;;  %v6422_v47 = vld [vmem:[%s6342_s5 + $0x2c] sm:$0xf] }
  0x23   : > { %5525 = vmatprep.mubr.msk.bf16.mxu1 %vm647_vm4, %v4867_v57  ;;  %v1996_v2 = vsel %vm6369_vm5, %v1991_v58, %v1995_v45  ;;  %v2010_v3 = vor.u32 %v2009_v59, %v2005_v49  ;;  %v6394_v7 = vrot.slane %v2682_v60, 4  ;;  %v277_v12 = vrot.slane %v275_v62, 5  ;;  %v6425_v56 = vld [vmem:[%s6342_s5 + $0x30] sm:$0xf] }
  0x24   : > { %v2006_v11 = vsel %vm6369_vm5, %v2001_v61, %v2005_v49  ;;  %v281_v13 = vrot.slane %v279_v63, 4  ;;  %v287_v14 = vrot.slane %v285_v0, 5  ;;  %v2013_v18 = vshll.u32 %v6386_v1, 16  ;;  %v208_v63 = vld [vmem:[%s6342_s5 + $0x20] sm:$0xf] }
  0x25   : > { %v2011_v16 = vrot.slane %v2010_v3, 4  ;;  %v5080_v17 = vcombine.low %v1996_v2, %v2006_v11  ;;  %v2017_v19 = vshrl.u32 %v6386_v1, 16  ;;  %v278_v20 = vsel %vm6369_vm5, %v273_v55, %v277_v12 }
  0x26   : > { %v282_v21 = vor.u32 %v281_v13, %v277_v12  ;;  %v2023_v24 = vshll.u32 %v6397_v8, 16  ;;  %v2685_v25 = vrot.slane %v6386_v1, 5  ;;  %v2015_v27 = vrot.slane %v2013_v18, 5 }
  0x27   : > { %5661 = vmatprep.mubr.msk.bf16.mxu0 %vm647_vm4, %v5080_v17  ;;  %v2019_v29 = vrot.slane %v2017_v19, 4  ;;  %v2688_v30 = vrot.slane %v6397_v8, 5  ;;  %v290_v32 = vshrl.u32 %v205_v15, 16  ;;  %v293_v36 = vshll.u32 %v205_v15, 16  ;;  %v235_v15 = vld [vmem:[%s6342_s5 + $0x24] sm:$0x1] }
  0x28   : > { %v283_v33 = vrot.slane %v282_v21, 4  ;;  %v2025_v34 = vrot.slane %v2023_v24, 5  ;;  %v6414_v35 = vrot.slane %v2685_v25, 4  ;;  %v2016_v39 = vsel %vm6369_vm5, %v2011_v16, %v2015_v27 }
  0x29   : > { %v2020_v40 = vor.u32 %v2019_v29, %v2015_v27  ;;  %v292_v41 = vrot.slane %v290_v32, 4  ;;  %v299_v42 = vshll.u32 %v206_v26, 16  ;;  %v295_v44 = vrot.slane %v293_v36, 5  ;;  %v6442_v27 = vld [vmem:[%s6342_s5 + $0x34] sm:$0xf] }
  0x2a   : > { %v288_v43 = vsel %vm6369_vm5, %v283_v33, %v287_v14  ;;  %v303_v45 = vshrl.u32 %v206_v26, 16  ;;  %v309_v46 = vshll.u32 %v207_v31, 16  ;;  %v2028_v51 = vshrl.u32 %v5044_v37, 16 }
  0x2b   : > { %v4868_v48 = vcombine.low %v278_v20, %v288_v43  ;;  %v2021_v49 = vrot.slane %v2020_v40, 4  ;;  %v301_v50 = vrot.slane %v299_v42, 5  ;;  %v296_v53 = vor.u32 %v295_v44, %v292_v41  ;;  %v209_v44 = vld [vmem:[%s6342_s5 + $0x28] sm:$0xf] }
  0x2c   : > { %v305_v54 = vrot.slane %v303_v45, 4  ;;  %v311_v55 = vrot.slane %v309_v46, 5  ;;  %v2031_v57 = vshll.u32 %v5044_v37, 16  ;;  %v2030_v59 = vrot.slane %v2028_v51, 4 }
  0x2d   : > { %5526 = vmatmul.mubr.msk.bf16.vlgmr.msra.gmra.mrb[0].mxu1 %vm647_vm4, %v4868_v48  ;;  %v2026_v58 = vsel %vm6369_vm5, %v2021_v49, %v2025_v34  ;;  %v2037_v61 = vshll.u32 %v6422_v47, 16  ;;  %v2041_v62 = vshrl.u32 %v6422_v47, 16  ;;  %v297_v2 = vrot.slane %v296_v53, 4 }
  0x2e   : > { %5558 = vmatpush3.bf16.msra.mxu1 %v6332_v9  ;;  %v5081_v0 = vcombine.low %v2016_v39, %v2026_v58  ;;  %v306_v3 = vor.u32 %v305_v54, %v301_v50  ;;  %v2033_v11 = vrot.slane %v2031_v57, 5  ;;  %v2047_v14 = vshll.u32 %v6425_v56, 16  ;;  %v6448_v39 = vld [vmem:[%s6342_s5 + $0x38] sm:$0x1] }
  0x2f   : > { %v2039_v12 = vrot.slane %v2037_v61, 5  ;;  %v2043_v13 = vrot.slane %v2041_v62, 4  ;;  %v313_v16 = vshrl.u32 %v207_v31, 16  ;;  %5591 = vmatprep.subr.bf16.mxu1 %v6378_v52  ;;  %v302_v17 = vsel %vm6369_vm5, %v297_v2, %v301_v50  ;;  %v210_v50 = vld [vmem:[%s6342_s5 + $0x2c] sm:$0xf] }
  0x30   : > { %5662 = vmatmul.mubr.msk.bf16.vlgmr.msra.gmra.mrb[0].mxu0 %vm647_vm4, %v5081_v0  ;;  %v307_v18 = vrot.slane %v306_v3, 4  ;;  %v2034_v9 = vor.u32 %v2033_v11, %v2030_v59  ;;  %v319_v19 = vshll.u32 %v208_v63, 16  ;;  %v2049_v21 = vrot.slane %v2047_v14, 5  ;;  %v211_v61 = vld [vmem:[%s6342_s5 + $0x30] sm:$0xf] }
  0x31   : > { %5694 = vmatpush3.bf16.msra.mxu0 %v6335_v10  ;;  %v2044_v20 = vor.u32 %v2043_v13, %v2039_v12  ;;  %v315_v24 = vrot.slane %v313_v16, 4  ;;  %v323_v26 = vshrl.u32 %v208_v63, 16  ;;  %v329_v33 = vshll.u32 %v235_v15, 16  ;;  %v5049_v11 = vld [vmem:[%s6342_s5 + $0x3c] sm:$0xf] }
  0x32   : > { %v312_v29 = vsel %vm6369_vm5, %v307_v18, %v311_v55  ;;  %v2035_v31 = vrot.slane %v2034_v9, 4  ;;  %v321_v32 = vrot.slane %v319_v19, 5  ;;  %5727 = vmatprep.subr.bf16.mxu0 %v6357_v23  ;;  %v2051_v42 = vshrl.u32 %v6425_v56, 16  ;;  %v6469_v16 = vld [vmem:[%s6342_s5 + $0x40] sm:$0xf] }
  0x33   : > { %v4869_v34 = vcombine.low %v302_v17, %v312_v29  ;;  %v2045_v36 = vrot.slane %v2044_v20, 4  ;;  %v316_v37 = vor.u32 %v315_v24, %v311_v55  ;;  %v325_v10 = vrot.slane %v323_v26, 4 }
  0x34   : > { %v2040_v40 = vsel %vm6369_vm5, %v2035_v31, %v2039_v12  ;;  %v331_v41 = vrot.slane %v329_v33, 5  ;;  %v2057_v43 = vshll.u32 %v6442_v27, 16  ;;  %v2061_v49 = vshrl.u32 %v6442_v27, 16 }
  0x35   : > { %5529 = vmatprep.mubr.msk.bf16.mxu1 %vm647_vm4, %v4869_v34  ;;  %v2050_v45 = vsel %vm6369_vm5, %v2045_v36, %v2049_v21  ;;  %v317_v46 = vrot.slane %v316_v37, 4  ;;  %v326_v48 = vor.u32 %v325_v10, %v321_v32  ;;  %v2053_v53 = vrot.slane %v2051_v42, 4 }
  0x36   : > { %v5082_v51 = vcombine.low %v2040_v40, %v2050_v45  ;;  %v2059_v54 = vrot.slane %v2057_v43, 5  ;;  %v2067_v55 = vshll.u32 %v6448_v39, 16  ;;  %v2063_v59 = vrot.slane %v2061_v49, 4 }
  0x37   : > { %v322_v57 = vsel %vm6369_vm5, %v317_v46, %v321_v32  ;;  %v327_v58 = vrot.slane %v326_v48, 4  ;;  %v334_v62 = vshrl.u32 %v209_v44, 16  ;;  %v2054_v63 = vor.u32 %v2053_v53, %v2049_v21  ;;  %v6475_v32 = vld [vmem:[%s6342_s5 + $0x44] sm:$0xf] }
  0x38   : > { %5665 = vmatprep.mubr.msk.bf16.mxu0 %vm647_vm4, %v5082_v51  ;;  %v2069_v0 = vrot.slane %v2067_v55, 5  ;;  %v337_v2 = vshll.u32 %v209_v44, 16  ;;  %v343_v3 = vshll.u32 %v210_v50, 16  ;;  %v2064_v13 = vor.u32 %v2063_v59, %v2059_v54 }
  0x39   : > { %v332_v12 = vsel %vm6369_vm5, %v327_v58, %v331_v41  ;;  %v336_v14 = vrot.slane %v334_v62, 4  ;;  %v347_v15 = vshrl.u32 %v210_v50, 16  ;;  %v2055_v18 = vrot.slane %v2054_v63, 4  ;;  %v212_v41 = vld [vmem:[%s6342_s5 + $0x34] sm:$0xf] }
  0x3a   : > { %v4870_v17 = vcombine.low %v322_v57, %v332_v12  ;;  %v339_v9 = vrot.slane %v337_v2, 5  ;;  %v345_v19 = vrot.slane %v343_v3, 5  ;;  %v2065_v20 = vrot.slane %v2064_v13, 4 }
  0x3b   : > { %v349_v21 = vrot.slane %v347_v15, 4  ;;  %v353_v24 = vshll.u32 %v211_v61, 16  ;;  %v2072_v26 = vshrl.u32 %v5049_v11, 16  ;;  %v2060_v29 = vsel %vm6369_vm5, %v2055_v18, %v2059_v54  ;;  %v236_v54 = vld [vmem:[%s6342_s5 + $0x38] sm:$0x1] }
  0x3c   : > { %5530 = vmatmul.mubr.msk.bf16.gmra.mrb[4].mxu1 %vm647_vm4, %v4870_v17  ;;  %v340_v31 = vor.u32 %v339_v9, %v336_v14  ;;  %v2075_v33 = vshll.u32 %v5049_v11, 16  ;;  %v2081_v34 = vshll.u32 %v6469_v16, 16  ;;  %v2070_v36 = vsel %vm6369_vm5, %v2065_v20, %v2069_v0  ;;  %v6490_v0 = vld [vmem:[%s6342_s5 + $0x48] sm:$0xf]  ;;  %v6493_v15 = vld [vmem:[%s6342_s5 + $0x4c] sm:$0x1] }
  0x3d   : > { %v350_v37 = vor.u32 %v349_v21, %v345_v19  ;;  %v355_v10 = vrot.slane %v353_v24, 5  ;;  %v2074_v40 = vrot.slane %v2072_v26, 4  ;;  %v5083_v42 = vcombine.low %v2060_v29, %v2070_v36  ;;  %v6502_v21 = vld [vmem:[%s6342_s5 + $0x3c] sm:$0xf] }
  0x3e   : > { %v341_v43 = vrot.slane %v340_v31, 4  ;;  %v2077_v44 = vrot.slane %v2075_v33, 5  ;;  %v2083_v45 = vrot.slane %v2081_v34, 5  ;;  %v2085_v48 = vshrl.u32 %v6469_v16, 16 }
  0x3f   : > { %v351_v46 = vrot.slane %v350_v37, 4  ;;  %v2091_v49 = vshll.u32 %v6475_v32, 16  ;;  %v357_v50 = vshrl.u32 %v211_v61, 16  ;;  %5666 = vmatmul.mubr.msk.bf16.gmra.mrb[4].mxu0 %vm647_vm4, %v5083_v42  ;;  %v363_v55 = vshll.u32 %v212_v41, 16  ;;  %v6510_v42 = vld [vmem:[%s6342_s5 + $0x40] sm:$0xf] }
  0x40   : > { %v346_v51 = vsel %vm6369_vm5, %v341_v43, %v345_v19  ;;  %v2078_v53 = vor.u32 %v2077_v44, %v2074_v40  ;;  %v367_v57 = vshrl.u32 %v212_v41, 16  ;;  %v2087_v59 = vrot.slane %v2085_v48, 4  ;;  %v6513_v43 = vld [vmem:[%s6342_s5 + $0x44] sm:$0xf] }
  0x41   : > { %v356_v58 = vsel %vm6369_vm5, %v351_v46, %v355_v10  ;;  %v2093_v62 = vrot.slane %v2091_v49, 5  ;;  %v359_v63 = vrot.slane %v357_v50, 4  ;;  %v365_v3 = vrot.slane %v363_v55, 5  ;;  %v5054_v50 = vld [vmem:[%s6342_s5 + $0x50] sm:$0xf] }
  0x42   : > { %v4871_v61 = vcombine.low %v346_v51, %v356_v58  ;;  %v2079_v2 = vrot.slane %v2078_v53, 4  ;;  %v369_v11 = vrot.slane %v367_v57, 4  ;;  %v2088_v12 = vor.u32 %v2087_v59, %v2083_v45 }
  0x43   : > { %v360_v13 = vor.u32 %v359_v63, %v355_v10  ;;  %v373_v14 = vshll.u32 %v236_v54, 16  ;;  %v2095_v17 = vshrl.u32 %v6475_v32, 16  ;;  %v2101_v19 = vshll.u32 %v6490_v0, 16  ;;  %v6525_v63 = vld [vmem:[%s6342_s5 + $0x54] sm:$0xf] }
  0x44   : > { %5533 = vmatprep.mubr.msk.bf16.mxu1 %vm647_vm4, %v4871_v61  ;;  %v2084_v18 = vsel %vm6369_vm5, %v2079_v2, %v2083_v45  ;;  %v370_v9 = vor.u32 %v369_v11, %v365_v3  ;;  %v2105_v20 = vshrl.u32 %v6490_v0, 16  ;;  %v2089_v24 = vrot.slane %v2088_v12, 4 }
  0x45   : > { %v361_v26 = vrot.slane %v360_v13, 4  ;;  %v375_v29 = vrot.slane %v373_v14, 5  ;;  %v2097_v31 = vrot.slane %v2095_v17, 4  ;;  %v2103_v34 = vrot.slane %v2101_v19, 5 }
  0x46   : > { %v371_v33 = vrot.slane %v370_v9, 4  ;;  %v2107_v36 = vrot.slane %v2105_v20, 4  ;;  %v2111_v37 = vshll.u32 %v6493_v15, 16  ;;  %v2094_v10 = vsel %vm6369_vm5, %v2089_v24, %v2093_v62  ;;  %v6536_v9 = vld [vmem:[%s6342_s5 + $0x48] sm:$0xf] }
  0x47   : > { %v366_v40 = vsel %vm6369_vm5, %v361_v26, %v365_v3  ;;  %v2098_v41 = vor.u32 %v2097_v31, %v2093_v62  ;;  %v378_v44 = vshrl.u32 %v6502_v21, 16  ;;  %v5084_v45 = vcombine.low %v2084_v18, %v2094_v10  ;;  %v6531_v3 = vld [vmem:[%s6342_s5 + $0x58] sm:$0xf]  ;;  %v237_v10 = vld [vmem:[%s6342_s5 + $0x4c] sm:$0x1] }
  0x48   : > { %v376_v46 = vsel %vm6369_vm5, %v371_v33, %v375_v29  ;;  %v2108_v48 = vor.u32 %v2107_v36, %v2103_v34  ;;  %v2113_v49 = vrot.slane %v2111_v37, 5  ;;  %v381_v55 = vshll.u32 %v6502_v21, 16 }
  0x49   : > { %v4872_v51 = vcombine.low %v366_v40, %v376_v46  ;;  %v2099_v53 = vrot.slane %v2098_v41, 4  ;;  %v380_v54 = vrot.slane %v378_v44, 4  ;;  %5669 = vmatprep.mubr.msk.bf16.mxu0 %vm647_vm4, %v5084_v45  ;;  %v387_v58 = vshll.u32 %v6510_v42, 16 }
  0x4a   : > { %v2109_v57 = vrot.slane %v2108_v48, 4  ;;  %v391_v59 = vshrl.u32 %v6510_v42, 16  ;;  %v397_v62 = vshll.u32 %v6513_v43, 16  ;;  %v383_v2 = vrot.slane %v381_v55, 5 }
  0x4b   : > { %5534 = vmatmul.mubr.msk.bf16.gmra.mrb[8].mxu1 %vm647_vm4, %v4872_v51  ;;  %v2104_v61 = vsel %vm6369_vm5, %v2099_v53, %v2103_v34  ;;  %v2116_v11 = vshrl.u32 %v5054_v50, 16  ;;  %v2119_v12 = vshll.u32 %v5054_v50, 16  ;;  %v389_v14 = vrot.slane %v387_v58, 5 }
  0x4c   : > { %v2114_v13 = vsel %vm6369_vm5, %v2109_v57, %v2113_v49  ;;  %v393_v17 = vrot.slane %v391_v59, 4  ;;  %v399_v18 = vrot.slane %v397_v62, 5  ;;  %v384_v20 = vor.u32 %v383_v2, %v380_v54  ;;  %v6548_v54 = vld [vmem:[%s6342_s5 + $0x5c] sm:$0xf]  ;;  %v6554_v62 = vld [vmem:[%s6342_s5 + $0x60] sm:$0x1] }
  0x4d   : > { %v5085_v19 = vcombine.low %v2104_v61, %v2114_v13  ;;  %v2118_v24 = vrot.slane %v2116_v11, 4  ;;  %v2121_v26 = vrot.slane %v2119_v12, 5  ;;  %v2125_v31 = vshll.u32 %v6525_v63, 16  ;;  %v6560_v13 = vld [vmem:[%s6342_s5 + $0x50] sm:$0xf] }
  0x4e   : > { %v394_v29 = vor.u32 %v393_v17, %v389_v14  ;;  %v2129_v33 = vshrl.u32 %v6525_v63, 16  ;;  %v2135_v34 = vshll.u32 %v6531_v3, 16  ;;  %v385_v36 = vrot.slane %v384_v20, 4 }
  0x4f   : > { %5670 = vmatmul.mubr.msk.bf16.gmra.mrb[8].mxu0 %vm647_vm4, %v5085_v19  ;;  %v2122_v37 = vor.u32 %v2121_v26, %v2118_v24  ;;  %v401_v40 = vshrl.u32 %v6513_v43, 16  ;;  %v407_v41 = vshll.u32 %v6536_v9, 16  ;;  %v2127_v45 = vrot.slane %v2125_v31, 5  ;;  %v6564_v24 = vld [vmem:[%s6342_s5 + $0x54] sm:$0xf] }
  0x50   : > { %v395_v44 = vrot.slane %v394_v29, 4  ;;  %v2131_v46 = vrot.slane %v2129_v33, 4  ;;  %v2137_v48 = vrot.slane %v2135_v34, 5  ;;  %v390_v49 = vsel %vm6369_vm5, %v385_v36, %v389_v14  ;;  %v6570_v33 = vld [vmem:[%s6342_s5 + $0x58] sm:$0xf] }
  0x51   : > { %v2123_v50 = vrot.slane %v2122_v37, 4  ;;  %v403_v51 = vrot.slane %v401_v40, 4  ;;  %v409_v53 = vrot.slane %v407_v41, 5  ;;  %v411_v58 = vshrl.u32 %v6536_v9, 16  ;;  %v5112_v40 = vld [vmem:[%s6342_s5 + $0x14] sm:$0xe] }
  0x52   : > { %v400_v55 = vsel %vm6369_vm5, %v395_v44, %v399_v18  ;;  %v2132_v57 = vor.u32 %v2131_v46, %v2127_v45  ;;  %v417_v59 = vshll.u32 %v237_v10, 16  ;;  %v2139_v12 = vshrl.u32 %v6531_v3, 16 }
  0x53   : > { %v4873_v61 = vcombine.low %v390_v49, %v400_v55  ;;  %v2128_v2 = vsel %vm6369_vm5, %v2123_v50, %v2127_v45  ;;  %v404_v11 = vor.u32 %v403_v51, %v399_v18  ;;  %v413_v17 = vrot.slane %v411_v58, 4 }
  0x54   : > { %v2133_v14 = vrot.slane %v2132_v57, 4  ;;  %v419_v19 = vrot.slane %v417_v59, 5  ;;  %v2145_v20 = vshll.u32 %v6548_v54, 16  ;;  %v2141_v29 = vrot.slane %v2139_v12, 4  ;;  %v6580_v57 = vld [vmem:[%s6342_s5 + $0x5c] sm:$0xf] }
  0x55   : > { %5537 = vmatprep.mubr.msk.bf16.mxu1 %vm647_vm4, %v4873_v61  ;;  %v405_v26 = vrot.slane %v404_v11, 4  ;;  %v2149_v31 = vshrl.u32 %v6548_v54, 16  ;;  %v2155_v18 = vshll.u32 %v6554_v62, 16  ;;  %v414_v36 = vor.u32 %v413_v17, %v409_v53  ;;  %v6595_v17 = vld [vmem:[%s6342_s5 + $0x60] sm:$0x1] }
  0x56   : > { %v2138_v34 = vsel %vm6369_vm5, %v2133_v14, %v2137_v48  ;;  %v2147_v37 = vrot.slane %v2145_v20, 5  ;;  %v422_v10 = vshrl.u32 %v6560_v13, 16  ;;  %v2142_v45 = vor.u32 %v2141_v29, %v2137_v48 }
  0x57   : > { %v5086_v41 = vcombine.low %v2128_v2, %v2138_v34  ;;  %v410_v44 = vsel %vm6369_vm5, %v405_v26, %v409_v53  ;;  %v2151_v46 = vrot.slane %v2149_v31, 4  ;;  %v415_v49 = vrot.slane %v414_v36, 4 }
  0x58   : > { %v2157_v50 = vrot.slane %v2155_v18, 5  ;;  %v424_v51 = vrot.slane %v422_v10, 4  ;;  %v425_v55 = vshll.u32 %v6560_v13, 16  ;;  %v2143_v58 = vrot.slane %v2142_v45, 4 }
  0x59   : > { %5673 = vmatprep.mubr.msk.bf16.mxu0 %vm647_vm4, %v5086_v41  ;;  %v2152_v59 = vor.u32 %v2151_v46, %v2147_v37  ;;  %v431_v61 = vshll.u32 %v6564_v24, 16  ;;  %v435_v2 = vshrl.u32 %v6564_v24, 16  ;;  %v420_v53 = vsel %vm6369_vm5, %v415_v49, %v419_v19 }
  0x5a   : > { %v427_v11 = vrot.slane %v425_v55, 5  ;;  %v441_v12 = vshll.u32 %v6570_v33, 16  ;;  %v5120_v14 = vrot.slane %v5112_v40, 9  ;;  %v4874_v20 = vcombine.low %v410_v44, %v420_v53  ;;  %v6611_v44 = vld [vmem:[%s6342_s5 + $0x64] sm:$0xf] }
  0x5b   : > { %v2148_v26 = vsel %vm6369_vm5, %v2143_v58, %v2147_v37  ;;  %v2153_v29 = vrot.slane %v2152_v59, 4  ;;  %v433_v31 = vrot.slane %v431_v61, 5  ;;  %v437_v34 = vrot.slane %v435_v2, 4  ;;  %v6615_v55 = vld [vmem:[%s6342_s5 + $0x68] sm:$0xf] }
  0x5c   : > { %v428_v18 = vor.u32 %v427_v11, %v424_v51  ;;  %v443_v36 = vrot.slane %v441_v12, 5  ;;  %v2680_v19 = vsel %vm6587_vm8, %v5120_v14, %v2679_v5  ;;  %5538 = vmatmul.mubr.msk.bf16.gmra.mrb[12].mxu1 %vm647_vm4, %v4874_v20  ;;  %v2681_v40 = vrot.slane %v2679_v5, 4  ;;  %v6626_v11 = vld [vmem:[%s6342_s5 + $0x6c] sm:$0xf]  ;;  %v5113_v12 = vld [vmem:[%s6342_s5 + $0x28] sm:$0xe] }
  0x5d   : > { %v2158_v10 = vsel %vm6369_vm5, %v2153_v29, %v2157_v50  ;;  %v445_v37 = vshrl.u32 %v6570_v33, 16  ;;  %v451_v41 = vshll.u32 %v6580_v57, 16  ;;  %v438_v49 = vor.u32 %v437_v34, %v433_v31 }
  0x5e   : > { %v5087_v45 = vcombine.low %v2148_v26, %v2158_v10  ;;  %v429_v46 = vrot.slane %v428_v18, 4  ;;  %v455_v51 = vshrl.u32 %v6580_v57, 16  ;;  %v2683_v22 = vsel %vm6587_vm8, %v2681_v40, %v2682_v60 }
  0x5f   : > { %v447_v5 = vrot.slane %v445_v37, 4  ;;  %v453_v50 = vrot.slane %v451_v41, 5  ;;  %v461_v58 = vshll.u32 %v6595_v17, 16  ;;  %v439_v61 = vrot.slane %v438_v49, 4 }
  0x60   : > { %5674 = vmatmul.mubr.msk.bf16.gmra.mrb[12].mxu0 %vm647_vm4, %v5087_v45  ;;  %v434_v59 = vsel %vm6369_vm5, %v429_v46, %v433_v31  ;;  %v5129_v2 = vcombine.low %v2680_v19, %v2683_v22  ;;  %v457_v53 = vrot.slane %v455_v51, 4  ;;  %v2686_v60 = vsel %vm6587_vm8, %v6394_v7, %v2685_v25  ;;  %v6646_v25 = vld [vmem:[%s6342_s5 + $0x70] sm:$0xf] }
  0x61   : > { %v448_v28 = vor.u32 %v447_v5, %v443_v36  ;;  %v463_v14 = vrot.slane %v461_v58, 5  ;;  %v2689_v20 = vsel %vm6587_vm8, %v6414_v35, %v2688_v30  ;;  %v444_v26 = vsel %vm6369_vm5, %v439_v61, %v443_v36  ;;  %v239_v36 = vld [vmem:[%s6342_s5 + $0x74] sm:$0x1] }
  0x62   : > { %5695 = vmatprep.mubr.msk.bf16.mxu0 %vm647_vm4, %v5129_v2  ;;  %v458_v29 = vor.u32 %v457_v53, %v453_v50  ;;  %v5130_v31 = vcombine.low %v2686_v60, %v2689_v20  ;;  %v466_v1 = vshrl.u32 %v6611_v44, 16  ;;  %v4875_v18 = vcombine.low %v434_v59, %v444_v26  ;;  %v6670_v20 = vld [vmem:[%s6342_s5 + $0x7c] sm:$0xf] }
  0x63   : > { %v449_v34 = vrot.slane %v448_v28, 4  ;;  %v469_v7 = vshll.u32 %v6611_v44, 16  ;;  %v475_v8 = vshll.u32 %v6615_v55, 16  ;;  %v479_v30 = vshrl.u32 %v6615_v55, 16  ;;  %v6664_v28 = vld [vmem:[%s6342_s5 + $0x78] sm:$0xf] }
  0x64   : > { %v459_v19 = vrot.slane %v458_v29, 4  ;;  %v468_v10 = vrot.slane %v466_v1, 4  ;;  %v485_v35 = vshll.u32 %v6626_v11, 16  ;;  %5541 = vmatprep.mubr.msk.bf16.mxu1 %vm647_vm4, %v4875_v18  ;;  %v5121_v45 = vrot.slane %v5113_v12, 9 }
  0x65   : > { %v454_v40 = vsel %vm6369_vm5, %v449_v34, %v453_v50  ;;  %v471_v37 = vrot.slane %v469_v7, 5  ;;  %v477_v41 = vrot.slane %v475_v8, 5  ;;  %v481_v49 = vrot.slane %v479_v30, 4  ;;  %v6677_v8 = vld [vmem:[%s6342_s5 + $0x80] sm:$0xf] }
  0x66   : > { %v464_v46 = vsel %vm6369_vm5, %v459_v19, %v463_v14  ;;  %v487_v51 = vrot.slane %v485_v35, 5  ;;  %v2692_v22 = vrot.slane %v6422_v47, 5  ;;  %v2695_v59 = vrot.slane %v6425_v56, 5 }
  0x67   : > { %v4876_v5 = vcombine.low %v454_v40, %v464_v46  ;;  %v472_v58 = vor.u32 %v471_v37, %v468_v10  ;;  %v489_v61 = vshrl.u32 %v6626_v11, 16  ;;  %v482_v50 = vor.u32 %v481_v49, %v477_v41 }
  0x68   : > { %5696 = vmatmul.mubr.msk.bf16.vlgmr.msra.gmra.mrb[0].mxu0 %vm647_vm4, %v5130_v31  ;;  %v2693_v2 = vsel %vm6587_vm8, %v5121_v45, %v2692_v22  ;;  %v2694_v53 = vrot.slane %v2692_v22, 4  ;;  %v495_v12 = vshll.u32 %v6646_v25, 16  ;;  %v499_v14 = vshrl.u32 %v6646_v25, 16  ;;  %v5114_v22 = vld [vmem:[%s6342_s5 + $0x3c] sm:$0xe] }
  0x69   : > { %5542 = vmatmul.mubr.msk.bf16.gmra.mrb[16].mxu1 %vm647_vm4, %v4876_v5  ;;  %5728 = vmatpush3.bf16.msra.mxu0 %v6357_v23  ;;  %v473_v47 = vrot.slane %v472_v58, 4  ;;  %v491_v56 = vrot.slane %v489_v61, 4  ;;  %v505_v60 = vshll.u32 %v239_v36, 16  ;;  %v483_v26 = vrot.slane %v482_v50, 4 }
  0x6a   : > { %v2696_v29 = vsel %vm6587_vm8, %v2694_v53, %v2695_v59  ;;  %v497_v31 = vrot.slane %v495_v12, 5  ;;  %v2697_v1 = vrot.slane %v2695_v59, 4  ;;  %v501_v23 = vrot.slane %v499_v14, 4  ;;  %v6698_v53 = vld [vmem:[%s6342_s5 + $0x84] sm:$0xf] }
  0x6b   : > { %v478_v18 = vsel %vm6369_vm5, %v473_v47, %v477_v41  ;;  %v5131_v34 = vcombine.low %v2693_v2, %v2696_v29  ;;  %v492_v7 = vor.u32 %v491_v56, %v487_v51  ;;  %v488_v19 = vsel %vm6369_vm5, %v483_v26, %v487_v51 }
  0x6c   : > { %v507_v10 = vrot.slane %v505_v60, 5  ;;  %v2698_v30 = vrot.slane %v6442_v27, 5  ;;  %v2701_v35 = vrot.slane %v6448_v39, 5  ;;  %v4877_v36 = vcombine.low %v478_v18, %v488_v19 }
  0x6d   : > { %5699 = vmatprep.mubr.msk.bf16.mxu0 %vm647_vm4, %v5131_v34  ;;  %v493_v40 = vrot.slane %v492_v7, 4  ;;  %v502_v37 = vor.u32 %v501_v23, %v497_v31  ;;  %v510_v41 = vshrl.u32 %v6664_v28, 16  ;;  %v513_v49 = vshll.u32 %v6664_v28, 16 }
  0x6e   : > { %v2699_v45 = vsel %vm6587_vm8, %v2697_v1, %v2698_v30  ;;  %v2700_v46 = vrot.slane %v2698_v30, 4  ;;  %v519_v51 = vshll.u32 %v6670_v20, 16  ;;  %5545 = vmatprep.mubr.msk.bf16.mxu1 %vm647_vm4, %v4877_v36  ;;  %v523_v58 = vshrl.u32 %v6670_v20, 16  ;;  %v6704_v1 = vld [vmem:[%s6342_s5 + $0x88] sm:$0x1] }
  0x6f   : > { %v498_v27 = vsel %vm6369_vm5, %v493_v40, %v497_v31  ;;  %v503_v39 = vrot.slane %v502_v37, 4  ;;  %v512_v5 = vrot.slane %v510_v41, 4  ;;  %v515_v61 = vrot.slane %v513_v49, 5  ;;  %v6720_v49 = vld [vmem:[%s6342_s5 + $0x8c] sm:$0xf] }
  0x70   : > { %v2702_v59 = vsel %vm6587_vm8, %v2700_v46, %v2701_v35  ;;  %v521_v50 = vrot.slane %v519_v51, 5  ;;  %v529_v2 = vshll.u32 %v6677_v8, 16  ;;  %v525_v56 = vrot.slane %v523_v58, 4  ;;  %v6723_v51 = vld [vmem:[%s6342_s5 + $0x90] sm:$0xf] }
  0x71   : > { %v508_v12 = vsel %vm6369_vm5, %v503_v39, %v507_v10  ;;  %v5132_v47 = vcombine.low %v2699_v45, %v2702_v59  ;;  %v5122_v14 = vrot.slane %v5114_v22, 9  ;;  %v516_v26 = vor.u32 %v515_v61, %v512_v5 }
  0x72   : > { %v4878_v60 = vcombine.low %v498_v27, %v508_v12  ;;  %v531_v29 = vrot.slane %v529_v2, 5  ;;  %v2705_v31 = vrot.slane %v6469_v16, 5  ;;  %v526_v18 = vor.u32 %v525_v56, %v521_v50  ;;  %v6730_v2 = vld [vmem:[%s6342_s5 + $0x94] sm:$0xf] }
  0x73   : > { %5700 = vmatmul.mubr.msk.bf16.gmra.mrb[4].mxu0 %vm647_vm4, %v5132_v47  ;;  %v2708_v34 = vrot.slane %v6475_v32, 5  ;;  %v533_v7 = vshrl.u32 %v6677_v8, 16  ;;  %v539_v23 = vshll.u32 %v6698_v53, 16  ;;  %v517_v19 = vrot.slane %v516_v26, 4 }
  0x74   : > { %5546 = vmatmul.mubr.msk.bf16.gmra.mrb[20].mxu1 %vm647_vm4, %v4878_v60  ;;  %v2706_v10 = vsel %vm6587_vm8, %v5122_v14, %v2705_v31  ;;  %v2707_v16 = vrot.slane %v2705_v31, 4  ;;  %v543_v30 = vshrl.u32 %v6698_v53, 16  ;;  %v527_v35 = vrot.slane %v526_v18, 4  ;;  %v5115_v60 = vld [vmem:[%s6342_s5 + $0x50] sm:$0xe] }
  0x75   : > { %v535_v36 = vrot.slane %v533_v7, 4  ;;  %v541_v40 = vrot.slane %v539_v23, 5  ;;  %v549_v32 = vshll.u32 %v6704_v1, 16  ;;  %v522_v37 = vsel %vm6369_vm5, %v517_v19, %v521_v50  ;;  %v6744_v23 = vld [vmem:[%s6342_s5 + $0x98] sm:$0xf] }
  0x76   : > { %v2709_v41 = vsel %vm6587_vm8, %v2707_v16, %v2708_v34  ;;  %v545_v45 = vrot.slane %v543_v30, 4  ;;  %v2710_v46 = vrot.slane %v2708_v34, 4  ;;  %v532_v22 = vsel %vm6369_vm5, %v527_v35, %v531_v29  ;;  %v6752_v35 = vld [vmem:[%s6342_s5 + $0x9c] sm:$0x1] }
  0x77   : > { %v5133_v27 = vcombine.low %v2706_v10, %v2709_v41  ;;  %v536_v39 = vor.u32 %v535_v36, %v531_v29  ;;  %v551_v5 = vrot.slane %v549_v32, 5  ;;  %v4879_v58 = vcombine.low %v522_v37, %v532_v22 }
  0x78   : > { %v546_v59 = vor.u32 %v545_v45, %v541_v40  ;;  %v2711_v61 = vrot.slane %v6490_v0, 5  ;;  %v2714_v50 = vrot.slane %v6493_v15, 5  ;;  %v554_v47 = vshrl.u32 %v6720_v49, 16 }
  0x79   : > { %5703 = vmatprep.mubr.msk.bf16.mxu0 %vm647_vm4, %v5133_v27  ;;  %v537_v12 = vrot.slane %v536_v39, 4  ;;  %v557_v56 = vshll.u32 %v6720_v49, 16  ;;  %v563_v14 = vshll.u32 %v6723_v51, 16  ;;  %5549 = vmatprep.mubr.msk.bf16.mxu1 %vm647_vm4, %v4879_v58  ;;  %v567_v29 = vshrl.u32 %v6723_v51, 16 }
  0x7a   : > { %v547_v26 = vrot.slane %v546_v59, 4  ;;  %v2712_v0 = vsel %vm6587_vm8, %v2710_v46, %v2711_v61  ;;  %v2713_v15 = vrot.slane %v2711_v61, 4  ;;  %v556_v18 = vrot.slane %v554_v47, 4  ;;  %v5060_v59 = vld [vmem:[%s6342_s5 + $0x68] sm:$0xf] }
  0x7b   : > { %v542_v31 = vsel %vm6369_vm5, %v537_v12, %v541_v40  ;;  %v559_v34 = vrot.slane %v557_v56, 5  ;;  %v565_v7 = vrot.slane %v563_v14, 5  ;;  %v569_v16 = vrot.slane %v567_v29, 4  ;;  %v5061_v12 = vld [vmem:[%s6342_s5 + $0x6c] sm:$0xf] }
  0x7c   : > { %v552_v19 = vsel %vm6369_vm5, %v547_v26, %v551_v5  ;;  %v2715_v10 = vsel %vm6587_vm8, %v2713_v15, %v2714_v50  ;;  %v573_v30 = vshll.u32 %v6730_v2, 16  ;;  %v5123_v37 = vrot.slane %v5115_v60, 9  ;;  %v5116_v26 = vld [vmem:[%s6342_s5 + $0x64] sm:$0xe] }
  0x7d   : > { %v4880_v36 = vcombine.low %v542_v31, %v552_v19  ;;  %v5134_v32 = vcombine.low %v2712_v0, %v2715_v10  ;;  %v560_v40 = vor.u32 %v559_v34, %v556_v18  ;;  %v570_v41 = vor.u32 %v569_v16, %v565_v7 }
  0x7e   : > { %v575_v45 = vrot.slane %v573_v30, 5  ;;  %v2718_v46 = vrot.slane %v6525_v63, 5  ;;  %v2721_v22 = vrot.slane %v6531_v3, 5  ;;  %v577_v39 = vshrl.u32 %v6730_v2, 16 }
  0x7f   : > { %5550 = vmatmul.mubr.msk.bf16.gmra.mrb[24].mxu1 %vm647_vm4, %v4880_v36  ;;  %5704 = vmatmul.mubr.msk.bf16.gmra.mrb[8].mxu0 %vm647_vm4, %v5134_v32  ;;  %v561_v27 = vrot.slane %v560_v40, 4  ;;  %v583_v5 = vshll.u32 %v6744_v23, 16  ;;  %v587_v58 = vshrl.u32 %v6744_v23, 16  ;;  %v571_v61 = vrot.slane %v570_v41, 4 }
  0x80   : > { %v2719_v50 = vsel %vm6587_vm8, %v5123_v37, %v2718_v46  ;;  %v2720_v63 = vrot.slane %v2718_v46, 4  ;;  %v593_v3 = vshll.u32 %v6752_v35, 16  ;;  %v579_v56 = vrot.slane %v577_v39, 4  ;;  %v6782_v46 = vld [vmem:[%s6342_s5 + $0x70] sm:$0xf] }
  0x81   : > { %v566_v47 = vsel %vm6369_vm5, %v561_v27, %v565_v7  ;;  %v585_v14 = vrot.slane %v583_v5, 5  ;;  %v589_v60 = vrot.slane %v587_v58, 4  ;;  %v576_v0 = vsel %vm6369_vm5, %v571_v61, %v575_v45  ;;  %v6177_v5 = vld [vmem:[%s6342_s5] sm:$0xf]  ;;  %v6793_v58 = vld [vmem:[%s6342_s5 + $0x4] sm:$0xf] }
  0x82   : > { %v2722_v15 = vsel %vm6587_vm8, %v2720_v63, %v2721_v22  ;;  %v595_v29 = vrot.slane %v593_v3, 5  ;;  %v2723_v31 = vrot.slane %v2721_v22, 4  ;;  %v4881_v18 = vcombine.low %v566_v47, %v576_v0  ;;  %v6785_v22 = vld [vmem:[%s6342_s5 + $0x74] sm:$0x1]  ;;  %v5065_v61 = vld [vmem:[%s6342_s5 + $0x7c] sm:$0xf] }
  0x83   : > { %v5135_v34 = vcombine.low %v2719_v50, %v2722_v15  ;;  %v580_v19 = vor.u32 %v579_v56, %v575_v45  ;;  %v590_v10 = vor.u32 %v589_v60, %v585_v14  ;;  %v2724_v7 = vrot.slane %v6548_v54, 5  ;;  %v5066_v50 = vld [vmem:[%s6342_s5 + $0x80] sm:$0xf]  ;;  %v5117_v63 = vld [vmem:[%s6342_s5 + $0x78] sm:$0xe] }
  0x84   : > { %v2727_v16 = vrot.slane %v6554_v62, 5  ;;  %v5124_v30 = vrot.slane %v5116_v26, 9  ;;  %v2731_v36 = vrot.slane %v5060_v59, 5  ;;  %5553 = vmatprep.mubr.msk.bf16.mxu1 %vm647_vm4, %v4881_v18  ;;  %v2734_v37 = vrot.slane %v5061_v12, 5  ;;  %v5067_v56 = vld [vmem:[%s6342_s5 + $0x84] sm:$0xf] }
  0x85   : > { %5707 = vmatprep.mubr.msk.bf16.mxu0 %vm647_vm4, %v5135_v34  ;;  %v581_v32 = vrot.slane %v580_v19, 4  ;;  %v591_v40 = vrot.slane %v590_v10, 4  ;;  %v2725_v41 = vsel %vm6587_vm8, %v2723_v31, %v2724_v7  ;;  %v2726_v54 = vrot.slane %v2724_v7, 4  ;;  %v5068_v10 = vld [vmem:[%s6342_s5 + $0x88] sm:$0x1] }
  0x86   : > { %v2732_v62 = vsel %vm6587_vm8, %v5124_v30, %v2731_v36  ;;  %v2733_v45 = vrot.slane %v2731_v36, 4  ;;  %v4899_v59 = vcombine.low %v6177_v5, %v6793_v58  ;;  %v2736_v26 = vrot.slane %v2734_v37, 4  ;;  %v5070_v36 = vld [vmem:[%s6342_s5 + $0x90] sm:$0xf] }
  0x87   : > { %v586_v27 = vsel %vm6369_vm5, %v581_v32, %v585_v14  ;;  %v596_v39 = vsel %vm6369_vm5, %v591_v40, %v595_v29  ;;  %v2728_v12 = vsel %vm6587_vm8, %v2726_v54, %v2727_v16  ;;  %v2737_v0 = vrot.slane %v6782_v46, 5  ;;  %v6817_v32 = vld [vmem:[%s6342_s5 + $0x8] sm:$0xf]  ;;  %v6820_v40 = vld [vmem:[%s6342_s5 + $0xc] sm:$0xf] }
  0x88   : > { %v4882_v3 = vcombine.low %v586_v27, %v596_v39  ;;  %v2735_v47 = vsel %vm6587_vm8, %v2733_v45, %v2734_v37  ;;  %v5136_v14 = vcombine.low %v2725_v41, %v2728_v12  ;;  %v2740_v15 = vrot.slane %v6785_v22, 5  ;;  %v5118_v45 = vld [vmem:[%s6342_s5 + $0x8c] sm:$0xe] }
  0x89   : > { %v5137_v60 = vcombine.low %v2732_v62, %v2735_v47  ;;  %v5125_v29 = vrot.slane %v5117_v63, 9  ;;  %v2744_v31 = vrot.slane %v5065_v61, 5  ;;  %v2747_v18 = vrot.slane %v5066_v50, 5  ;;  %v5071_v62 = vld [vmem:[%s6342_s5 + $0x94] sm:$0xf] }
  0x8a   : > { %5554 = vmatmul.mubr.msk.bf16.gmra.mrb[28].mxu1 %vm647_vm4, %v4882_v3  ;;  %5708 = vmatmul.mubr.msk.bf16.gmra.mrb[12].mxu0 %vm647_vm4, %v5136_v14  ;;  %v2738_v34 = vsel %vm6587_vm8, %v2736_v26, %v2737_v0  ;;  %v2739_v19 = vrot.slane %v2737_v0, 4  ;;  %v2750_v7 = vrot.slane %v5067_v56, 5  ;;  %v4900_v37 = vcombine.low %v6817_v32, %v6820_v40  ;;  %v5072_v61 = vld [vmem:[%s6342_s5 + $0x98] sm:$0xf]  ;;  %v5075_v50 = vld [vmem:[%s6342_s5 + $0xa4] sm:$0xf] }
  0x8b   : > { %5559 = vmatprep.mubr.msk.bf16.mxu1 %vm647_vm4, %v4899_v59  ;;  %5711 = vmatprep.mubr.msk.bf16.mxu0 %vm647_vm4, %v5137_v60  ;;  %v2745_v16 = vsel %vm6587_vm8, %v5125_v29, %v2744_v31  ;;  %v2746_v30 = vrot.slane %v2744_v31, 4  ;;  %v2749_v54 = vrot.slane %v2747_v18, 4  ;;  %v2753_v59 = vrot.slane %v5068_v10, 5  ;;  %v6181_v63 = vld [vmem:[%s6342_s5 + $0x14] sm:$0xf] }
  0x8c   : > { %v2741_v41 = vsel %vm6587_vm8, %v2739_v19, %v2740_v15  ;;  %v2752_v5 = vrot.slane %v2750_v7, 4  ;;  %v6834_v3 = vld [vmem:[%s6342_s5 + $0x18] sm:$0xf]  ;;  %v2757_v56 = vrot.slane %v5070_v36, 5  ;;  %v5126_v14 = vrot.slane %v5118_v45, 9 }
  0x8d   : > { %v5138_v27 = vcombine.low %v2738_v34, %v2741_v41  ;;  %v2748_v39 = vsel %vm6587_vm8, %v2746_v30, %v2747_v18  ;;  %v4901_v12 = vcombine.low %v6181_v63, %v6834_v3  ;;  %v2760_v60 = vrot.slane %v5071_v62, 5  ;;  %v5073_v31 = vld [vmem:[%s6342_s5 + $0x9c] sm:$0x1]  ;;  %v5076_v18 = vld [vmem:[%s6342_s5 + $0xa8] sm:$0xf] }
  0x8e   : > { %v5139_v47 = vcombine.low %v2745_v16, %v2748_v39  ;;  %v2759_v26 = vrot.slane %v2757_v56, 4  ;;  %v2763_v0 = vrot.slane %v5072_v61, 5  ;;  %v2751_v15 = vsel %vm6587_vm8, %v2749_v54, %v2750_v7  ;;  %v5119_v19 = vld [vmem:[%s6342_s5 + $0xa0] sm:$0xe]  ;;  %v6853_v10 = vld [vmem:[%s6342_s5 + $0x1c] sm:$0xf] }
  0x8f   : > { %v2754_v29 = vsel %vm6587_vm8, %v2752_v5, %v2753_v59  ;;  %v2770_v34 = vrot.slane %v5075_v50, 5  ;;  %v6856_v16 = vld [vmem:[%s6342_s5 + $0x20] sm:$0xf]  ;;  %v6185_v30 = vld [vmem:[%s6342_s5 + $0x28] sm:$0xf]  ;;  %v2758_v41 = vsel %vm6587_vm8, %v5126_v14, %v2757_v56  ;;  %v2762_v45 = vrot.slane %v2760_v60, 4 }
  0x90   : > { %v4902_v7 = vcombine.low %v6853_v10, %v6856_v16  ;;  %v6862_v36 = vld [vmem:[%s6342_s5 + $0x2c] sm:$0xf]  ;;  %v2761_v54 = vsel %vm6587_vm8, %v2759_v26, %v2760_v60  ;;  %v5140_v62 = vcombine.low %v2751_v15, %v2754_v29  ;;  %v2766_v39 = vrot.slane %v5073_v31, 5  ;;  %v5078_v31 = vld [vmem:[%s6342_s5 + $0xb0] sm:$0x1] }
  0x91   : > { %v5127_v5 = vrot.slane %v5119_v19, 9  ;;  %v2772_v59 = vrot.slane %v2770_v34, 4  ;;  %v2773_v61 = vrot.slane %v5076_v18, 5  ;;  %v5077_v50 = vld [vmem:[%s6342_s5 + $0xac] sm:$0xf]  ;;  %v2764_v14 = vsel %vm6587_vm8, %v2762_v45, %v2763_v0 }
  0x92   : > { %5560 = vmatmul.mubr.msk.bf16.vlgmr.msra.gmra.mrb[0].mxu1 %vm647_vm4, %v4900_v37  ;;  %5712 = vmatmul.mubr.msk.bf16.gmra.mrb[16].mxu0 %vm647_vm4, %v5138_v27  ;;  %v4903_v37 = vcombine.low %v6185_v30, %v6862_v36  ;;  %v2765_v27 = vrot.slane %v2763_v0, 4  ;;  %v2776_v26 = vrot.slane %v5077_v50, 5  ;;  %v6895_v18 = vld [vmem:[%s6342_s5 + $0x30] sm:$0xf]  ;;  %v6898_v19 = vld [vmem:[%s6342_s5 + $0x34] sm:$0xf]  ;;  %v4907_v45 = vcombine.low %v6560_v13, %v6564_v24 }
  0x93   : > { %5592 = vmatpush3.bf16.msra.mxu1 %v6378_v52  ;;  %5563 = vmatprep.mubr.msk.bf16.mxu1 %vm647_vm4, %v4901_v12  ;;  %v5268_v52 = vld [vmem:[%s8107_s1 + $0xe] sm:$0x3]  ;;  %v5006_v12 = vld [vmem:[%s8107_s1 + $0x6] sm:$0x3]  ;;  %v2771_v15 = vsel %vm6587_vm8, %v5127_v5, %v2770_v34  ;;  %v2774_v29 = vsel %vm6587_vm8, %v2772_v59, %v2773_v61  ;;  %v4904_v0 = vcombine.low %v6895_v18, %v6898_v19  ;;  %v2775_v34 = vrot.slane %v2773_v61, 4 }
  0x94   : > { %5715 = vmatprep.mubr.msk.bf16.mxu0 %vm647_vm4, %v5139_v47  ;;  %v6871_v63 = vand.u32 %v5268_v52, %v6315_v4  ;;  %v5141_v47 = vcombine.low %v2758_v41, %v2761_v54  ;;  %v6881_v56 = vand.u32 %v5006_v12, %v6315_v4  ;;  %v2767_v60 = vsel %vm6587_vm8, %v2765_v27, %v2766_v39  ;;  %v6138_v5 = vld [vmem:[%s6342_s5 + $0x28] sm:$0xff]   ;;  %v1157_v50 = vld [vmem:[%s6342_s5 + $0x14] sm:$0xe] }
  0x95   : > { %v5142_v52 = vcombine.low %v2764_v14, %v2767_v60  ;;  %v5143_v30 = vcombine.low %v2771_v15, %v2774_v29  ;;  %v2779_v41 = vrot.slane %v5078_v31, 5  ;;  %v2777_v54 = vsel %vm6587_vm8, %v2775_v34, %v2776_v26  ;;  %v6189_v15 = vld [vmem:[%s6342_s5 + $0x10] sm:$0x1]  ;;  %v6142_v31 = vld [vmem:[%s6342_s5 + $0x3c] sm:$0xff]  }
  0x96   : > { %5761 = vmatprep.subr.bf16.mxu0 %v6871_v63  ;;  %5625 = vmatprep.subr.bf16.mxu1 %v6881_v56  ;;  %v2189_v27 = vshll.u32 %v6782_v46, 16  ;;  %v2193_v39 = vshrl.u32 %v6782_v46, 16  ;;  %v1185_v13 = vrot.slane %v6793_v58, 5  ;;  %v1188_v46 = vrot.slane %v6817_v32, 5 }
  0x97   : > { %v1191_v61 = vrot.slane %v6820_v40, 5  ;;  %v1198_v12 = vrot.slane %v6834_v3, 5  ;;  %v1201_v14 = vrot.slane %v6853_v10, 5  ;;  %v1204_v60 = vrot.slane %v6856_v16, 5  ;;  %v6140_v40 = vld [vmem:[%s6342_s5 + $0x30] sm:$0xff]  }
  0x98   : > { %v6922_v59 = vrot.slane %v2189_v27, 5  ;;  %v1194_v58 = vrot.slane %v6189_v15, 5  ;;  %v2199_v32 = vshll.u32 %v6785_v22, 16  ;;  %v4909_v3 = vcombine.low %v6611_v44, %v6615_v55  ;;  %v6148_v15 = vld [vmem:[%s6342_s5 + $0x58] sm:$0xff]  }
  0x99   : > { %v4932_v16 = vrot.slane %v1157_v50, 9  ;;  %v1203_v22 = vrot.slane %v1201_v14, 4  ;;  %v4911_v50 = vcombine.low %v6664_v28, %v6670_v20 }
  0x9a   : > { %5564 = vmatmul.mubr.msk.bf16.gmra.mrb[4].mxu1 %vm647_vm4, %v4902_v7  ;;  %5716 = vmatmul.mubr.msk.bf16.gmra.mrb[20].mxu0 %vm647_vm4, %v5140_v62  ;;  %v4905_v7 = vcombine.low %v6502_v21, %v6510_v42  ;;  %v4906_v42 = vcombine.low %v6513_v43, %v6536_v9  ;;  %8130 = vst [vmem:[#allocation4_spill] sm:$0xff] %v6922_v59  ;;  %v2195_v43 = vrot.slane %v2193_v39, 4  ;;  %v1156_v9 = vld [vmem:[%s6342_s5] sm:$0xe]  ;;  %v6950_v44 = vrot.slane %v2199_v32, 5 }
  0x9b   : > { %5567 = vmatprep.mubr.msk.bf16.mxu1 %vm647_vm4, %v4903_v37  ;;  %5719 = vmatprep.mubr.msk.bf16.mxu0 %vm647_vm4, %v5141_v47  ;;  %v2778_v37 = vrot.slane %v2776_v26, 4  ;;  %v4908_v47 = vcombine.low %v6570_v33, %v6580_v57  ;;  %v5317_v26 = vld [vmem:[%s8107_s1 + $0x10] sm:$0x3]  ;;  %v4931_v10 = vrot.slane %v1156_v9, 9  ;;  %v5229_v32 = vld [vmem:[%s6342_s5 + $0x2c] sm:$0xf] }
  0x9c   : > { %v2196_v29 = vor.u32 %v2195_v43, %v6922_v59  ;;  %v6946_v34 = vand.u32 %v5317_v26, %v6315_v4  ;;  %8131 = vst [vmem:[#allocation5_spill] sm:$0xff] %v6950_v44  ;;  %v4910_v4 = vcombine.low %v6626_v11, %v6646_v25  ;;  %v6979_v25 = vsel %vm6587_vm8, %v4932_v16, %v1198_v12  ;;  %v6146_v26 = vld [vmem:[%s6342_s5 + $0x50] sm:$0xff]  }
  0x9d   : > { %v2780_v21 = vsel %vm6587_vm8, %v2778_v37, %v2779_v41  ;;  %v1206_v37 = vrot.slane %v1204_v60, 4  ;;  %v6190_v41 = vld [vmem:[%s6342_s5 + $0x24] sm:$0x1]  ;;  %v7394_v44 = vld [vmem:[%s6342_s5 + $0x74] sm:$0x1] }
  0x9e   : > { %v5144_v62 = vcombine.low %v2777_v54, %v2780_v21  ;;  %v1207_v54 = vrot.slane %v6190_v41, 5  ;;  %v1158_v21 = vld [vmem:[%s6342_s5 + $0x28] sm:$0xe]  ;;  %v3487_v41 = vshll.u32 %v5229_v32, 16  ;;  %8153 = vst [vmem:[#allocation17_spill] sm:$0xff] %v7394_v44 }
  0x9f   : > { %v4933_v9 = vrot.slane %v1158_v21, 9 }
  0xa0   : > { %v6992_v43 = vsel %vm6587_vm8, %v1206_v37, %v1207_v54  ;;  %v3491_v54 = vshrl.u32 %v5229_v32, 16 }
  0xa2   : > { %5568 = vmatmul.mubr.msk.bf16.gmra.mrb[8].mxu1 %vm647_vm4, %v4904_v0  ;;  %5720 = vmatmul.mubr.msk.bf16.gmra.mrb[24].mxu0 %vm647_vm4, %v5142_v52  ;;  %v1187_v0 = vrot.slane %v1185_v13, 4  ;;  %v1190_v52 = vrot.slane %v1188_v46, 4 }
  0xa3   : > { %5571 = vmatprep.mubr.msk.bf16.mxu1 %vm647_vm4, %v4905_v7  ;;  %5723 = vmatprep.mubr.msk.bf16.mxu0 %vm647_vm4, %v5143_v30  ;;  %v1193_v7 = vrot.slane %v1191_v61, 4  ;;  %v1200_v30 = vrot.slane %v1198_v12, 4  ;;  %v4912_v12 = vcombine.low %v6677_v8, %v6698_v53 }
  0xa4   : > { %v6971_v27 = vsel %vm6587_vm8, %v1190_v52, %v1191_v61  ;;  %v6144_v61 = vld [vmem:[%s6342_s5 + $0x44] sm:$0xff]  }
  0xa5   : > { %v6983_v39 = vsel %vm6587_vm8, %v1200_v30, %v1201_v14  ;;  %v1214_v14 = vrot.slane %v6895_v18, 5 }
  0xa7   : > { %v1216_v30 = vrot.slane %v1214_v14, 4 }
  0xaa   : > { %5572 = vmatmul.mubr.msk.bf16.gmra.mrb[12].mxu1 %vm647_vm4, %v4906_v42  ;;  %5724 = vmatmul.mubr.msk.bf16.gmra.mrb[28].mxu0 %vm647_vm4, %v5144_v62  ;;  %v6955_v42 = vrot.slane %v2196_v29, 4  ;;  %v6963_v62 = vsel %vm6587_vm8, %v4931_v10, %v1185_v13  ;;  %v1211_v13 = vrot.slane %v6862_v36, 5  ;;  %v5230_v10 = vld [vmem:[%s6342_s5 + $0x30] sm:$0xf]  ;;  %v7048_v36 = vrot.slane %v3487_v41, 5 }
  0xab   : > { %5575 = vmatprep.mubr.msk.bf16.mxu1 %vm647_vm4, %v4907_v45  ;;  %5729 = vmatprep.mubr.msk.bf16.mxu0 %vm647_vm4, %v6138_v5  ;;  %v6967_v45 = vsel %vm6587_vm8, %v1187_v0, %v1188_v46  ;;  %v6988_v5 = vsel %vm6587_vm8, %v1203_v22, %v1204_v60  ;;  %v6996_v46 = vld [vmem:[%s6342_s5 + $0x3c] sm:$0xe]  ;;  %v5228_v60 = vld [vmem:[%s6342_s5 + $0x28] sm:$0xf]  ;;  %v6192_v22 = vld [vmem:[%s6342_s5 + $0x40] sm:$0xf] }
  0xac   : > { %8132 = vst [vmem:[#allocation6_spill] sm:$0xff] %v6955_v42  ;;  %v7026_v0 = vsel %vm6587_vm8, %v4933_v9, %v1211_v13  ;;  %v3478_v16 = vshrl.u32 %v5228_v60, 16  ;;  %v3481_v52 = vshll.u32 %v5228_v60, 16  ;;  %v1224_v37 = vrot.slane %v6192_v22, 5  ;;  %v6194_v60 = vld [vmem:[%s6342_s5 + $0x48] sm:$0xf] }
  0xae   : > { %v3480_v32 = vrot.slane %v3478_v16, 4  ;;  %v3483_v28 = vrot.slane %v3481_v52, 5 }
  0xb0   : > { %v3484_v59 = vor.u32 %v3483_v28, %v3480_v32 }
  0xb2   : > { %5576 = vmatmul.mubr.msk.bf16.gmra.mrb[16].mxu1 %vm647_vm4, %v4908_v47  ;;  %5730 = vmatmul.mubr.msk.bf16.vlgmr.msra.gmra.mrb[0].mxu0 %vm647_vm4, %v6140_v40  ;;  %v1226_v47 = vrot.slane %v1224_v37, 4 }
  0xb3   : > { %5579 = vmatprep.mubr.msk.bf16.mxu1 %vm647_vm4, %v4909_v3  ;;  %5762 = vmatpush3.bf16.msra.mxu0 %v6871_v63  ;;  %v6975_v63 = vsel %vm6587_vm8, %v1193_v7, %v1194_v58  ;;  %v1217_v58 = vrot.slane %v6898_v19, 5  ;;  %v6191_v3 = vld [vmem:[%s6342_s5 + $0x38] sm:$0x1]  ;;  %v1213_v19 = vrot.slane %v1211_v13, 4  ;;  %v5231_v7 = vld [vmem:[%s6342_s5 + $0x34] sm:$0xf] }
  0xb4   : > { %5733 = vmatprep.mubr.msk.bf16.mxu0 %vm647_vm4, %v6142_v31  ;;  %5795 = vmatprep.subr.bf16.mxu0 %v6946_v34  ;;  %v1220_v29 = vrot.slane %v6191_v3, 5  ;;  %v4934_v31 = vrot.slane %v6996_v46, 9  ;;  %v3497_v13 = vshll.u32 %v5230_v10, 16  ;;  %v3501_v46 = vshrl.u32 %v5230_v10, 16  ;;  %v1160_v10 = vld [vmem:[%s6342_s5 + $0x50] sm:$0xe] }
  0xb5   : > { %v1219_v21 = vrot.slane %v1217_v58, 4  ;;  %v1230_v3 = vrot.slane %v6194_v60, 5  ;;  %v3511_v40 = vshrl.u32 %v5231_v7, 16  ;;  %v7038_v22 = vsel %vm6587_vm8, %v1213_v19, %v1214_v14 }
  0xb6   : > { %v1240_v60 = vrot.slane %v6570_v33, 5  ;;  %v7051_v14 = vrot.slane %v3497_v13, 5  ;;  %v3503_v19 = vrot.slane %v3501_v46, 4  ;;  %v4935_v41 = vrot.slane %v1160_v10, 9  ;;  %v7062_v13 = vld [vmem:[%s6342_s5 + $0x38] sm:$0x1] }
  0xb7   : > { %v7056_v16 = vsel %vm6587_vm8, %v1219_v21, %v1220_v29  ;;  %v1232_v33 = vrot.slane %v1230_v3, 4  ;;  %8133 = vst [vmem:[#allocation7_spill] sm:$0xff] %v7062_v13  ;;  %v1246_v46 = vrot.slane %v6595_v17, 5  ;;  %v3517_v10 = vshll.u32 %v7062_v13, 16 }
  0xb8   : > { %v1242_v28 = vrot.slane %v1240_v60, 4 }
  0xba   : > { %5580 = vmatmul.mubr.msk.bf16.gmra.mrb[20].mxu1 %vm647_vm4, %v4910_v4  ;;  %5734 = vmatmul.mubr.msk.bf16.gmra.mrb[4].mxu0 %vm647_vm4, %v6144_v61  ;;  %v6193_v4 = vld [vmem:[%s6342_s5 + $0x44] sm:$0xf]  ;;  %v6195_v61 = vld [vmem:[%s6342_s5 + $0x4c] sm:$0x1] }
  0xbb   : > { %5583 = vmatprep.mubr.msk.bf16.mxu1 %vm647_vm4, %v4911_v50  ;;  %5737 = vmatprep.mubr.msk.bf16.mxu0 %vm647_vm4, %v6146_v26  ;;  %v1227_v9 = vrot.slane %v6193_v4, 5  ;;  %v1233_v18 = vrot.slane %v6195_v61, 5  ;;  %v3507_v50 = vshll.u32 %v5231_v7, 16  ;;  %v1237_v26 = vrot.slane %v6564_v24, 5  ;;  %v6150_v61 = vld [vmem:[%s6342_s5 + $0x64] sm:$0xff]  }
  0xbc   : > { %v7044_v4 = vsel %vm6587_vm8, %v1216_v30, %v1217_v58  ;;  %v3493_v7 = vrot.slane %v3491_v54, 4  ;;  %v1243_v24 = vrot.slane %v6580_v57, 5  ;;  %v3513_v30 = vrot.slane %v3511_v40, 4 }
  0xbd   : > { %v1229_v58 = vrot.slane %v1227_v9, 4  ;;  %v7058_v52 = vrot.slane %v3507_v50, 5  ;;  %v1239_v54 = vrot.slane %v1237_v26, 4  ;;  %v8134_v57 = vcombine.low %v6720_v49, %v6723_v51  ;;  %v5233_v50 = vld [vmem:[%s6342_s5 + $0x3c] sm:$0xf] }
  0xbe   : > { %v3494_v29 = vor.u32 %v3493_v7, %v7048_v36  ;;  %v3504_v49 = vor.u32 %v3503_v19, %v7051_v14  ;;  %v1245_v21 = vrot.slane %v1243_v24, 4  ;;  %v7093_v7 = vld [vmem:[%s6342_s5 + $0x40] sm:$0xf]  ;;  %v7101_v17 = vsel %vm6587_vm8, %v4935_v41, %v1237_v26 }
  0xbf   : > { %v3514_v32 = vor.u32 %v3513_v30, %v7058_v52  ;;  %8135 = vst [vmem:[#allocation8_spill] sm:$0xff] %v7093_v7  ;;  %v1161_v30 = vld [vmem:[%s6342_s5 + $0x64] sm:$0xe] }
  0xc0   : > { %v3495_v19 = vrot.slane %v3494_v29, 4  ;;  %v7116_v26 = vsel %vm6587_vm8, %v1245_v21, %v1246_v46  ;;  %v3535_v29 = vshrl.u32 %v7093_v7, 16  ;;  %v4936_v46 = vrot.slane %v1161_v30, 9  ;;  %v5238_v30 = vld [vmem:[%s6342_s5 + $0x50] sm:$0xf] }
  0xc2   : > { %5584 = vmatmul.mubr.msk.bf16.gmra.mrb[24].mxu1 %vm647_vm4, %v4912_v12  ;;  %5738 = vmatmul.mubr.msk.bf16.gmra.mrb[8].mxu0 %vm647_vm4, %v6148_v15  ;;  %v7073_v12 = vsel %vm6587_vm8, %v4934_v31, %v1224_v37  ;;  %v7084_v31 = vsel %vm6587_vm8, %v1226_v47, %v1227_v9  ;;  %v7088_v37 = vsel %vm6587_vm8, %v1229_v58, %v1230_v3  ;;  %v3485_v9 = vrot.slane %v3484_v59, 4  ;;  %v6152_v3 = vld [vmem:[%s6342_s5 + $0x6c] sm:$0xff]  }
  0xc3   : > { %5587 = vmatprep.mubr.msk.bf16.mxu1 %vm647_vm4, %v8134_v57  ;;  %5741 = vmatprep.mubr.msk.bf16.mxu0 %vm647_vm4, %v6150_v61  ;;  %v7097_v61 = vsel %vm6587_vm8, %v1232_v33, %v1233_v18  ;;  %v7105_v47 = vsel %vm6587_vm8, %v1239_v54, %v1240_v60  ;;  %v7110_v58 = vsel %vm6587_vm8, %v1242_v28, %v1243_v24  ;;  %v3522_v57 = vshrl.u32 %v5233_v50, 16  ;;  %v6153_v33 = vld [vmem:[%s6342_s5 + $0x78] sm:$0xff]  }
  0xc4   : > { %v3525_v18 = vshll.u32 %v5233_v50, 16  ;;  %v3505_v15 = vrot.slane %v3504_v49, 4  ;;  %v1250_v60 = vrot.slane %v6615_v55, 5  ;;  %v3531_v59 = vshll.u32 %v7093_v7, 16  ;;  %v7135_v50 = vld [vmem:[%s6342_s5 + $0x44] sm:$0xf] }
  0xc5   : > { %v3515_v24 = vrot.slane %v3514_v32, 4  ;;  %v3519_v54 = vrot.slane %v3517_v10, 5  ;;  %v8136_v28 = vcombine.low %v6730_v2, %v6744_v23  ;;  %v3490_v21 = vsel %vm6369_vm5, %v3485_v9, %v7048_v36  ;;  %8137 = vst [vmem:[#allocation9_spill] sm:$0xff] %v7135_v50  ;;  %v7148_v9 = vld [vmem:[%s6342_s5 + $0x48] sm:$0xf] }
  0xc6   : > { %v8138_v23 = vcombine.low %v6963_v62, %v6967_v45  ;;  %v3500_v32 = vsel %vm6369_vm5, %v3495_v19, %v7051_v14  ;;  %v3527_v36 = vrot.slane %v3525_v18, 5  ;;  %8139 = vst [vmem:[#allocation10_spill] sm:$0xff] %v7148_v9  ;;  %v3510_v62 = vsel %vm6369_vm5, %v3505_v15, %v7058_v52  ;;  %v7159_v19 = vld [vmem:[%s6342_s5 + $0x54] sm:$0xf] }
  0xc7   : > { %v1252_v45 = vrot.slane %v1250_v60, 4  ;;  %v7156_v14 = vrot.slane %v3531_v59, 5  ;;  %v3537_v18 = vrot.slane %v3535_v29, 4  ;;  %v3551_v10 = vshll.u32 %v7148_v9, 16  ;;  %v6154_v59 = vld [vmem:[%s6342_s5 + $0x80] sm:$0xff]   ;;  %v6155_v29 = vld [vmem:[%s6342_s5 + $0x8c] sm:$0xff]  }
  0xc8   : > { %v3555_v52 = vshrl.u32 %v7148_v9, 16  ;;  %v3569_v15 = vshll.u32 %v5238_v30, 16  ;;  %v7168_v55 = vcombine.low %v3490_v21, %v3500_v32  ;;  %v7177_v40 = vsel %vm6587_vm8, %v4936_v46, %v1250_v60  ;;  %v7184_v21 = vld [vmem:[%s6342_s5 + $0x58] sm:$0xf]  ;;  %v7198_v46 = vld [vmem:[%s6342_s5 + $0x4c] sm:$0x1] }
  0xc9   : > { %v3538_v32 = vor.u32 %v3537_v18, %v7156_v14  ;;  %v8140_v60 = vcombine.low %v6971_v27, %v6975_v63  ;;  %8141 = vst [vmem:[#allocation11_spill] sm:$0xff] %v7198_v46  ;;  %v8142_v63 = vcombine.low %v6979_v25, %v6983_v39  ;;  %v3561_v39 = vshll.u32 %v7198_v46, 16 }
  0xca   : > { %5588 = vmatmul.mubr.msk.bf16.gmra.mrb[28].mxu1 %vm647_vm4, %v8136_v28  ;;  %5742 = vmatmul.mubr.msk.bf16.gmra.mrb[12].mxu0 %vm647_vm4, %v6152_v3  ;;  %v3524_v28 = vrot.slane %v3522_v57, 4  ;;  %v1253_v3 = vrot.slane %v6626_v11, 5  ;;  %v3520_v57 = vsel %vm6369_vm5, %v3515_v24, %v3519_v54  ;;  %v3566_v11 = vshrl.u32 %v5238_v30, 16 }
  0xcb   : > { %5593 = vmatprep.mubr.msk.bf16.mxu1 %vm647_vm4, %v8138_v23  ;;  %5745 = vmatprep.mubr.msk.bf16.mxu0 %vm647_vm4, %v6153_v33  ;;  %v3541_v23 = vshll.u32 %v7135_v50, 16  ;;  %v3545_v33 = vshrl.u32 %v7135_v50, 16  ;;  %v3575_v24 = vshll.u32 %v7159_v19, 16  ;;  %v3579_v54 = vshrl.u32 %v7159_v19, 16 }
  0xcc   : > { %v3528_v49 = vor.u32 %v3527_v36, %v3524_v28  ;;  %v7173_v41 = vcombine.low %v3510_v62, %v3520_v57  ;;  %v7181_v30 = vsel %vm6587_vm8, %v1252_v45, %v1253_v3  ;;  %v1255_v9 = vrot.slane %v1253_v3, 4  ;;  %v6196_v36 = vld [vmem:[%s6342_s5 + $0x70] sm:$0xf]  ;;  %v7191_v57 = vld [vmem:[%s6342_s5 + $0x5c] sm:$0xf] }
  0xcd   : > { %v7187_v28 = vrot.slane %v3541_v23, 5  ;;  %v1256_v50 = vrot.slane %v6196_v36, 5  ;;  %v3547_v62 = vrot.slane %v3545_v33, 4  ;;  %v7200_v45 = vrot.slane %v3551_v10, 5  ;;  %v6197_v23 = vld [vmem:[%s6342_s5 + $0x74] sm:$0x1] }
  0xce   : > { %v3557_v3 = vrot.slane %v3555_v52, 4  ;;  %v3568_v13 = vrot.slane %v3566_v11, 4  ;;  %v3571_v7 = vrot.slane %v3569_v15, 5  ;;  %v7204_v18 = vrot.slane %v3528_v49, 4 }
  0xcf   : > { %v1259_v33 = vrot.slane %v6197_v23, 5  ;;  %v7207_v36 = vrot.slane %v3575_v24, 5  ;;  %v3581_v27 = vrot.slane %v3579_v54, 4  ;;  %v3589_v49 = vshrl.u32 %v7184_v21, 16  ;;  %v1162_v24 = vld [vmem:[%s6342_s5 + $0x78] sm:$0xe] }
  0xd0   : > { %v3595_v10 = vshll.u32 %v7191_v57, 16  ;;  %v3599_v52 = vshrl.u32 %v7191_v57, 16  ;;  %v7218_v11 = vrot.slane %v3538_v32, 4  ;;  %v7222_v15 = vsel %vm6587_vm8, %v1255_v9, %v1256_v50  ;;  %v6157_v23 = vld [vmem:[%s6342_s5 + $0xa0] sm:$0xff]  }
  0xd1   : > { %v3548_v25 = vor.u32 %v3547_v62, %v7187_v28  ;;  %v1263_v54 = vrot.slane %v6670_v20, 5  ;;  %v3572_v32 = vor.u32 %v3571_v7, %v3568_v13  ;;  %v3534_v9 = vsel %vm6369_vm5, %v7204_v18, %v7156_v14 }
  0xd2   : > { %5594 = vmatmul.mubr.msk.bf16.vlgmr.msra.gmra.mrb[0].mxu1 %vm647_vm4, %v8140_v60  ;;  %5746 = vmatmul.mubr.msk.bf16.gmra.mrb[16].mxu0 %vm647_vm4, %v6154_v59  ;;  %v3558_v59 = vor.u32 %v3557_v3, %v7200_v45  ;;  %v6156_v60 = vld [vmem:[%s6342_s5 + $0x94] sm:$0xff]   ;;  %v1258_v62 = vrot.slane %v1256_v50, 4  ;;  %v1269_v46 = vrot.slane %v6698_v53, 5  ;;  %v3591_v20 = vrot.slane %v3589_v49, 4 }
  0xd3   : > { %5626 = vmatpush3.bf16.msra.mxu1 %v6881_v56  ;;  %5597 = vmatprep.mubr.msk.bf16.mxu1 %vm647_vm4, %v8142_v63  ;;  %v3585_v56 = vshll.u32 %v7184_v21, 16  ;;  %v3582_v63 = vor.u32 %v3581_v27, %v7207_v36  ;;  %v7242_v42 = vrot.slane %v3595_v10, 5  ;;  %v3544_v13 = vsel %vm6369_vm5, %v7218_v11, %v7187_v28  ;;  %v5243_v10 = vld [vmem:[%s6342_s5 + $0x64] sm:$0xf] }
  0xd4   : > { %5749 = vmatprep.mubr.msk.bf16.mxu0 %vm647_vm4, %v6155_v29  ;;  %5829 = vmatprep.subr.bf16.mxu1 %v6321_v6  ;;  %v1266_v29 = vrot.slane %v6677_v8, 5  ;;  %v7240_v6 = vld [vmem:[%s6342_s5 + $0x60] sm:$0x1]  ;;  %v3601_v8 = vrot.slane %v3599_v52, 4  ;;  %v3549_v7 = vrot.slane %v3548_v25, 4  ;;  %v3563_v14 = vrot.slane %v3561_v39, 5 }
  0xd5   : > { %v3587_v3 = vrot.slane %v3585_v56, 5  ;;  %v4937_v50 = vrot.slane %v1162_v24, 9  ;;  %v8143_v18 = vcombine.low %v6988_v5, %v6992_v43  ;;  %v3559_v53 = vrot.slane %v3558_v59, 4 }
  0xd6   : > { %v1265_v27 = vrot.slane %v1263_v54, 4  ;;  %v3573_v56 = vrot.slane %v3572_v32, 4  ;;  %v1268_v49 = vrot.slane %v1266_v29, 4  ;;  %v8144_v52 = vcombine.low %v7026_v0, %v7038_v22  ;;  %v1163_v22 = vld [vmem:[%s6342_s5 + $0x8c] sm:$0xe] }
  0xd7   : > { %v3583_v28 = vrot.slane %v3582_v63, 4  ;;  %v1271_v11 = vrot.slane %v1269_v46, 4  ;;  %v1272_v25 = vrot.slane %v6704_v1, 5  ;;  %v3605_v5 = vshll.u32 %v7240_v6, 16  ;;  %v6159_v63 = vld [vmem:[%s6342_s5 + $0xb4] sm:$0xff]  }
  0xd8   : > { %v7263_v43 = vsel %vm6587_vm8, %v1258_v62, %v1259_v33  ;;  %v3592_v39 = vor.u32 %v3591_v20, %v3587_v3  ;;  %v3602_v0 = vor.u32 %v3601_v8, %v7242_v42  ;;  %v1276_v59 = vrot.slane %v6723_v51, 5  ;;  %v6158_v62 = vld [vmem:[%s6342_s5 + $0xa8] sm:$0xff]  }
  0xd9   : > { %v3554_v1 = vsel %vm6369_vm5, %v3549_v7, %v7200_v45  ;;  %v7273_v24 = vsel %vm6587_vm8, %v4937_v50, %v1263_v54  ;;  %v3610_v32 = vshrl.u32 %v5243_v10, 16  ;;  %v3564_v33 = vsel %vm6369_vm5, %v3559_v53, %v3563_v14  ;;  %v7289_v54 = vld [vmem:[%s6342_s5 + $0x68] sm:$0xf] }
  0xda   : > { %5598 = vmatmul.mubr.msk.bf16.gmra.mrb[4].mxu1 %vm647_vm4, %v8143_v18  ;;  %5750 = vmatmul.mubr.msk.bf16.gmra.mrb[20].mxu0 %vm647_vm4, %v6156_v60  ;;  %v3613_v60 = vshll.u32 %v5243_v10, 16  ;;  %v3578_v51 = vsel %vm6369_vm5, %v3573_v56, %v7207_v36  ;;  %v7286_v45 = vsel %vm6587_vm8, %v1268_v49, %v1269_v46  ;;  %v3588_v20 = vsel %vm6369_vm5, %v3583_v28, %v3587_v3  ;;  %v7307_v18 = vld [vmem:[%s6342_s5 + $0x6c] sm:$0xf] }
  0xdb   : > { %5601 = vmatprep.mubr.msk.bf16.mxu1 %vm647_vm4, %v8144_v52  ;;  %5753 = vmatprep.mubr.msk.bf16.mxu0 %vm647_vm4, %v6157_v23  ;;  %v7279_v23 = vsel %vm6587_vm8, %v1265_v27, %v1266_v29  ;;  %8145 = vst [vmem:[#allocation12_spill] sm:$0xff] %v7286_v45  ;;  %v7297_v8 = vsel %vm6587_vm8, %v1271_v11, %v1272_v25  ;;  %v7299_v29 = vrot.slane %v3605_v5, 5  ;;  %v4938_v7 = vrot.slane %v1163_v22, 9  ;;  %v7340_v25 = vld [vmem:[%s6342_s5 + $0x70] sm:$0xf] }
  0xdc   : > { %8146 = vst [vmem:[#allocation13_spill] sm:$0xff] %v7297_v8  ;;  %v7301_v14 = vrot.slane %v3592_v39, 4  ;;  %v7303_v36 = vrot.slane %v3602_v0, 4  ;;  %v1278_v46 = vrot.slane %v1276_v59, 4  ;;  %v1279_v50 = vrot.slane %v6730_v2, 5 }
  0xdd   : > { %v7309_v53 = vrot.slane %v3610_v32, 4  ;;  %v7311_v3 = vrot.slane %v3613_v60, 5  ;;  %v3619_v27 = vshll.u32 %v7289_v54, 16  ;;  %v3623_v56 = vshrl.u32 %v7289_v54, 16  ;;  %v5248_v5 = vld [vmem:[%s6342_s5 + $0x78] sm:$0xf] }
  0xde   : > { %v8147_v49 = vcombine.low %v7044_v4, %v7056_v16  ;;  %v7321_v10 = vcombine.low %v3534_v9, %v3544_v13  ;;  %v7325_v28 = vcombine.low %v3554_v1, %v3564_v33  ;;  %v8148_v11 = vcombine.low %v7073_v12, %v7084_v31  ;;  %v7361_v22 = vld [vmem:[%s6342_s5 + $0x7c] sm:$0xf]  ;;  %v7364_v1 = vld [vmem:[%s6342_s5 + $0x80] sm:$0xf]  ;;  %v5253_v52 = vld [vmem:[%s6342_s5 + $0x8c] sm:$0xf] }
  0xdf   : > { %v7334_v16 = vcombine.low %v3578_v51, %v3588_v20  ;;  %v3629_v13 = vshll.u32 %v7307_v18, 16  ;;  %v7354_v39 = vsel %vm6587_vm8, %v4938_v7, %v1276_v59  ;;  %v7358_v0 = vsel %vm6587_vm8, %v1278_v46, %v1279_v50  ;;  %8149 = vst [vmem:[#allocation14_spill] sm:$0xff] %v7361_v22  ;;  %8150 = vst [vmem:[#allocation15_spill] sm:$0xff] %v7364_v1  ;;  %v6160_v46 = vld [vmem:[%s6342_s5 + $0xbc] sm:$0xff]   ;;  %v6198_v12 = vld [vmem:[%s6342_s5 + $0x98] sm:$0xf] }
  0xe0   : > { %v3616_v32 = vor.u32 %v7311_v3, %v7309_v53  ;;  %v7368_v60 = vrot.slane %v3619_v27, 5  ;;  %v3625_v33 = vrot.slane %v3623_v56, 4  ;;  %v3633_v51 = vshrl.u32 %v7307_v18, 16 }
  0xe1   : > { %v3639_v59 = vshll.u32 %v7340_v25, 16  ;;  %v3654_v20 = vshrl.u32 %v5248_v5, 16  ;;  %v3657_v7 = vshll.u32 %v5248_v5, 16  ;;  %v1281_v53 = vrot.slane %v1279_v50, 4 }
  0xe2   : > { %5602 = vmatmul.mubr.msk.bf16.gmra.mrb[8].mxu1 %vm647_vm4, %v8147_v49  ;;  %5754 = vmatmul.mubr.msk.bf16.gmra.mrb[24].mxu0 %vm647_vm4, %v6158_v62  ;;  %v7372_v62 = vld [vmem:[%s6342_s5 + $0x84] sm:$0xf]  ;;  %v7377_v49 = vrot.slane %v3629_v13, 5  ;;  %v3663_v3 = vshll.u32 %v7361_v22, 16  ;;  %v3667_v27 = vshrl.u32 %v7361_v22, 16  ;;  %v3673_v56 = vshll.u32 %v7364_v1, 16 }
  0xe3   : > { %5605 = vmatprep.mubr.msk.bf16.mxu1 %vm647_vm4, %v8148_v11  ;;  %5757 = vmatprep.mubr.msk.bf16.mxu0 %vm647_vm4, %v6159_v63  ;;  %8151 = vst [vmem:[#allocation16_spill] sm:$0xff] %v7372_v62  ;;  %v3643_v63 = vshrl.u32 %v7340_v25, 16  ;;  %v3677_v11 = vshrl.u32 %v7364_v1, 16  ;;  %v3683_v9 = vshll.u32 %v7372_v62, 16  ;;  %v3687_v4 = vshrl.u32 %v7372_v62, 16 }
  0xe4   : > { %v3626_v5 = vor.u32 %v3625_v33, %v7368_v60  ;;  %v1282_v13 = vrot.slane %v6198_v12, 5  ;;  %v1285_v50 = vrot.slane %v6752_v35, 5  ;;  %v3635_v31 = vrot.slane %v3633_v51, 4 }
  0xe5   : > { %v8152_v2 = vcombine.low %v7088_v37, %v7097_v61  ;;  %v7396_v1 = vrot.slane %v3639_v59, 5  ;;  %v3645_v22 = vrot.slane %v3643_v63, 4  ;;  %v3656_v62 = vrot.slane %v3654_v20, 4  ;;  %v7406_v61 = vld [vmem:[%s6342_s5 + $0x90] sm:$0xf] }
  0xe6   : > { %v3659_v8 = vrot.slane %v3657_v7, 5  ;;  %v8154_v12 = vcombine.low %v7101_v17, %v7105_v47  ;;  %v7403_v35 = vrot.slane %v3663_v3, 5  ;;  %v3669_v37 = vrot.slane %v3667_v27, 4  ;;  %8155 = vst [vmem:[#allocation18_spill] sm:$0xff] %v7406_v61  ;;  %v7417_v3 = vld [vmem:[%s6342_s5 + $0x88] sm:$0x1] }
  0xe7   : > { %v3701_v33 = vshll.u32 %v5253_v52, 16  ;;  %v7410_v51 = vrot.slane %v3673_v56, 5  ;;  %v3679_v59 = vrot.slane %v3677_v11, 4  ;;  %v7412_v63 = vrot.slane %v3683_v9, 5 }
  0xe8   : > { %v3689_v17 = vrot.slane %v3687_v4, 4  ;;  %v3617_v47 = vrot.slane %v3616_v32, 4  ;;  %v3627_v20 = vrot.slane %v3626_v5, 4  ;;  %v3636_v7 = vor.u32 %v3635_v31, %v7377_v49 }
  0xe9   : > { %v3660_v27 = vor.u32 %v3659_v8, %v3656_v62  ;;  %v3711_v9 = vshrl.u32 %v7406_v61, 16  ;;  %v7427_v4 = vsel %vm6587_vm8, %v1281_v53, %v1282_v13  ;;  %v3670_v31 = vor.u32 %v3669_v37, %v7403_v35  ;;  %v7434_v62 = vld [vmem:[%s6342_s5 + $0x98] sm:$0xf] }
  0xea   : > { %5606 = vmatmul.mubr.msk.bf16.gmra.mrb[12].mxu1 %vm647_vm4, %v8152_v2  ;;  %5758 = vmatmul.mubr.msk.bf16.gmra.mrb[28].mxu0 %vm647_vm4, %v6160_v46  ;;  %v3698_v2 = vshrl.u32 %v5253_v52, 16  ;;  %v3649_v46 = vshll.u32 %v7394_v44, 16  ;;  %v3646_v52 = vor.u32 %v3645_v22, %v7396_v1  ;;  %v3703_v56 = vrot.slane %v3701_v33, 5 }
  0xeb   : > { %5609 = vmatprep.mubr.msk.bf16.mxu1 %vm647_vm4, %v8154_v12  ;;  %5763 = vmatprep.mubr.msk.bf16.mxu0 %vm647_vm4, %v7168_v55  ;;  %v7421_v12 = vld [vmem:[%s6342_s5 + $0x94] sm:$0xf]  ;;  %v3707_v55 = vshll.u32 %v7406_v61, 16  ;;  %v1284_v11 = vrot.slane %v1282_v13, 4  ;;  %v3680_v5 = vor.u32 %v3679_v59, %v7410_v51  ;;  %v3690_v22 = vor.u32 %v3689_v17, %v7412_v63 }
  0xec   : > { %8156 = vst [vmem:[#allocation19_spill] sm:$0xff] %v7421_v12  ;;  %v3700_v32 = vrot.slane %v3698_v2, 4  ;;  %v3693_v8 = vshll.u32 %v7417_v3, 16  ;;  %v3637_v45 = vrot.slane %v3636_v7, 4  ;;  %v3651_v44 = vrot.slane %v3649_v46, 5 }
  0xed   : > { %v3717_v61 = vshll.u32 %v7421_v12, 16  ;;  %v3721_v53 = vshrl.u32 %v7421_v12, 16  ;;  %v8157_v37 = vcombine.low %v7110_v58, %v7116_v26  ;;  %v3647_v13 = vrot.slane %v3646_v52, 4 }
  0xee   : > { %v3661_v2 = vrot.slane %v3660_v27, 4  ;;  %v7442_v33 = vrot.slane %v3707_v55, 5  ;;  %v3713_v59 = vrot.slane %v3711_v9, 4  ;;  %v8158_v17 = vcombine.low %v7177_v40, %v7181_v30 }
  0xef   : > { %v3671_v7 = vrot.slane %v3670_v31, 4  ;;  %v3704_v46 = vor.u32 %v3703_v56, %v3700_v32  ;;  %v3727_v12 = vshll.u32 %v7434_v62, 16  ;;  %v3731_v58 = vshrl.u32 %v7434_v62, 16  ;;  %v7502_v32 = vld [vmem:[%s6342_s5 + $0x9c] sm:$0x1] }
  0xf0   : > { %v3622_v26 = vsel %vm6369_vm5, %v3617_v47, %v7368_v60  ;;  %v3691_v40 = vrot.slane %v3690_v22, 4  ;;  %v3695_v30 = vrot.slane %v3693_v8, 5  ;;  %v3632_v52 = vsel %vm6369_vm5, %v3627_v20, %v7377_v49 }
  0xf1   : > { %v7463_v27 = vsel %vm6587_vm8, %v1284_v11, %v1285_v50  ;;  %v3642_v60 = vsel %vm6369_vm5, %v3637_v45, %v7396_v1  ;;  %v3652_v47 = vsel %vm6369_vm5, %v3647_v13, %v3651_v44  ;;  %v3666_v55 = vsel %vm6369_vm5, %v3661_v2, %v7403_v35  ;;  %v5258_v1 = vld [vmem:[%s6342_s5 + $0xa0] sm:$0xf]  ;;  %v7534_v13 = vld [vmem:[%s6342_s5 + $0xa8] sm:$0xf] }
  0xf2   : > { %5610 = vmatmul.mubr.msk.bf16.gmra.mrb[16].mxu1 %vm647_vm4, %v8157_v37  ;;  %5764 = vmatmul.mubr.msk.bf16.vlgmr.msra.gmra.mrb[0].mxu0 %vm647_vm4, %v7173_v41  ;;  %v3681_v41 = vrot.slane %v3680_v5, 4  ;;  %v3714_v49 = vor.u32 %v3713_v59, %v7442_v33  ;;  %v3676_v50 = vsel %vm6369_vm5, %v3671_v7, %v7410_v51  ;;  %v7481_v20 = vrot.slane %v3727_v12, 5 }
  0xf3   : > { %5613 = vmatprep.mubr.msk.bf16.mxu1 %vm647_vm4, %v8158_v17  ;;  %5796 = vmatpush3.bf16.msra.mxu0 %v6946_v34  ;;  %v7465_v34 = vrot.slane %v3717_v61, 5  ;;  %v7479_v61 = vrot.slane %v3704_v46, 4  ;;  %v3733_v45 = vrot.slane %v3731_v58, 4  ;;  %v8159_v44 = vsel %vm6369_vm5, %v7303_v36, %v7299_v29  ;;  %v5304_v46 = vld [vmem:[%s6342_s5 + $0x64] sm:$0xe] }
  0xf4   : > { %5767 = vmatprep.mubr.msk.bf16.mxu0 %vm647_vm4, %v7321_v10  ;;  %v3723_v10 = vrot.slane %v3721_v53, 4  ;;  %v8160_v35 = vsel %vm6369_vm5, %v7301_v14, %v7242_v42  ;;  %v4954_v51 = vcombine.low %v7354_v39, %v7358_v0  ;;  %v3686_v12 = vsel %vm6369_vm5, %v3681_v41, %v7412_v63  ;;  %v7510_v14 = vld [vmem:[%s6342_s5 + $0xa4] sm:$0xf]  ;;  %v5303_v39 = vld [vmem:[%s6342_s5 + $0x50] sm:$0xe] }
  0xf5   : > { %v5274_v9 = vcombine.low %v8160_v35, %v8159_v44  ;;  %v3696_v31 = vsel %vm6369_vm5, %v3691_v40, %v3695_v30  ;;  %v5275_v56 = vcombine.low %v3622_v26, %v3632_v52  ;;  %v4955_v29 = vcombine.low %v7427_v4, %v7463_v27 }
  0xf6   : > { %v7506_v36 = vcombine.low %v3642_v60, %v3652_v47  ;;  %v3724_v42 = vor.u32 %v3723_v10, %v7465_v34  ;;  %v8161_v0 = vcombine.low %v7222_v15, %v7263_v43  ;;  %v7517_v63 = vcombine.low %v3666_v55, %v3676_v50  ;;  %v8163_v55 = vld [vmem:[#allocation17_spill] sm:$0xff]  ;;  %v8164_v50 = vld [vmem:[#allocation12_spill] sm:$0xff] }
  0xf7   : > { %v3715_v11 = vrot.slane %v3714_v49, 4  ;;  %v3742_v5 = vshrl.u32 %v5258_v1, 16  ;;  %v3745_v22 = vshll.u32 %v5258_v1, 16  ;;  %v8162_v8 = vcombine.low %v7273_v24, %v7279_v23 }
  0xf8   : > { %v7525_v53 = vcombine.low %v3686_v12, %v3696_v31  ;;  %v3710_v15 = vsel %vm6369_vm5, %v7479_v61, %v7442_v33  ;;  %v3734_v43 = vor.u32 %v3733_v45, %v7481_v20  ;;  %v3737_v37 = vshll.u32 %v7502_v32, 16 }
  0xf9   : > { %v3751_v24 = vshll.u32 %v7510_v14, 16  ;;  %v3755_v23 = vshrl.u32 %v7510_v14, 16  ;;  %v4199_v2 = vrot.slane %v7159_v19, 5  ;;  %v7541_v59 = vrot.slane %v3724_v42, 4 }
  0xfa   : > { %5614 = vmatmul.mubr.msk.bf16.gmra.mrb[20].mxu1 %vm647_vm4, %v8161_v0  ;;  %5768 = vmatmul.mubr.msk.bf16.gmra.mrb[4].mxu0 %vm647_vm4, %v7325_v28  ;;  %v5311_v28 = vrot.slane %v5303_v39, 9  ;;  %v4202_v33 = vrot.slane %v7184_v21, 5  ;;  %v4205_v17 = vrot.slane %v7191_v57, 5  ;;  %v4208_v7 = vrot.slane %v7240_v6, 5 }
  0xfb   : > { %5617 = vmatprep.mubr.msk.bf16.mxu1 %vm647_vm4, %v8162_v8  ;;  %5771 = vmatprep.mubr.msk.bf16.mxu0 %vm647_vm4, %v7334_v16  ;;  %v3720_v16 = vsel %vm6369_vm5, %v3715_v11, %v7465_v34  ;;  %v7550_v58 = vrot.slane %v3742_v5, 4  ;;  %v7552_v26 = vrot.slane %v3745_v22, 5  ;;  %v3761_v41 = vshll.u32 %v7534_v13, 16 }
  0xfc   : > { %v7557_v19 = vsel %vm6587_vm8, %v5311_v28, %v4199_v2  ;;  %v4201_v21 = vrot.slane %v4199_v2, 4  ;;  %v4204_v40 = vrot.slane %v4202_v33, 4  ;;  %v4207_v57 = vrot.slane %v4205_v17, 4  ;;  %v7626_v28 = vld [vmem:[%s6342_s5 + $0xac] sm:$0xf] }
  0xfd   : > { %v5312_v30 = vrot.slane %v5304_v46, 9  ;;  %v4212_v6 = vrot.slane %v7289_v54, 5  ;;  %v4215_v52 = vrot.slane %v7307_v18, 5  ;;  %v4218_v34 = vrot.slane %v7340_v25, 5  ;;  %v8165_v54 = vld [vmem:[#allocation13_spill] sm:$0xff] }
  0xfe   : > { %v7564_v10 = vsel %vm6587_vm8, %v4201_v21, %v4202_v33  ;;  %v7568_v60 = vsel %vm6587_vm8, %v4204_v40, %v4205_v17  ;;  %v7572_v47 = vsel %vm6587_vm8, %v4207_v57, %v4208_v7  ;;  %v4221_v49 = vrot.slane %v8163_v55, 5  ;;  %v8167_v7 = vld [vmem:[#allocation14_spill] sm:$0xff]  ;;  %v5263_v40 = vld [vmem:[%s6342_s5 + $0xb4] sm:$0xf]  ;;  %v8168_v57 = vld [vmem:[#allocation15_spill] sm:$0xff] }
  0xff   : > { %v8166_v61 = vcombine.low %v8164_v50, %v8165_v54  ;;  %v5322_v18 = vcombine.low %v7557_v19, %v7564_v10  ;;  %v5323_v25 = vcombine.low %v7568_v60, %v7572_v47  ;;  %v7585_v45 = vsel %vm6587_vm8, %v5312_v30, %v4212_v6  ;;  %v6206_v19 = vld [vmem:[%s6342_s5 + $0x84] sm:$0xf] }
 0x100   : > { %v4214_v1 = vrot.slane %v4212_v6, 4  ;;  %v7589_v44 = vrot.slane %v3734_v43, 4  ;;  %v7591_v35 = vrot.slane %v3737_v37, 5  ;;  %v4217_v12 = vrot.slane %v4215_v52, 4  ;;  %v6161_v43 = vld [vmem:[%s6342_s5 + $0x14] sm:$0xff]  }
 0x101   : > { %v4220_v31 = vrot.slane %v4218_v34, 4  ;;  %v7594_v42 = vrot.slane %v3751_v24, 5  ;;  %v3757_v39 = vrot.slane %v3755_v23, 4  ;;  %v7602_v5 = vcombine.low %v3710_v15, %v3720_v16  ;;  %v7640_v6 = vld [vmem:[%s6342_s5 + $0xb8] sm:$0xf] }
 0x102   : > { %5618 = vmatmul.mubr.msk.bf16.gmra.mrb[24].mxu1 %vm647_vm4, %v8166_v61  ;;  %5772 = vmatmul.mubr.msk.bf16.gmra.mrb[8].mxu0 %vm647_vm4, %v5274_v9  ;;  %v7598_v0 = vsel %vm6587_vm8, %v4214_v1, %v4215_v52  ;;  %v6199_v9 = vld [vmem:[%s6342_s5 + $0x6c] sm:$0xf]  ;;  %v3730_v15 = vsel %vm6369_vm5, %v7541_v59, %v7481_v20  ;;  %v3748_v37 = vor.u32 %v7552_v26, %v7550_v58  ;;  %v7621_v24 = vrot.slane %v3761_v41, 5  ;;  %v8169_v26 = vld [vmem:[#allocation5_spill] sm:$0xff]  ;;  %v8170_v41 = vld [vmem:[#allocation6_spill] sm:$0xff] }
 0x103   : > { %5621 = vmatprep.mubr.msk.bf16.mxu1 %vm647_vm4, %v4954_v51  ;;  %5775 = vmatprep.mubr.msk.bf16.mxu0 %vm647_vm4, %v5275_v56  ;;  %v2179_v11 = vshll.u32 %v6199_v9, 16  ;;  %v5305_v51 = vld [vmem:[%s6342_s5 + $0x78] sm:$0xe]  ;;  %v5324_v22 = vcombine.low %v7585_v45, %v7598_v0  ;;  %v7608_v56 = vsel %vm6587_vm8, %v4217_v12, %v4218_v34  ;;  %v7612_v8 = vsel %vm6587_vm8, %v4220_v31, %v4221_v49  ;;  %v8171_v49 = vld [vmem:[#allocation16_spill] sm:$0xff] }
 0x104   : > { %v5325_v23 = vcombine.low %v7608_v56, %v7612_v8  ;;  %v2183_v33 = vshrl.u32 %v6199_v9, 16  ;;  %v5313_v17 = vrot.slane %v5305_v51, 9  ;;  %v4225_v46 = vrot.slane %v8167_v7, 5  ;;  %v6176_v45 = vld [vmem:[%s6342_s5 + $0xa8] sm:$0xff]   ;;  %v6211_v56 = vld [vmem:[%s6342_s5 + $0xa4] sm:$0xf] }
 0x105   : > { %v7628_v2 = vrot.slane %v2179_v11, 5  ;;  %v3758_v16 = vor.u32 %v3757_v39, %v7594_v42  ;;  %v3765_v21 = vshrl.u32 %v7534_v13, 16  ;;  %v4228_v58 = vrot.slane %v8168_v57, 5  ;;  %v5306_v11 = vld [vmem:[%s6342_s5 + $0x8c] sm:$0xe] }
 0x106   : > { %v2202_v30 = vsel %vm6369_vm5, %v8170_v41, %v8169_v26  ;;  %v2185_v52 = vrot.slane %v2183_v33, 4  ;;  %v7644_v34 = vsel %vm6587_vm8, %v5313_v17, %v4225_v46  ;;  %v4227_v55 = vrot.slane %v4225_v46, 4  ;;  %v6162_v17 = vld [vmem:[%s6342_s5 + $0x1c] sm:$0xff]  }
 0x107   : > { %v4231_v50 = vrot.slane %v8171_v49, 5  ;;  %v3771_v54 = vshll.u32 %v7626_v28, 16  ;;  %v3775_v61 = vshrl.u32 %v7626_v28, 16  ;;  %v4230_v1 = vrot.slane %v4228_v58, 4 }
 0x108   : > { %v4234_v12 = vrot.slane %v7417_v3, 5  ;;  %v3786_v31 = vshrl.u32 %v5263_v40, 16  ;;  %v2186_v39 = vor.u32 %v2185_v52, %v7628_v2  ;;  %v7660_v4 = vsel %vm6587_vm8, %v4227_v55, %v4228_v58  ;;  %v7683_v58 = vld [vmem:[%s6342_s5 + $0xb0] sm:$0x1]  ;;  %v8173_v55 = vld [vmem:[#allocation18_spill] sm:$0xff] }
 0x109   : > { %v4233_v27 = vrot.slane %v4231_v50, 4  ;;  %v3795_v3 = vshll.u32 %v7640_v6, 16  ;;  %v7669_v9 = vsel %vm6587_vm8, %v4230_v1, %v4231_v50  ;;  %v3749_v51 = vrot.slane %v3748_v37, 4  ;;  %v8172_v37 = vld [vmem:[#allocation4_spill] sm:$0xff]  ;;  %v7691_v1 = vld [vmem:[%s6342_s5 + $0xbc] sm:$0xf] }
 0x10a   : > { %5622 = vmatmul.mubr.msk.bf16.gmra.mrb[28].mxu1 %vm647_vm4, %v4955_v29  ;;  %5776 = vmatmul.mubr.msk.bf16.gmra.mrb[12].mxu0 %vm647_vm4, %v7506_v36  ;;  %v3789_v29 = vshll.u32 %v5263_v40, 16  ;;  %v5326_v36 = vcombine.low %v7644_v34, %v7660_v4  ;;  %v2187_v33 = vrot.slane %v2186_v39, 4  ;;  %v3759_v7 = vrot.slane %v3758_v16, 4  ;;  %v6163_v50 = vld [vmem:[%s6342_s5 + $0x28] sm:$0xff]  }
 0x10b   : > { %5627 = vmatprep.mubr.msk.bf16.mxu1 %vm647_vm4, %v6161_v43  ;;  %5779 = vmatprep.mubr.msk.bf16.mxu0 %vm647_vm4, %v7517_v63  ;;  %v3799_v43 = vshrl.u32 %v7640_v6, 16  ;;  %v7675_v63 = vsel %vm6587_vm8, %v4233_v27, %v4234_v12  ;;  %v3767_v46 = vrot.slane %v3765_v21, 4  ;;  %v7678_v40 = vrot.slane %v3771_v54, 5  ;;  %v7698_v27 = vld [vmem:[%s6342_s5 + $0xc0] sm:$0xf] }
 0x10c   : > { %v3777_v26 = vrot.slane %v3775_v61, 4  ;;  %v2192_v41 = vsel %vm6369_vm5, %v2187_v33, %v8172_v37  ;;  %v5314_v52 = vrot.slane %v5306_v11, 9  ;;  %v4238_v49 = vrot.slane %v8173_v55, 5  ;;  %v8174_v11 = vld [vmem:[#allocation19_spill] sm:$0xff] }
 0x10d   : > { %v3788_v16 = vrot.slane %v3786_v31, 4  ;;  %v3791_v21 = vrot.slane %v3789_v29, 5  ;;  %v7693_v54 = vrot.slane %v3795_v3, 5  ;;  %v7695_v12 = vcombine.low %v2192_v41, %v2202_v30 }
 0x10e   : > { %v3801_v39 = vrot.slane %v3799_v43, 4  ;;  %v7702_v61 = vsel %vm6587_vm8, %v5314_v52, %v4238_v49  ;;  %v4240_v33 = vrot.slane %v4238_v49, 4  ;;  %v4241_v37 = vrot.slane %v8174_v11, 5  ;;  %v8175_v43 = vld [vmem:[#allocation3_spill] sm:$0xff] }
 0x10f   : > { %v3740_v31 = vsel %vm6369_vm5, %v7589_v44, %v7591_v35  ;;  %v3754_v30 = vsel %vm6369_vm5, %v3749_v51, %v7594_v42  ;;  %v3768_v29 = vor.u32 %v3767_v46, %v7621_v24  ;;  %v3781_v3 = vshll.u32 %v7683_v58, 16  ;;  %v7750_v46 = vld [vmem:[%s6342_s5 + $0xc4] sm:$0x1] }
 0x110   : > { %v3809_v41 = vshrl.u32 %v7691_v1, 16  ;;  %v7722_v44 = vsel %vm6587_vm8, %v4240_v33, %v4241_v37  ;;  %v4243_v35 = vrot.slane %v4241_v37, 4  ;;  %v3778_v42 = vor.u32 %v3777_v26, %v7678_v40 }
 0x111   : > { %v3815_v51 = vshll.u32 %v7698_v27, 16  ;;  %v3764_v52 = vsel %vm6369_vm5, %v3759_v7, %v7621_v24  ;;  %v3792_v55 = vor.u32 %v3791_v21, %v3788_v16  ;;  %v3802_v49 = vor.u32 %v3801_v39, %v7693_v54 }
 0x112   : > { %5628 = vmatmul.mubr.msk.bf16.vlgmr.msra.gmra.mrb[0].mxu1 %vm647_vm4, %v6162_v17  ;;  %5780 = vmatmul.mubr.msk.bf16.gmra.mrb[16].mxu0 %vm647_vm4, %v7525_v53  ;;  %v3805_v17 = vshll.u32 %v7691_v1, 16  ;;  %v3819_v53 = vshrl.u32 %v7698_v27, 16  ;;  %v5280_v26 = vcombine.low %v3730_v15, %v3740_v31  ;;  %v3769_v33 = vrot.slane %v3768_v29, 4 }
 0x113   : > { %5830 = vmatpush3.bf16.msra.mxu1 %v8175_v43  ;;  %5631 = vmatprep.mubr.msk.bf16.mxu1 %vm647_vm4, %v6163_v50  ;;  %v4244_v50 = vrot.slane %v7434_v62, 5  ;;  %v3783_v11 = vrot.slane %v3781_v3, 5  ;;  %v4247_v37 = vrot.slane %v7502_v32, 5  ;;  %v6165_v43 = vld [vmem:[%s6342_s5 + $0x3c] sm:$0xff]   ;;  %v3811_v7 = vrot.slane %v3809_v41, 4 }
 0x114   : > { %5783 = vmatprep.mubr.msk.bf16.mxu0 %vm647_vm4, %v7602_v5  ;;  %v6164_v5 = vld [vmem:[%s6342_s5 + $0x30] sm:$0xff]   ;;  %v3807_v24 = vrot.slane %v3805_v17, 5  ;;  %v5281_v21 = vcombine.low %v3754_v30, %v3764_v52  ;;  %v3779_v39 = vrot.slane %v3778_v42, 4  ;;  %v3817_v57 = vrot.slane %v3815_v51, 5  ;;  %v5307_v32 = vld [vmem:[%s6342_s5 + $0xa0] sm:$0xe] }
 0x115   : > { %v7747_v16 = vsel %vm6587_vm8, %v4243_v35, %v4244_v50  ;;  %v4246_v62 = vrot.slane %v4244_v50, 4  ;;  %v3821_v20 = vrot.slane %v3819_v53, 4  ;;  %v3793_v59 = vrot.slane %v3792_v55, 4  ;;  %v6200_v52 = vld [vmem:[%s6342_s5 + $0x2c] sm:$0xf]  ;;  %v6166_v50 = vld [vmem:[%s6342_s5 + $0x44] sm:$0xff]  }
 0x116   : > { %v3803_v15 = vrot.slane %v3802_v49, 4  ;;  %v3774_v30 = vsel %vm6369_vm5, %v3769_v33, %v7678_v40  ;;  %v3812_v3 = vor.u32 %v3811_v7, %v3807_v24  ;;  %v3825_v17 = vshll.u32 %v7750_v46, 16 }
 0x117   : > { %v7754_v31 = vsel %vm6587_vm8, %v4246_v62, %v4247_v37  ;;  %v3784_v41 = vsel %vm6369_vm5, %v3779_v39, %v3783_v11  ;;  %v3822_v35 = vor.u32 %v3821_v20, %v3817_v57  ;;  %v5315_v42 = vrot.slane %v5307_v32, 9  ;;  %v6167_v11 = vld [vmem:[%s6342_s5 + $0x50] sm:$0xff]  }
 0x118   : > { %v5329_v29 = vcombine.low %v7747_v16, %v7754_v31  ;;  %v4251_v51 = vrot.slane %v7510_v14, 5  ;;  %v3798_v53 = vsel %vm6369_vm5, %v3793_v59, %v7693_v54  ;;  %v3808_v40 = vsel %vm6369_vm5, %v3803_v15, %v3807_v24  ;;  %v6201_v39 = vld [vmem:[%s6342_s5 + $0x30] sm:$0xf] }
 0x119   : > { %v4173_v55 = vrot.slane %v6200_v52, 5  ;;  %v4254_v49 = vrot.slane %v7534_v13, 5  ;;  %v5282_v14 = vcombine.low %v3774_v30, %v3784_v41  ;;  %v3813_v37 = vrot.slane %v3812_v3, 4  ;;  %v6202_v30 = vld [vmem:[%s6342_s5 + $0x34] sm:$0xf]  ;;  %v6168_v52 = vld [vmem:[%s6342_s5 + $0x58] sm:$0xff]  }
 0x11a   : > { %5632 = vmatmul.mubr.msk.bf16.gmra.mrb[4].mxu1 %vm647_vm4, %v6164_v5  ;;  %5784 = vmatmul.mubr.msk.bf16.gmra.mrb[20].mxu0 %vm647_vm4, %v5280_v26  ;;  %v5301_v5 = vld [vmem:[%s6342_s5 + $0x28] sm:$0xe]  ;;  %v7781_v26 = vsel %vm6587_vm8, %v5315_v42, %v4251_v51  ;;  %v4253_v33 = vrot.slane %v4251_v51, 4  ;;  %v3827_v54 = vrot.slane %v3825_v17, 5  ;;  %v3823_v7 = vrot.slane %v3822_v35, 4 }
 0x11b   : > { %5635 = vmatprep.mubr.msk.bf16.mxu1 %vm647_vm4, %v6165_v43  ;;  %5787 = vmatprep.mubr.msk.bf16.mxu0 %vm647_vm4, %v5281_v21  ;;  %v5283_v43 = vcombine.low %v3798_v53, %v3808_v40  ;;  %v4256_v62 = vrot.slane %v4254_v49, 4  ;;  %v5309_v13 = vrot.slane %v5301_v5, 9  ;;  %v4175_v21 = vrot.slane %v4173_v55, 4  ;;  %v5308_v35 = vld [vmem:[%s6342_s5 + $0xb4] sm:$0xe]  ;;  %v8176_v53 = vld [vmem:[#allocation8_spill] sm:$0xff] }
 0x11c   : > { %v7786_v24 = vsel %vm6587_vm8, %v4253_v33, %v4254_v49  ;;  %v4176_v20 = vrot.slane %v6201_v39, 5  ;;  %v4257_v15 = vrot.slane %v7626_v28, 5  ;;  %v4260_v32 = vrot.slane %v7683_v58, 5  ;;  %v6169_v33 = vld [vmem:[%s6342_s5 + $0x64] sm:$0xff]   ;;  %v8178_v39 = vld [vmem:[#allocation9_spill] sm:$0xff] }
 0x11d   : > { %v5330_v59 = vcombine.low %v7781_v26, %v7786_v24  ;;  %v4179_v3 = vrot.slane %v6202_v30, 5  ;;  %v3818_v17 = vsel %vm6369_vm5, %v3813_v37, %v3817_v57  ;;  %v3828_v41 = vsel %vm6369_vm5, %v3823_v7, %v3827_v54  ;;  %v5302_v57 = vld [vmem:[%s6342_s5 + $0x3c] sm:$0xe]  ;;  %v8177_v54 = vld [vmem:[#allocation7_spill] sm:$0xff] }
 0x11e   : > { %v7804_v28 = vsel %vm6587_vm8, %v4256_v62, %v4257_v15  ;;  %v4259_v58 = vrot.slane %v4257_v15, 4  ;;  %v4174_v42 = vsel %vm6587_vm8, %v5309_v13, %v4173_v55  ;;  %v4177_v51 = vsel %vm6587_vm8, %v4175_v21, %v4176_v20 }
 0x11f   : > { %v4186_v40 = vrot.slane %v8176_v53, 5  ;;  %v4178_v49 = vrot.slane %v4176_v20, 4  ;;  %v5284_v5 = vcombine.low %v3818_v17, %v3828_v41  ;;  %v5316_v37 = vrot.slane %v5308_v35, 9  ;;  %v6170_v53 = vld [vmem:[%s6342_s5 + $0x6c] sm:$0xff]  }
 0x120   : > { %v5318_v55 = vcombine.low %v4174_v42, %v4177_v51  ;;  %v4264_v7 = vrot.slane %v7640_v6, 5  ;;  %v4267_v62 = vrot.slane %v7691_v1, 5  ;;  %v5310_v13 = vrot.slane %v5302_v57, 9  ;;  %v8179_v6 = vld [vmem:[#allocation10_spill] sm:$0xff] }
 0x121   : > { %v4188_v21 = vrot.slane %v4186_v40, 4  ;;  %v4189_v20 = vrot.slane %v8178_v39, 5  ;;  %v4192_v30 = vrot.slane %v8179_v6, 5  ;;  %v4180_v1 = vsel %vm6587_vm8, %v4178_v49, %v4179_v3  ;;  %v6171_v57 = vld [vmem:[%s6342_s5 + $0x78] sm:$0xff]   ;;  %v6203_v39 = vld [vmem:[%s6342_s5 + $0x68] sm:$0xf] }
 0x122   : > { %5636 = vmatmul.mubr.msk.bf16.gmra.mrb[8].mxu1 %vm647_vm4, %v6166_v50  ;;  %5788 = vmatmul.mubr.msk.bf16.gmra.mrb[24].mxu0 %vm647_vm4, %v5282_v14  ;;  %v7816_v50 = vsel %vm6587_vm8, %v4259_v58, %v4260_v32  ;;  %v4181_v14 = vrot.slane %v4179_v3, 4  ;;  %v7828_v15 = vsel %vm6587_vm8, %v5316_v37, %v4264_v7  ;;  %v4266_v32 = vrot.slane %v4264_v7, 4  ;;  %v6172_v6 = vld [vmem:[%s6342_s5 + $0x80] sm:$0xff]  }
 0x123   : > { %5639 = vmatprep.mubr.msk.bf16.mxu1 %vm647_vm4, %v6167_v11  ;;  %5791 = vmatprep.mubr.msk.bf16.mxu0 %vm647_vm4, %v5283_v43  ;;  %v5331_v11 = vcombine.low %v7804_v28, %v7816_v50  ;;  %v4182_v43 = vrot.slane %v8177_v54, 5  ;;  %v4269_v58 = vrot.slane %v4267_v62, 4  ;;  %v4187_v35 = vsel %vm6587_vm8, %v5310_v13, %v4186_v40 }
 0x124   : > { %v7840_v41 = vsel %vm6587_vm8, %v4266_v32, %v4267_v62  ;;  %v4190_v42 = vsel %vm6587_vm8, %v4188_v21, %v4189_v20  ;;  %v4270_v3 = vrot.slane %v7698_v27, 5  ;;  %v2173_v32 = vshrl.u32 %v6203_v39, 16 }
 0x125   : > { %v4183_v17 = vsel %vm6587_vm8, %v4181_v14, %v4182_v43  ;;  %v5332_v51 = vcombine.low %v7828_v15, %v7840_v41  ;;  %v8180_v14 = vld [vmem:[#allocation11_spill] sm:$0xff]  ;;  %v2233_v10 = vshll.u32 %v6206_v19, 16  ;;  %v2301_v8 = vshll.u32 %v6211_v56, 16 }
 0x126   : > { %v5319_v49 = vcombine.low %v4180_v1, %v4183_v17  ;;  %v4195_v37 = vrot.slane %v8180_v14, 5  ;;  %v7855_v40 = vsel %vm6587_vm8, %v4269_v58, %v4270_v3  ;;  %v4272_v54 = vrot.slane %v4270_v3, 4  ;;  %v5059_v43 = vld [vmem:[%s6342_s5 + $0x64] sm:$0xf]  ;;  %v6173_v17 = vld [vmem:[%s6342_s5 + $0x8c] sm:$0xff]   ;;  %v6174_v14 = vld [vmem:[%s6342_s5 + $0x94] sm:$0xff]  }
 0x127   : > { %v2160_v13 = vshrl.u32 %v5059_v43, 16  ;;  %v2163_v21 = vshll.u32 %v5059_v43, 16  ;;  %v2303_v4 = vrot.slane %v2301_v8, 5  ;;  %v6215_v8 = vld [vmem:[%s6342_s5 + $0xb0] sm:$0x1] }
 0x129   : > { %v2162_v58 = vrot.slane %v2160_v13, 4 }
 0x12a   : > { %5640 = vmatmul.mubr.msk.bf16.gmra.mrb[12].mxu1 %vm647_vm4, %v6168_v52  ;;  %5792 = vmatmul.mubr.msk.bf16.gmra.mrb[28].mxu0 %vm647_vm4, %v5284_v5  ;;  %v4273_v52 = vrot.slane %v7750_v46, 5  ;;  %v4191_v5 = vrot.slane %v4189_v20, 4  ;;  %v2169_v20 = vshll.u32 %v6203_v39, 16  ;;  %v6205_v39 = vld [vmem:[%s6342_s5 + $0x80] sm:$0xf] }
 0x12b   : > { %5643 = vmatprep.mubr.msk.bf16.mxu1 %vm647_vm4, %v6169_v33  ;;  %5797 = vmatprep.mubr.msk.bf16.mxu0 %vm647_vm4, %v5318_v55  ;;  %v4194_v33 = vrot.slane %v4192_v30, 4  ;;  %v5320_v55 = vcombine.low %v4187_v35, %v4190_v42  ;;  %v2175_v35 = vrot.slane %v2173_v32, 4  ;;  %v5064_v42 = vld [vmem:[%s6342_s5 + $0x78] sm:$0xf]  ;;  %v2227_v32 = vshrl.u32 %v6205_v39, 16 }
 0x12c   : > { %v7861_v27 = vsel %vm6587_vm8, %v4272_v54, %v4273_v52  ;;  %v4193_v46 = vsel %vm6587_vm8, %v4191_v5, %v4192_v30  ;;  %v2165_v30 = vrot.slane %v2163_v21, 5  ;;  %v2171_v48 = vrot.slane %v2169_v20, 5  ;;  %v6204_v52 = vld [vmem:[%s6342_s5 + $0x7c] sm:$0xf] }
 0x12d   : > { %v4196_v7 = vsel %vm6587_vm8, %v4194_v33, %v4195_v37  ;;  %v5333_v62 = vcombine.low %v7855_v40, %v7861_v27  ;;  %v2207_v3 = vshll.u32 %v5064_v42, 16  ;;  %v5069_v37 = vld [vmem:[%s6342_s5 + $0x8c] sm:$0xf]  ;;  %v2223_v20 = vshll.u32 %v6205_v39, 16 }
 0x12e   : > { %v5321_v1 = vcombine.low %v4193_v46, %v4196_v7  ;;  %v2166_v5 = vor.u32 %v2165_v30, %v2162_v58  ;;  %v2176_v33 = vor.u32 %v2175_v35, %v2171_v48 }
 0x12f   : > { %v2209_v43 = vrot.slane %v2207_v3, 5  ;;  %v2225_v47 = vrot.slane %v2223_v20, 5  ;;  %v7908_v3 = vrot.slane %v2233_v10, 5  ;;  %v6210_v20 = vld [vmem:[%s6342_s5 + $0x98] sm:$0xf] }
 0x130   : > { %v2167_v13 = vrot.slane %v2166_v5, 4  ;;  %v2177_v21 = vrot.slane %v2176_v33, 4 }
 0x132   : > { %5644 = vmatmul.mubr.msk.bf16.gmra.mrb[16].mxu1 %vm647_vm4, %v6170_v53  ;;  %5798 = vmatmul.mubr.msk.bf16.vlgmr.msra.gmra.mrb[0].mxu0 %vm647_vm4, %v5319_v49  ;;  %v2204_v53 = vshrl.u32 %v5064_v42, 16  ;;  %v2213_v49 = vshll.u32 %v6204_v52, 16  ;;  %v2182_v60 = vsel %vm6369_vm5, %v2177_v21, %v7628_v2 }
 0x133   : > { %5647 = vmatprep.mubr.msk.bf16.mxu1 %vm647_vm4, %v6171_v57  ;;  %5801 = vmatprep.mubr.msk.bf16.mxu0 %vm647_vm4, %v5320_v55  ;;  %v2217_v57 = vshrl.u32 %v6204_v52, 16  ;;  %v6175_v55 = vld [vmem:[%s6342_s5 + $0xa0] sm:$0xff]  }
 0x134   : > { %v2206_v54 = vrot.slane %v2204_v53, 4  ;;  %v7887_v46 = vrot.slane %v2213_v49, 5  ;;  %v2172_v53 = vsel %vm6369_vm5, %v2167_v13, %v2171_v48  ;;  %v5074_v13 = vld [vmem:[%s6342_s5 + $0xa0] sm:$0xf] }
 0x135   : > { %v2219_v7 = vrot.slane %v2217_v57, 4  ;;  %v5088_v5 = vcombine.low %v2172_v53, %v2182_v60 }
 0x136   : > { %v2210_v35 = vor.u32 %v2209_v43, %v2206_v54  ;;  %v6209_v43 = vld [vmem:[%s6342_s5 + $0x94] sm:$0xf] }
 0x137   : > { %v2220_v42 = vor.u32 %v2219_v7, %v7887_v46  ;;  %v2267_v7 = vshll.u32 %v6209_v43, 16  ;;  %v2271_v39 = vshrl.u32 %v6209_v43, 16 }
 0x138   : > { %v2211_v48 = vrot.slane %v2210_v35, 4 }
 0x139   : > { %v2221_v33 = vrot.slane %v2220_v42, 4  ;;  %v2269_v42 = vrot.slane %v2267_v7, 5  ;;  %v2273_v53 = vrot.slane %v2271_v39, 4 }
 0x13a   : > { %5648 = vmatmul.mubr.msk.bf16.gmra.mrb[20].mxu1 %vm647_vm4, %v6172_v6  ;;  %5802 = vmatmul.mubr.msk.bf16.gmra.mrb[4].mxu0 %vm647_vm4, %v5321_v1  ;;  %v2237_v6 = vshrl.u32 %v6206_v19, 16  ;;  %v2251_v1 = vshll.u32 %v5069_v37, 16  ;;  %v2281_v19 = vshrl.u32 %v6210_v20, 16  ;;  %v2216_v10 = vsel %vm6369_vm5, %v2211_v48, %v7887_v46 }
 0x13b   : > { %5651 = vmatprep.mubr.msk.bf16.mxu1 %vm647_vm4, %v6173_v17  ;;  %5805 = vmatprep.mubr.msk.bf16.mxu0 %vm647_vm4, %v5322_v18  ;;  %v2248_v18 = vshrl.u32 %v5069_v37, 16  ;;  %v6207_v17 = vld [vmem:[%s6342_s5 + $0x90] sm:$0xf] }
 0x13c   : > { %v2257_v58 = vshll.u32 %v6207_v17, 16  ;;  %v2261_v30 = vshrl.u32 %v6207_v17, 16  ;;  %v2239_v52 = vrot.slane %v2237_v6, 4  ;;  %v2253_v57 = vrot.slane %v2251_v1, 5 }
 0x13d   : > { %v2250_v49 = vrot.slane %v2248_v18, 4  ;;  %v2226_v6 = vsel %vm6369_vm5, %v2221_v33, %v2225_v47  ;;  %v2292_v1 = vshrl.u32 %v5074_v13, 16  ;;  %v2295_v17 = vshll.u32 %v5074_v13, 16 }
 0x13e   : > { %v7911_v0 = vrot.slane %v2257_v58, 5  ;;  %v2274_v33 = vor.u32 %v2273_v53, %v2269_v42 }
 0x13f   : > { %v2254_v54 = vor.u32 %v2253_v57, %v2250_v49  ;;  %v2297_v34 = vrot.slane %v2295_v17, 5 }
 0x141   : > { %v2255_v35 = vrot.slane %v2254_v54, 4 }
 0x142   : > { %5652 = vmatmul.mubr.msk.bf16.gmra.mrb[24].mxu1 %vm647_vm4, %v6174_v14  ;;  %5806 = vmatmul.mubr.msk.bf16.gmra.mrb[8].mxu0 %vm647_vm4, %v5323_v25  ;;  %v2229_v25 = vrot.slane %v2227_v32, 4  ;;  %v6208_v14 = vld [vmem:[%s6342_s5 + $0x88] sm:$0x1]  ;;  %v2277_v32 = vshll.u32 %v6210_v20, 16 }
 0x143   : > { %5655 = vmatprep.mubr.msk.bf16.mxu1 %vm647_vm4, %v6175_v55  ;;  %5809 = vmatprep.mubr.msk.bf16.mxu0 %vm647_vm4, %v5324_v22  ;;  %v2263_v22 = vrot.slane %v2261_v30, 4  ;;  %v2243_v37 = vshll.u32 %v6208_v14, 16  ;;  %v2240_v55 = vor.u32 %v2239_v52, %v7908_v3  ;;  %v2294_v52 = vrot.slane %v2292_v1, 4 }
 0x144   : > { %v2230_v2 = vor.u32 %v2229_v25, %v2225_v47  ;;  %v2279_v60 = vrot.slane %v2277_v32, 5  ;;  %v2283_v47 = vrot.slane %v2281_v19, 4  ;;  %v5090_v25 = vcombine.low %v2216_v10, %v2226_v6 }
 0x145   : > { %v2264_v21 = vor.u32 %v2263_v22, %v7911_v0  ;;  %v2245_v18 = vrot.slane %v2243_v37, 5  ;;  %v2241_v30 = vrot.slane %v2240_v55, 4  ;;  %v6213_v37 = vld [vmem:[%s6342_s5 + $0xa8] sm:$0xf]  ;;  %v2298_v7 = vor.u32 %v2297_v34, %v2294_v52 }
 0x146   : > { %v2231_v58 = vrot.slane %v2230_v2, 4  ;;  %v2284_v14 = vor.u32 %v2283_v47, %v2279_v60  ;;  %v2311_v2 = vshll.u32 %v6213_v37, 16  ;;  %v2315_v55 = vshrl.u32 %v6213_v37, 16 }
 0x147   : > { %v2265_v46 = vrot.slane %v2264_v21, 4  ;;  %v2246_v57 = vsel %vm6369_vm5, %v2241_v30, %v2245_v18  ;;  %v2299_v18 = vrot.slane %v2298_v7, 4 }
 0x148   : > { %v2236_v49 = vsel %vm6369_vm5, %v2231_v58, %v7908_v3  ;;  %v8181_v3 = vcombine.low %v7669_v9, %v7675_v63  ;;  %v2275_v9 = vrot.slane %v2274_v33, 4  ;;  %v2285_v63 = vrot.slane %v2284_v14, 4 }
 0x149   : > { %v2270_v48 = vsel %vm6369_vm5, %v2265_v46, %v2269_v42  ;;  %v5091_v21 = vcombine.low %v2236_v49, %v2246_v57  ;;  %v2313_v32 = vrot.slane %v2311_v2, 5  ;;  %v2317_v19 = vrot.slane %v2315_v55, 4 }
 0x14a   : > { %5656 = vmatmul.mubr.msk.bf16.gmra.mrb[28].mxu1 %vm647_vm4, %v6176_v45  ;;  %5810 = vmatmul.mubr.msk.bf16.gmra.mrb[12].mxu0 %vm647_vm4, %v5325_v23  ;;  %v2305_v23 = vshrl.u32 %v6211_v56, 16  ;;  %v6212_v45 = vld [vmem:[%s6342_s5 + $0x9c] sm:$0x1]  ;;  %v2304_v58 = vsel %vm6369_vm5, %v2299_v18, %v2303_v4 }
 0x14b   : > { %5677 = vmatprep.mubr.msk.bf16.mxu1 %vm647_vm4, %v5088_v5  ;;  %5813 = vmatprep.mubr.msk.bf16.mxu0 %vm647_vm4, %v5326_v36  ;;  %v2287_v22 = vshll.u32 %v6212_v45, 16  ;;  %v2260_v5 = vsel %vm6369_vm5, %v2255_v35, %v7911_v0  ;;  %v8182_v0 = vcombine.low %v7702_v61, %v7722_v44  ;;  %v2280_v61 = vsel %vm6369_vm5, %v2275_v9, %v2279_v60 }
 0x14c   : > { %v2307_v36 = vrot.slane %v2305_v23, 4  ;;  %v5092_v39 = vcombine.low %v2260_v5, %v2270_v48  ;;  %v2318_v17 = vor.u32 %v2317_v19, %v2313_v32  ;;  %v2331_v23 = vshll.u32 %v6215_v8, 16  ;;  %v8008_v48 = vld [vmem:[%s8108_s2] ss:$0 sm:$0xff] }
 0x14d   : > { %v2289_v20 = vrot.slane %v2287_v22, 5 }
 0x14e   : > { %v2308_v13 = vor.u32 %v2307_v36, %v2303_v4  ;;  %v2319_v30 = vrot.slane %v2318_v17, 4  ;;  %v2333_v42 = vrot.slane %v2331_v23, 5 }
 0x14f   : > { %v2290_v44 = vsel %vm6369_vm5, %v2285_v63, %v2289_v20 }
 0x150   : > { %v2309_v1 = vrot.slane %v2308_v13, 4  ;;  %v5093_v31 = vcombine.low %v2280_v61, %v2290_v44 }
 0x152   : > { %5678 = vmatmul.mubr.msk.bf16.vlgmr.msra.gmra.mrb[16].mxu1 %vm647_vm4, %v7695_v12  ;;  %5814 = vmatmul.mubr.msk.bf16.gmra.mrb[16].mxu0 %vm647_vm4, %v8181_v3  ;;  %v6214_v12 = vld [vmem:[%s6342_s5 + $0xac] sm:$0xf]  ;;  %v2314_v16 = vsel %vm6369_vm5, %v2309_v1, %v2313_v32 }
 0x153   : > { %5681 = vmatprep.mubr.msk.bf16.mxu1 %vm647_vm4, %v5090_v25  ;;  %v2321_v54 = vshll.u32 %v6214_v12, 16  ;;  %v2325_v43 = vshrl.u32 %v6214_v12, 16  ;;  %5817 = vmatprep.mubr.msk.bf16.mxu0 %vm647_vm4, %v8182_v0 }
 0x155   : > { %v2323_v10 = vrot.slane %v2321_v54, 5  ;;  %v2327_v6 = vrot.slane %v2325_v43, 4 }
 0x157   : > { %v2328_v56 = vor.u32 %v2327_v6, %v2323_v10  ;;  %v2324_v26 = vsel %vm6369_vm5, %v2319_v30, %v2323_v10 }
 0x159   : > { %v2329_v35 = vrot.slane %v2328_v56, 4 }
 0x15a   : > { %5682 = vmatmul.mubr.msk.bf16.gmra.mrb[20].mxu1 %vm647_vm4, %v5091_v21  ;;  %5818 = vmatmul.mubr.msk.bf16.gmra.mrb[20].mxu0 %vm647_vm4, %v5329_v29  ;;  %v5094_v29 = vcombine.low %v2304_v58, %v2314_v16 }
 0x15b   : > { %5685 = vmatprep.mubr.msk.bf16.mxu1 %vm647_vm4, %v5092_v39  ;;  %5821 = vmatprep.mubr.msk.bf16.mxu0 %vm647_vm4, %v5330_v59  ;;  %v2334_v24 = vsel %vm6369_vm5, %v2329_v35, %v2333_v42 }
 0x15c   : > { %v5095_v59 = vcombine.low %v2324_v26, %v2334_v24 }
 0x162   : > { %5686 = vmatmul.mubr.msk.bf16.gmra.mrb[24].mxu1 %vm647_vm4, %v5093_v31  ;;  %5822 = vmatmul.mubr.msk.bf16.gmra.mrb[24].mxu0 %vm647_vm4, %v5331_v11 }
 0x163   : > { %5689 = vmatprep.mubr.msk.bf16.mxu1 %vm647_vm4, %v5094_v29  ;;  %5825 = vmatprep.mubr.msk.bf16.mxu0 %vm647_vm4, %v5332_v51 }
 0x16a   : > { %5690 = vmatmul.mubr.msk.bf16.gmra.mrb[28].mxu1 %vm647_vm4, %v5095_v59  ;;  %5826 = vmatmul.mubr.msk.bf16.gmra.mrb[28].mxu0 %vm647_vm4, %v5333_v62 }
 0x1e5   : > { %v5629_v28 = vpop.f32.mrb[0].mxu1 }
 0x1e6   : > { %v1784_v50 = vpop.f32.mrb[1].mxu1 }
 0x1e7   : > { %v5630_v11 = vpop.f32.mrb[2].mxu1 }
 0x1e8   : > { %v1787_v46 = vpop.f32.mrb[3].mxu1 }
 0x1ed   : > { %v5633_v53 = vpop.f32.mrb[4].mxu1 }
 0x1ee   : > { %v1800_v38 = vpop.f32.mrb[5].mxu1 }
 0x1ef   : > { %v5634_v60 = vpop.f32.mrb[6].mxu1 }
 0x1f0   : > { %v1803_v47 = vpop.f32.mrb[7].mxu1 }
 0x1f5   : > { %v5637_v25 = vpop.f32.mrb[8].mxu1 }
 0x1f6   : > { %v1816_v15 = vpop.f32.mrb[9].mxu1 }
 0x1f7   : > { %v5638_v41 = vpop.f32.mrb[10].mxu1 }
 0x1f8   : > { %v1819_v51 = vpop.f32.mrb[11].mxu1 }
 0x1fd   : > { %v7997_v52 = vpop.f32.mrb[12].mxu1 }
 0x1fe   : > { %v7999_v34 = vpop.f32.mrb[13].mxu1 }
 0x1ff   : > { %v8001_v40 = vpop.f32.mrb[14].mxu1 }
 0x200   : > { %v8003_v27 = vpop.f32.mrb[15].mxu1 }
 0x205   : > { %v5799_v62 = vpop.f32.mrb[0].mxu0 }
 0x206   : > { %v5831_v4 = vadd.f32 %v5799_v62, %v5629_v28  ;;  %v4410_v36 = vpop.f32.mrb[1].mxu0 }
 0x207   : > { %v5832_v49 = vadd.f32 %v4410_v36, %v1784_v50  ;;  %v5800_v57 = vpop.f32.mrb[2].mxu0 }
 0x208   : > { %v5833_v45 = vadd.f32 %v5800_v57, %v5630_v11  ;;  %v4413_v22 = vpop.f32.mrb[3].mxu0  ;;  %v4578_v14 = vadd.f32 %v5831_v4, %v8008_v48 }
 0x209   : > { %v5834_v5 = vadd.f32 %v4413_v22, %v1787_v46  ;;  %v4576_v2 = vadd.f32 %v5832_v49, %v8008_v48 }
 0x20a   : > { %v4579_v54 = vadd.f32 %v5833_v45, %v8008_v48  ;;  %v4610_v9 = vmax.f32 %v4578_v14, 0.0 }
 0x20b   : > { %v4577_v13 = vadd.f32 %v5834_v5, %v8008_v48  ;;  %v4608_v32 = vmax.f32 %v4576_v2, 0.0 }
 0x20c   : > { %v4611_v6 = vmax.f32 %v4579_v54, 0.0 }
 0x20d   : > { %v5803_v33 = vpop.f32.mrb[4].mxu0  ;;  %v4609_v61 = vmax.f32 %v4577_v13, 0.0 }
 0x20e   : > { %v5835_v3 = vadd.f32 %v5803_v33, %v5633_v53  ;;  %v4426_v37 = vpop.f32.mrb[5].mxu0 }
 0x20f   : > { %v5836_v55 = vadd.f32 %v4426_v37, %v1800_v38  ;;  %v5804_v12 = vpop.f32.mrb[6].mxu0 }
 0x210   : > { %v4582_v43 = vadd.f32 %v5835_v3, %v8008_v48  ;;  %v5837_v0 = vadd.f32 %v5804_v12, %v5634_v60  ;;  %v4429_v7 = vpop.f32.mrb[7].mxu0 }
 0x211   : > { %v4580_v21 = vadd.f32 %v5836_v55, %v8008_v48  ;;  %v5838_v39 = vadd.f32 %v4429_v7, %v1803_v47 }
 0x212   : > { %v4614_v63 = vmax.f32 %v4582_v43, 0.0  ;;  %v4583_v20 = vadd.f32 %v5837_v0, %v8008_v48 }
 0x213   : > { %v4612_v19 = vmax.f32 %v4580_v21, 0.0  ;;  %v4581_v10 = vadd.f32 %v5838_v39, %v8008_v48 }
 0x214   : > { %v4642_v18 = vmax.f32 %v4610_v9, %v4614_v63  ;;  %v4615_v1 = vmax.f32 %v4583_v20, 0.0 }
 0x215   : > { %v4640_v44 = vmax.f32 %v4608_v32, %v4612_v19  ;;  %v4613_v17 = vmax.f32 %v4581_v10, 0.0  ;;  %v5807_v56 = vpop.f32.mrb[8].mxu0 }
 0x216   : > { %4659 = vst.msk [vmem:[#allocation2 + $0x10] sm:$0xff] %vm4656_vm9, %v4642_v18  ;;  %v4643_v8 = vmax.f32 %v4611_v6, %v4615_v1  ;;  %v5839_v23 = vadd.f32 %v5807_v56, %v5637_v25  ;;  %v4442_v58 = vpop.f32.mrb[9].mxu0 }
 0x217   : > { %4657 = vst.msk [vmem:[#allocation2] sm:$0xff] %vm4656_vm9, %v4640_v44  ;;  %v4641_v16 = vmax.f32 %v4609_v61, %v4613_v17  ;;  %v5840_v31 = vadd.f32 %v4442_v58, %v1816_v15  ;;  %v5808_v29 = vpop.f32.mrb[10].mxu0 }
 0x218   : > { %4660 = vst.msk [vmem:[#allocation2 + $0x18] sm:$0xff] %vm4656_vm9, %v4643_v8  ;;  %v5841_v30 = vadd.f32 %v5808_v29, %v5638_v41  ;;  %v4445_v35 = vpop.f32.mrb[11].mxu0  ;;  %v4586_v24 = vadd.f32 %v5839_v23, %v8008_v48 }
 0x219   : > { %4658 = vst.msk [vmem:[#allocation2 + $0x8] sm:$0xff] %vm4656_vm9, %v4641_v16  ;;  %v5842_v42 = vadd.f32 %v4445_v35, %v1819_v51  ;;  %v4584_v46 = vadd.f32 %v5840_v31, %v8008_v48 }
 0x21a   : > { %v4587_v15 = vadd.f32 %v5841_v30, %v8008_v48  ;;  %v4618_v57 = vmax.f32 %v4586_v24, 0.0 }
 0x21b   : > { %v4616_v5 = vmax.f32 %v4584_v46, 0.0 }
 0x21c   : > { %v4619_v3 = vmax.f32 %v4587_v15, 0.0 }
 0x21d   : > { %v5811_v26 = vpop.f32.mrb[12].mxu0 }
 0x21e   : > { %v5843_v59 = vadd.f32 %v5811_v26, %v7997_v52  ;;  %v4458_v28 = vpop.f32.mrb[13].mxu0 }
 0x21f   : > { %v4675_v50 = vld [vmem:[#allocation2 + $0x10] ss:$2 sm:$0xff]  ;;  %v4691_v11 = vld [vmem:[#allocation2 + $0x11] ss:$2 sm:$0xff]  ;;  %v5844_v53 = vadd.f32 %v4458_v28, %v7999_v34  ;;  %v5812_v38 = vpop.f32.mrb[14].mxu0  ;;  %v4585_v34 = vadd.f32 %v5842_v42, %v8008_v48 }
 0x220   : > { %v4705_v60 = vmax.f32 %v4675_v50, %v4691_v11  ;;  %v4673_v47 = vld [vmem:[#allocation2] ss:$2 sm:$0xff]  ;;  %v4689_v25 = vld [vmem:[#allocation2 + $0x1] ss:$2 sm:$0xff]  ;;  %v4590_v41 = vadd.f32 %v5843_v59, %v8008_v48  ;;  %v5845_v51 = vadd.f32 %v5812_v38, %v8001_v40  ;;  %v4461_v62 = vpop.f32.mrb[15].mxu0 }
 0x221   : > { %v4704_v52 = vmax.f32 %v4673_v47, %v4689_v25  ;;  %v4588_v4 = vadd.f32 %v5844_v53, %v8008_v48  ;;  %v5846_v36 = vadd.f32 %v4461_v62, %v8003_v27  ;;  %v4617_v12 = vmax.f32 %v4585_v34, 0.0 }
 0x222   : > { %v5363_v49 = vpack.c.bf16 %v4705_v60, %v4705_v60  ;;  %v4622_v45 = vmax.f32 %v4590_v41, 0.0  ;;  %v4591_v40 = vadd.f32 %v5845_v51, %v8008_v48 }
 0x223   : > { %v5362_v22 = vpack.c.bf16 %v4704_v52, %v4704_v52  ;;  %v4620_v33 = vmax.f32 %v4588_v4, 0.0  ;;  %v4589_v14 = vadd.f32 %v5846_v36, %v8008_v48 }
 0x224   : > { %4746 = vst.msk [vmem:[%s8040_s4 + $0x4] sm:$0xf] %vm4744_vm10, %v5363_v49  ;;  %v4646_v37 = vmax.f32 %v4618_v57, %v4622_v45  ;;  %v4623_v2 = vmax.f32 %v4591_v40, 0.0 }
 0x225   : > { %v5679_v55 = vpop.f32.mrb[16].mxu1  ;;  %4745 = vst.msk [vmem:[%s8040_s4] sm:$0xf] %vm4744_vm10, %v5362_v22  ;;  %v4644_v27 = vmax.f32 %v4616_v5, %v4620_v33  ;;  %v4621_v54 = vmax.f32 %v4589_v14, 0.0  ;;  %v5815_v43 = vpop.f32.mrb[16].mxu0 }
 0x226   : > { %v2534_v0 = vpop.f32.mrb[17].mxu1  ;;  %4663 = vst.msk [vmem:[#allocation2 + $0x30] sm:$0xff] %vm4656_vm9, %v4646_v37  ;;  %v4647_v7 = vmax.f32 %v4619_v3, %v4623_v2  ;;  %v5847_v13 = vadd.f32 %v5815_v43, %v5679_v55  ;;  %v4474_v21 = vpop.f32.mrb[17].mxu0 }
 0x227   : > { %v5680_v39 = vpop.f32.mrb[18].mxu1  ;;  %4661 = vst.msk [vmem:[#allocation2 + $0x20] sm:$0xff] %vm4656_vm9, %v4644_v27  ;;  %v4645_v9 = vmax.f32 %v4617_v12, %v4621_v54  ;;  %v5848_v63 = vadd.f32 %v4474_v21, %v2534_v0  ;;  %v5816_v20 = vpop.f32.mrb[18].mxu0 }
 0x228   : > { %v2537_v32 = vpop.f32.mrb[19].mxu1  ;;  %4664 = vst.msk [vmem:[#allocation2 + $0x38] sm:$0xff] %vm4656_vm9, %v4647_v7  ;;  %v5849_v19 = vadd.f32 %v5816_v20, %v5680_v39  ;;  %v4477_v10 = vpop.f32.mrb[19].mxu0  ;;  %v4594_v44 = vadd.f32 %v5847_v13, %v8008_v48 }
 0x229   : > { %4662 = vst.msk [vmem:[#allocation2 + $0x28] sm:$0xff] %vm4656_vm9, %v4645_v9  ;;  %v5850_v6 = vadd.f32 %v4477_v10, %v2537_v32  ;;  %v4592_v16 = vadd.f32 %v5848_v63, %v8008_v48 }
 0x22a   : > { %v4595_v24 = vadd.f32 %v5849_v19, %v8008_v48  ;;  %v4626_v47 = vmax.f32 %v4594_v44, 0.0 }
 0x22b   : > { %v4593_v46 = vadd.f32 %v5850_v6, %v8008_v48  ;;  %v4624_v51 = vmax.f32 %v4592_v16, 0.0 }
 0x22c   : > { %v4627_v34 = vmax.f32 %v4595_v24, 0.0 }
 0x22d   : > { %v5683_v18 = vpop.f32.mrb[20].mxu1  ;;  %v5819_v1 = vpop.f32.mrb[20].mxu0  ;;  %v4625_v57 = vmax.f32 %v4593_v46, 0.0 }
 0x22e   : > { %v2550_v61 = vpop.f32.mrb[21].mxu1  ;;  %v5851_v17 = vadd.f32 %v5819_v1, %v5683_v18  ;;  %v4490_v56 = vpop.f32.mrb[21].mxu0 }
 0x22f   : > { %v5684_v8 = vpop.f32.mrb[22].mxu1  ;;  %v4679_v23 = vld [vmem:[#allocation2 + $0x30] ss:$2 sm:$0xff]  ;;  %v4695_v58 = vld [vmem:[#allocation2 + $0x31] ss:$2 sm:$0xff]  ;;  %v5852_v31 = vadd.f32 %v4490_v56, %v2550_v61  ;;  %v5820_v29 = vpop.f32.mrb[22].mxu0 }
 0x230   : > { %v2553_v30 = vpop.f32.mrb[23].mxu1  ;;  %v4707_v35 = vmax.f32 %v4679_v23, %v4695_v58  ;;  %v4677_v42 = vld [vmem:[#allocation2 + $0x20] ss:$2 sm:$0xff]  ;;  %v4693_v26 = vld [vmem:[#allocation2 + $0x21] ss:$2 sm:$0xff]  ;;  %v4598_v59 = vadd.f32 %v5851_v17, %v8008_v48  ;;  %v5853_v28 = vadd.f32 %v5820_v29, %v5684_v8  ;;  %v4493_v50 = vpop.f32.mrb[23].mxu0 }
 0x231   : > { %v4706_v11 = vmax.f32 %v4677_v42, %v4693_v26  ;;  %v4596_v53 = vadd.f32 %v5852_v31, %v8008_v48  ;;  %v5854_v38 = vadd.f32 %v4493_v50, %v2553_v30 }
 0x232   : > { %v5365_v60 = vpack.c.bf16 %v4707_v35, %v4707_v35  ;;  %v4630_v25 = vmax.f32 %v4598_v59, 0.0  ;;  %v4599_v15 = vadd.f32 %v5853_v28, %v8008_v48 }
 0x233   : > { %v5364_v41 = vpack.c.bf16 %v4706_v11, %v4706_v11  ;;  %v4628_v62 = vmax.f32 %v4596_v53, 0.0  ;;  %v4597_v52 = vadd.f32 %v5854_v38, %v8008_v48 }
 0x234   : > { %4748 = vst.msk [vmem:[%s8040_s4 + $0xc] sm:$0xf] %vm4744_vm10, %v5365_v60  ;;  %v4650_v4 = vmax.f32 %v4626_v47, %v4630_v25  ;;  %v4631_v36 = vmax.f32 %v4599_v15, 0.0 }
 0x235   : > { %v5687_v49 = vpop.f32.mrb[24].mxu1  ;;  %4747 = vst.msk [vmem:[%s8040_s4 + $0x8] sm:$0xf] %vm4744_vm10, %v5364_v41  ;;  %v4648_v45 = vmax.f32 %v4624_v51, %v4628_v62  ;;  %v4629_v40 = vmax.f32 %v4597_v52, 0.0  ;;  %v5823_v22 = vpop.f32.mrb[24].mxu0 }
 0x236   : > { %v2566_v5 = vpop.f32.mrb[25].mxu1  ;;  %4667 = vst.msk [vmem:[#allocation2 + $0x50] sm:$0xff] %vm4656_vm9, %v4650_v4  ;;  %v4651_v33 = vmax.f32 %v4627_v34, %v4631_v36  ;;  %v5855_v14 = vadd.f32 %v5823_v22, %v5687_v49  ;;  %v4506_v3 = vpop.f32.mrb[25].mxu0 }
 0x237   : > { %v5688_v37 = vpop.f32.mrb[26].mxu1  ;;  %4665 = vst.msk [vmem:[#allocation2 + $0x40] sm:$0xff] %vm4656_vm9, %v4648_v45  ;;  %v4649_v2 = vmax.f32 %v4625_v57, %v4629_v40  ;;  %v5856_v55 = vadd.f32 %v4506_v3, %v2566_v5  ;;  %v5824_v12 = vpop.f32.mrb[26].mxu0 }
 0x238   : > { %v2569_v27 = vpop.f32.mrb[27].mxu1  ;;  %4668 = vst.msk [vmem:[#allocation2 + $0x58] sm:$0xff] %vm4656_vm9, %v4651_v33  ;;  %v5857_v54 = vadd.f32 %v5824_v12, %v5688_v37  ;;  %v4509_v43 = vpop.f32.mrb[27].mxu0  ;;  %v4602_v39 = vadd.f32 %v5855_v14, %v8008_v48 }
 0x239   : > { %4666 = vst.msk [vmem:[#allocation2 + $0x48] sm:$0xff] %vm4656_vm9, %v4649_v2  ;;  %v5858_v0 = vadd.f32 %v4509_v43, %v2569_v27  ;;  %v4600_v10 = vadd.f32 %v5856_v55, %v8008_v48 }
 0x23a   : > { %v4603_v56 = vadd.f32 %v5857_v54, %v8008_v48  ;;  %v4634_v42 = vmax.f32 %v4602_v39, 0.0 }
 0x23b   : > { %v4601_v31 = vadd.f32 %v5858_v0, %v8008_v48  ;;  %v4632_v28 = vmax.f32 %v4600_v10, 0.0 }
 0x23c   : > { %v4635_v46 = vmax.f32 %v4603_v56, 0.0 }
 0x23d   : > { %v5691_v7 = vpop.f32.mrb[28].mxu1  ;;  %v5827_v13 = vpop.f32.mrb[28].mxu0  ;;  %v4633_v60 = vmax.f32 %v4601_v31, 0.0 }
 0x23e   : > { %v2582_v21 = vpop.f32.mrb[29].mxu1  ;;  %v5859_v9 = vadd.f32 %v5827_v13, %v5691_v7  ;;  %v4522_v63 = vpop.f32.mrb[29].mxu0 }
 0x23f   : > { %v5692_v20 = vpop.f32.mrb[30].mxu1  ;;  %v4683_v32 = vld [vmem:[#allocation2 + $0x50] ss:$2 sm:$0xff]  ;;  %v4699_v19 = vld [vmem:[#allocation2 + $0x51] ss:$2 sm:$0xff]  ;;  %v5860_v6 = vadd.f32 %v4522_v63, %v2582_v21  ;;  %v5828_v18 = vpop.f32.mrb[30].mxu0 }
 0x240   : > { %v2585_v1 = vpop.f32.mrb[31].mxu1  ;;  %v4709_v61 = vmax.f32 %v4683_v32, %v4699_v19  ;;  %v4681_v44 = vld [vmem:[#allocation2 + $0x40] ss:$2 sm:$0xff]  ;;  %v4697_v17 = vld [vmem:[#allocation2 + $0x41] ss:$2 sm:$0xff]  ;;  %v4606_v8 = vadd.f32 %v5859_v9, %v8008_v48  ;;  %v5861_v23 = vadd.f32 %v5828_v18, %v5692_v20  ;;  %v4525_v58 = vpop.f32.mrb[31].mxu0 }
 0x241   : > { %v4708_v16 = vmax.f32 %v4681_v44, %v4697_v17  ;;  %v4604_v29 = vadd.f32 %v5860_v6, %v8008_v48  ;;  %v5862_v30 = vadd.f32 %v4525_v58, %v2585_v1 }
 0x242   : > { %v5367_v35 = vpack.c.bf16 %v4709_v61, %v4709_v61  ;;  %v4638_v26 = vmax.f32 %v4606_v8, 0.0  ;;  %v4607_v24 = vadd.f32 %v5861_v23, %v8008_v48 }
 0x243   : > { %v5366_v59 = vpack.c.bf16 %v4708_v16, %v4708_v16  ;;  %v4636_v50 = vmax.f32 %v4604_v29, 0.0  ;;  %v4605_v11 = vadd.f32 %v5862_v30, %v8008_v48 }
 0x244   : > { %4750 = vst.msk [vmem:[%s8040_s4 + $0x14] sm:$0xf] %vm4744_vm10, %v5367_v35  ;;  %v4654_v53 = vmax.f32 %v4634_v42, %v4638_v26  ;;  %v4639_v38 = vmax.f32 %v4607_v24, 0.0 }
 0x245   : > { %4749 = vst.msk [vmem:[%s8040_s4 + $0x10] sm:$0xf] %vm4744_vm10, %v5366_v59  ;;  %v4652_v47 = vmax.f32 %v4632_v28, %v4636_v50  ;;  %v4637_v25 = vmax.f32 %v4605_v11, 0.0 }
 0x246   : > { %4671 = vst.msk [vmem:[#allocation2 + $0x70] sm:$0xff] %vm4656_vm9, %v4654_v53  ;;  %v4655_v15 = vmax.f32 %v4635_v46, %v4639_v38 }
 0x247   : > { %4669 = vst.msk [vmem:[#allocation2 + $0x60] sm:$0xff] %vm4656_vm9, %v4652_v47  ;;  %v4653_v41 = vmax.f32 %v4633_v60, %v4637_v25 }
 0x248   : > { %4672 = vst.msk [vmem:[#allocation2 + $0x78] sm:$0xff] %vm4656_vm9, %v4655_v15 }
 0x249   : > { %4670 = vst.msk [vmem:[#allocation2 + $0x68] sm:$0xff] %vm4656_vm9, %v4653_v41 }
 0x24f   : > { %v4687_v48 = vld [vmem:[#allocation2 + $0x70] ss:$2 sm:$0xff]  ;;  %v4703_v51 = vld [vmem:[#allocation2 + $0x71] ss:$2 sm:$0xff] }
 0x250   : > { %v4711_v62 = vmax.f32 %v4687_v48, %v4703_v51  ;;  %v4685_v52 = vld [vmem:[#allocation2 + $0x60] ss:$2 sm:$0xff]  ;;  %v4701_v34 = vld [vmem:[#allocation2 + $0x61] ss:$2 sm:$0xff] }
 0x251   : > { %v4710_v4 = vmax.f32 %v4685_v52, %v4701_v34 }
 0x252   : > { %v5369_v36 = vpack.c.bf16 %v4711_v62, %v4711_v62 }
 0x253   : > { %v5368_v49 = vpack.c.bf16 %v4710_v4, %v4710_v4 }
 0x254   : > { %4752 = vst.msk [vmem:[%s8040_s4 + $0x1c] sm:$0xf] %vm4744_vm10, %v5369_v36 }
 0x255   : > { %4751 = vst.msk [vmem:[%s8040_s4 + $0x18] sm:$0xf] %vm4744_vm10, %v5368_v49 }
 0x256 PF: > { %s13_s16 = sadd.s32 1, %s6254_s16   ;;  %s8184_s12 = smov %s6246_s14 }
 0x257   : > { %p10_p7 = scmp.ge.s32.totalorder %s13_s16, 10   ;;  %s8185_s13 = smov %s6250_s15 }
 0x258   : > { %s8186_s14 = smov %s8189_s17  ;;  %s8187_s15 = smov %s8193_s18 }
 0x259   :  { %12 = sbr.rel (!%p10_p7) target bundleno = 3 (0x3), region = 88 }

</bundles_post_ra>
